<compile_context>
chip_gen: v7x
topology: tpu7x:2x2x1
jax: 0.10.0
libtpu: 0.0.40
codegen_flags: <defaults>
</compile_context>

<pallas_src>
import math

import jax
import jax.numpy as jnp
from jax import lax
from jax.experimental import pallas as pl
from jax.experimental.pallas import tpu as pltpu

FEAT_DIM = 1280            # tf_efficientnetv2_m num_features
H1, H2 = 1024, 512
NUM_CLASSES = 5
OUT_PAD = 128              # lane-dense padded output width (unmasked vst, clean MXU tile)
LN_EPS = 1e-5
_GELU_C = math.sqrt(2.0 / math.pi)


def _round_up(x, m):
    return ((x + m - 1) // m) * m


def _cdiv(a, b):
    return (a + b - 1) // b


def _gelu_tanh(x):
    # tanh-approx GELU — tanh lowers to the EUP (free slot) instead of a long VALU erf polynomial.
    # TODO(synk): PyTorch nn.GELU() defaults to exact erf; tanh-approx deviates by ~1e-3.
    return 0.5 * x * (1.0 + jnp.tanh(_GELU_C * (x + 0.044715 * (x * x * x))))


def _layernorm(x, gamma, beta):
    mu = jnp.mean(x, axis=-1, keepdims=True)
    xc = x - mu
    var = jnp.mean(xc * xc, axis=-1, keepdims=True)
    inv = lax.rsqrt(var + LN_EPS)
    return xc * inv * gamma + beta


def head_kernel(x_ref, w1_ref, aux1_ref, w2_ref, aux2_ref, w3_ref, b3_ref, o_ref):
    # x_ref: [TM, 1280] pooled features (bf16).  w1/w2/w3 bf16; LN/bias vectors f32.
    # aux*_ref rows: 0 = linear bias, 1 = LN gamma, 2 = LN beta.
    feat = x_ref[...]

    # Linear(1280, 1024) + LayerNorm + GELU   (Dropout(0.3) = identity in eval)
    h = jnp.dot(feat, w1_ref[...], preferred_element_type=jnp.float32) + aux1_ref[0:1, :]
    h = _gelu_tanh(_layernorm(h, aux1_ref[1:2, :], aux1_ref[2:3, :]))       # f32 elementwise

    # Linear(1024, 512) + LayerNorm + GELU    (Dropout(0.2) = identity in eval)
    h = jnp.dot(h.astype(jnp.bfloat16), w2_ref[...],
                preferred_element_type=jnp.float32) + aux2_ref[0:1, :]
    h = _gelu_tanh(_layernorm(h, aux2_ref[1:2, :], aux2_ref[2:3, :]))       # f32 elementwise

    # Linear(512, 5) — bf16 operands (single native MXU pass), f32 accumulate,
    # lane-dense into 128 padded columns; the wrapper slices the first 5.
    o_ref[...] = jnp.dot(h.astype(jnp.bfloat16), w3_ref[...],
                         preferred_element_type=jnp.float32) + b3_ref[...]


def classifier_head(feat_nchw, params, *, max_block_b=256):
    """feat_nchw: [B, C, H, W] backbone feature map (PyTorch NCHW). Returns [B, 5] logits.
       max_block_b: 256 for v6e/v7x (256x256 MXU); 128 recommended on v5e."""
    B, C, _, _ = feat_nchw.shape
    assert C == FEAT_DIM

    # AdaptiveAvgPool2d((1,1)) + Flatten, done in the wrapper directly on NCHW (no transpose,
    # no full-feature-map DMA into the kernel).
    pooled = jnp.mean(feat_nchw.astype(jnp.float32), axis=(2, 3))           # [B, 1280] f32

    # Balanced, 16-row-aligned batch tiling (bf16 native (16,128) tile; minimal padded rows).
    # B > max_block_b -> >=2 grid steps, so the "parallel" axis can shard across v7x's 2 TCs.
    ntiles = max(1, _cdiv(B, max_block_b))
    tm = _round_up(_cdiv(B, ntiles), 16)
    b_pad = ntiles * tm
    # NOTE: padded (all-zero) rows pass through LayerNorm with zero variance, producing
    # rsqrt(eps)-scaled but finite junk; harmless since they are sliced off below.
    pooled = jnp.pad(pooled, ((0, b_pad - B), (0, 0))).astype(jnp.bfloat16)

    (w1, aux1, w2, aux2, w3, b3) = params

    # Weights / LN vectors never change across grid steps: keep them VMEM-resident and
    # single-buffered (the default double-buffer would waste ~3.6 MiB of VMEM).
    def resident(shape):
        return pl.BlockSpec(shape, lambda i: (0, 0),
                            pipeline_mode=pl.Buffered(buffer_count=1))

    out_padded = pl.pallas_call(
        head_kernel,
        out_shape=jax.ShapeDtypeStruct((b_pad, OUT_PAD), jnp.float32),
        grid=(ntiles,),
        in_specs=[
            pl.BlockSpec((tm, FEAT_DIM), lambda i: (i, 0)),                 # activation tile (pipelined)
            resident((FEAT_DIM, H1)), resident((3, H1)),
            resident((H1, H2)),       resident((3, H2)),
            resident((H2, OUT_PAD)),  resident((1, OUT_PAD)),
        ],
        out_specs=pl.BlockSpec((tm, OUT_PAD), lambda i: (i, 0)),
        compiler_params=pltpu.CompilerParams(
            dimension_semantics=("parallel",),
            vmem_limit_bytes=32 << 20,
        ),
    )(pooled, w1, aux1, w2, aux2, w3, b3)

    return out_padded[:B, :NUM_CLASSES]


def init_params(key):
    """Mirrors _initialize_weights():
       Linear: kaiming_normal_ (std = sqrt(2 / fan_in)), bias = 0.
       LayerNorm: weight = 1, bias = 0 (PyTorch default; untouched by _initialize_weights).
       Weights stored bf16 [in, out] (MXU-native); per-layer bias/gamma/beta packed into one
       (3, H) f32 array (rows = [linear bias, LN gamma, LN beta]); w3 lane-padded to 128 cols."""
    k1, k2, k3 = jax.random.split(key, 3)

    def kaiming(k, fan_in, fan_out):
        std = math.sqrt(2.0 / fan_in)
        return jax.random.normal(k, (fan_in, fan_out), jnp.float32) * std   # stored [in, out]

    w1 = kaiming(k1, FEAT_DIM, H1).astype(jnp.bfloat16)
    aux1 = jnp.stack([jnp.zeros((H1,), jnp.float32),     # linear bias
                      jnp.ones((H1,), jnp.float32),      # LN gamma
                      jnp.zeros((H1,), jnp.float32)])    # LN beta

    w2 = kaiming(k2, H1, H2).astype(jnp.bfloat16)
    aux2 = jnp.stack([jnp.zeros((H2,), jnp.float32),
                      jnp.ones((H2,), jnp.float32),
                      jnp.zeros((H2,), jnp.float32)])

    w3_core = kaiming(k3, H2, NUM_CLASSES)                                  # [512, 5]
    w3 = (jnp.zeros((H2, OUT_PAD), jnp.float32)
          .at[:, :NUM_CLASSES].set(w3_core)).astype(jnp.bfloat16)
    b3 = jnp.zeros((1, OUT_PAD), jnp.float32)

    return (w1, aux1, w2, aux2, w3, b3)


def reference_head(feat_nchw, params):
    """Pure-JAX reference following the same precision path (bf16 GEMM operands, f32 accumulate,
       f32 LayerNorm, tanh-approx GELU)."""
    (w1, aux1, w2, aux2, w3, b3) = params
    feat = jnp.mean(feat_nchw.astype(jnp.float32), axis=(2, 3)).astype(jnp.bfloat16)
    h = jnp.dot(feat, w1, preferred_element_type=jnp.float32) + aux1[0:1, :]
    h = _gelu_tanh(_layernorm(h, aux1[1:2, :], aux1[2:3, :]))
    h = jnp.dot(h.astype(jnp.bfloat16), w2, preferred_element_type=jnp.float32) + aux2[0:1, :]
    h = _gelu_tanh(_layernorm(h, aux2[1:2, :], aux2[2:3, :]))
    out = jnp.dot(h.astype(jnp.bfloat16), w3, preferred_element_type=jnp.float32) + b3
    return out[:, :NUM_CLASSES]


if __name__ == "__main__":
    key = jax.random.PRNGKey(0)
    kx, kp = jax.random.split(key)

    # Small backbone-style output feature map: batch=2, C=1280 (num_features), spatial 4x4 (NCHW).
    B, Hs, Ws = 2, 4, 4
    feat = jax.random.normal(kx, (B, FEAT_DIM, Hs, Ws), jnp.float32)

    params = init_params(kp)

    out = jax.block_until_ready(classifier_head(feat, params))
    ref = reference_head(feat, params)

    assert out.shape == (B, NUM_CLASSES)
    assert jnp.allclose(out, ref, atol=1e-2, rtol=1e-2), "mismatch vs JAX reference"

    print("KERNEL_OK")
</pallas_src>

<mosaic_0001>
module attributes {stable_mosaic.version = 11 : i64} {
  func.func @head_kernel(%arg0: i32, %arg1: memref<16x1280xbf16, #tpu.memory_space<vmem>>, %arg2: memref<1280x1024xbf16, #tpu.memory_space<vmem>>, %arg3: memref<3x1024xf32, #tpu.memory_space<vmem>>, %arg4: memref<1024x512xbf16, #tpu.memory_space<vmem>>, %arg5: memref<3x512xf32, #tpu.memory_space<vmem>>, %arg6: memref<512x128xbf16, #tpu.memory_space<vmem>>, %arg7: memref<1x128xf32, #tpu.memory_space<vmem>>, %arg8: memref<16x128xf32, #tpu.memory_space<vmem>>) attributes {dimension_semantics = [#tpu.dimension_semantics<parallel>], iteration_bounds = array<i64: 1>, scalar_prefetch = 0 : i64, scratch_operands = 0 : i64, tpu.core_type = #tpu.core_type<tc>, window_params = [{transform_indices = @transform_0, window_bounds = array<i64: 16, 1280>}, {pipeline_mode = #tpu.pipeline_mode<synchronous>, transform_indices = @transform_1, window_bounds = array<i64: 1280, 1024>}, {pipeline_mode = #tpu.pipeline_mode<synchronous>, transform_indices = @transform_2, window_bounds = array<i64: 3, 1024>}, {pipeline_mode = #tpu.pipeline_mode<synchronous>, transform_indices = @transform_3, window_bounds = array<i64: 1024, 512>}, {pipeline_mode = #tpu.pipeline_mode<synchronous>, transform_indices = @transform_4, window_bounds = array<i64: 3, 512>}, {pipeline_mode = #tpu.pipeline_mode<synchronous>, transform_indices = @transform_5, window_bounds = array<i64: 512, 128>}, {pipeline_mode = #tpu.pipeline_mode<synchronous>, transform_indices = @transform_6, window_bounds = array<i64: 1, 128>}, {transform_indices = @transform_7, window_bounds = array<i64: 16, 128>}]} {
    %c0 = arith.constant 0 : index
    %c0_0 = arith.constant 0 : index
    %0 = vector.load %arg1[%c0, %c0_0] : memref<16x1280xbf16, #tpu.memory_space<vmem>>, vector<16x1280xbf16>
    %c0_1 = arith.constant 0 : index
    %c0_2 = arith.constant 0 : index
    %1 = vector.load %arg2[%c0_1, %c0_2] : memref<1280x1024xbf16, #tpu.memory_space<vmem>>, vector<1280x1024xbf16>
    %cst = arith.constant dense<0.000000e+00> : vector<16x1024xf32>
    %2 = tpu.matmul %0, %1, %cst {dimension_numbers = #tpu.dot_dimension_numbers<[1], [0], [0], [1], [0, 0, 1, 1], [], []>} : vector<16x1280xbf16>, vector<1280x1024xbf16>, vector<16x1024xf32> -> vector<16x1024xf32>
    %c0_3 = arith.constant 0 : index
    %c0_4 = arith.constant 0 : index
    %3 = vector.load %arg3[%c0_3, %c0_4] : memref<3x1024xf32, #tpu.memory_space<vmem>>, vector<1x1024xf32>
    %4 = vector.broadcast %3 : vector<1x1024xf32> to vector<16x1024xf32>
    %5 = arith.addf %2, %4 : vector<16x1024xf32>
    %c1 = arith.constant 1 : index
    %c0_5 = arith.constant 0 : index
    %6 = vector.load %arg3[%c1, %c0_5] : memref<3x1024xf32, #tpu.memory_space<vmem>>, vector<1x1024xf32>
    %c2 = arith.constant 2 : index
    %c0_6 = arith.constant 0 : index
    %7 = vector.load %arg3[%c2, %c0_6] : memref<3x1024xf32, #tpu.memory_space<vmem>>, vector<1x1024xf32>
    %cst_7 = arith.constant dense<0.000000e+00> : vector<16xf32>
    %8 = vector.multi_reduction <add>, %5, %cst_7 [1] : vector<16x1024xf32> to vector<16xf32>
    %9 = vector.shape_cast %8 : vector<16xf32> to vector<16x1xf32>
    %cst_8 = arith.constant 1.024000e+03 : f32
    %10 = vector.broadcast %cst_8 : f32 to vector<16x1xf32>
    %11 = arith.divf %9, %10 : vector<16x1xf32>
    %12 = vector.broadcast %11 : vector<16x1xf32> to vector<16x1024xf32>
    %13 = arith.subf %5, %12 : vector<16x1024xf32>
    %14 = arith.mulf %13, %13 : vector<16x1024xf32>
    %cst_9 = arith.constant dense<0.000000e+00> : vector<16xf32>
    %15 = vector.multi_reduction <add>, %14, %cst_9 [1] : vector<16x1024xf32> to vector<16xf32>
    %16 = vector.shape_cast %15 : vector<16xf32> to vector<16x1xf32>
    %cst_10 = arith.constant 1.024000e+03 : f32
    %17 = vector.broadcast %cst_10 : f32 to vector<16x1xf32>
    %18 = arith.divf %16, %17 : vector<16x1xf32>
    %cst_11 = arith.constant 9.99999974E-6 : f32
    %19 = vector.broadcast %cst_11 : f32 to vector<16x1xf32>
    %20 = arith.addf %18, %19 : vector<16x1xf32>
    %21 = math.rsqrt %20 : vector<16x1xf32>
    %22 = vector.broadcast %21 : vector<16x1xf32> to vector<16x1024xf32>
    %23 = arith.mulf %13, %22 : vector<16x1024xf32>
    %24 = vector.broadcast %6 : vector<1x1024xf32> to vector<16x1024xf32>
    %25 = arith.mulf %23, %24 : vector<16x1024xf32>
    %26 = vector.broadcast %7 : vector<1x1024xf32> to vector<16x1024xf32>
    %27 = arith.addf %25, %26 : vector<16x1024xf32>
    %cst_12 = arith.constant 5.000000e-01 : f32
    %28 = vector.broadcast %cst_12 : f32 to vector<16x1024xf32>
    %29 = arith.mulf %28, %27 : vector<16x1024xf32>
    %30 = arith.mulf %27, %27 : vector<16x1024xf32>
    %31 = arith.mulf %30, %27 : vector<16x1024xf32>
    %cst_13 = arith.constant 4.471500e-02 : f32
    %32 = vector.broadcast %cst_13 : f32 to vector<16x1024xf32>
    %33 = arith.mulf %32, %31 : vector<16x1024xf32>
    %34 = arith.addf %27, %33 : vector<16x1024xf32>
    %cst_14 = arith.constant 0.797884583 : f32
    %35 = vector.broadcast %cst_14 : f32 to vector<16x1024xf32>
    %36 = arith.mulf %35, %34 : vector<16x1024xf32>
    %37 = math.tanh %36 : vector<16x1024xf32>
    %cst_15 = arith.constant 1.000000e+00 : f32
    %38 = vector.broadcast %cst_15 : f32 to vector<16x1024xf32>
    %39 = arith.addf %38, %37 : vector<16x1024xf32>
    %40 = arith.mulf %29, %39 : vector<16x1024xf32>
    %41 = arith.truncf %40 : vector<16x1024xf32> to vector<16x1024xbf16>
    %c0_16 = arith.constant 0 : index
    %c0_17 = arith.constant 0 : index
    %42 = vector.load %arg4[%c0_16, %c0_17] : memref<1024x512xbf16, #tpu.memory_space<vmem>>, vector<1024x512xbf16>
    %cst_18 = arith.constant dense<0.000000e+00> : vector<16x512xf32>
    %43 = tpu.matmul %41, %42, %cst_18 {dimension_numbers = #tpu.dot_dimension_numbers<[1], [0], [0], [1], [0, 0, 1, 1], [], []>} : vector<16x1024xbf16>, vector<1024x512xbf16>, vector<16x512xf32> -> vector<16x512xf32>
    %c0_19 = arith.constant 0 : index
    %c0_20 = arith.constant 0 : index
    %44 = vector.load %arg5[%c0_19, %c0_20] : memref<3x512xf32, #tpu.memory_space<vmem>>, vector<1x512xf32>
    %45 = vector.broadcast %44 : vector<1x512xf32> to vector<16x512xf32>
    %46 = arith.addf %43, %45 : vector<16x512xf32>
    %c1_21 = arith.constant 1 : index
    %c0_22 = arith.constant 0 : index
    %47 = vector.load %arg5[%c1_21, %c0_22] : memref<3x512xf32, #tpu.memory_space<vmem>>, vector<1x512xf32>
    %c2_23 = arith.constant 2 : index
    %c0_24 = arith.constant 0 : index
    %48 = vector.load %arg5[%c2_23, %c0_24] : memref<3x512xf32, #tpu.memory_space<vmem>>, vector<1x512xf32>
    %cst_25 = arith.constant dense<0.000000e+00> : vector<16xf32>
    %49 = vector.multi_reduction <add>, %46, %cst_25 [1] : vector<16x512xf32> to vector<16xf32>
    %50 = vector.shape_cast %49 : vector<16xf32> to vector<16x1xf32>
    %cst_26 = arith.constant 5.120000e+02 : f32
    %51 = vector.broadcast %cst_26 : f32 to vector<16x1xf32>
    %52 = arith.divf %50, %51 : vector<16x1xf32>
    %53 = vector.broadcast %52 : vector<16x1xf32> to vector<16x512xf32>
    %54 = arith.subf %46, %53 : vector<16x512xf32>
    %55 = arith.mulf %54, %54 : vector<16x512xf32>
    %cst_27 = arith.constant dense<0.000000e+00> : vector<16xf32>
    %56 = vector.multi_reduction <add>, %55, %cst_27 [1] : vector<16x512xf32> to vector<16xf32>
    %57 = vector.shape_cast %56 : vector<16xf32> to vector<16x1xf32>
    %cst_28 = arith.constant 5.120000e+02 : f32
    %58 = vector.broadcast %cst_28 : f32 to vector<16x1xf32>
    %59 = arith.divf %57, %58 : vector<16x1xf32>
    %cst_29 = arith.constant 9.99999974E-6 : f32
    %60 = vector.broadcast %cst_29 : f32 to vector<16x1xf32>
    %61 = arith.addf %59, %60 : vector<16x1xf32>
    %62 = math.rsqrt %61 : vector<16x1xf32>
    %63 = vector.broadcast %62 : vector<16x1xf32> to vector<16x512xf32>
    %64 = arith.mulf %54, %63 : vector<16x512xf32>
    %65 = vector.broadcast %47 : vector<1x512xf32> to vector<16x512xf32>
    %66 = arith.mulf %64, %65 : vector<16x512xf32>
    %67 = vector.broadcast %48 : vector<1x512xf32> to vector<16x512xf32>
    %68 = arith.addf %66, %67 : vector<16x512xf32>
    %cst_30 = arith.constant 5.000000e-01 : f32
    %69 = vector.broadcast %cst_30 : f32 to vector<16x512xf32>
    %70 = arith.mulf %69, %68 : vector<16x512xf32>
    %71 = arith.mulf %68, %68 : vector<16x512xf32>
    %72 = arith.mulf %71, %68 : vector<16x512xf32>
    %cst_31 = arith.constant 4.471500e-02 : f32
    %73 = vector.broadcast %cst_31 : f32 to vector<16x512xf32>
    %74 = arith.mulf %73, %72 : vector<16x512xf32>
    %75 = arith.addf %68, %74 : vector<16x512xf32>
    %cst_32 = arith.constant 0.797884583 : f32
    %76 = vector.broadcast %cst_32 : f32 to vector<16x512xf32>
    %77 = arith.mulf %76, %75 : vector<16x512xf32>
    %78 = math.tanh %77 : vector<16x512xf32>
    %cst_33 = arith.constant 1.000000e+00 : f32
    %79 = vector.broadcast %cst_33 : f32 to vector<16x512xf32>
    %80 = arith.addf %79, %78 : vector<16x512xf32>
    %81 = arith.mulf %70, %80 : vector<16x512xf32>
    %82 = arith.truncf %81 : vector<16x512xf32> to vector<16x512xbf16>
    %c0_34 = arith.constant 0 : index
    %c0_35 = arith.constant 0 : index
    %83 = vector.load %arg6[%c0_34, %c0_35] : memref<512x128xbf16, #tpu.memory_space<vmem>>, vector<512x128xbf16>
    %cst_36 = arith.constant dense<0.000000e+00> : vector<16x128xf32>
    %84 = tpu.matmul %82, %83, %cst_36 {dimension_numbers = #tpu.dot_dimension_numbers<[1], [0], [0], [1], [0, 0, 1, 1], [], []>} : vector<16x512xbf16>, vector<512x128xbf16>, vector<16x128xf32> -> vector<16x128xf32>
    %c0_37 = arith.constant 0 : index
    %c0_38 = arith.constant 0 : index
    %85 = vector.load %arg7[%c0_37, %c0_38] : memref<1x128xf32, #tpu.memory_space<vmem>>, vector<1x128xf32>
    %86 = vector.broadcast %85 : vector<1x128xf32> to vector<16x128xf32>
    %87 = arith.addf %84, %86 : vector<16x128xf32>
    %c0_39 = arith.constant 0 : index
    %c0_40 = arith.constant 0 : index
    %88 = vector.load %arg8[%c0_39, %c0_40] : memref<16x128xf32, #tpu.memory_space<vmem>>, vector<16x128xf32>
    tpu.vector_store %arg8[%c0_39, %c0_40], %87 {strides = array<i32>} : memref<16x128xf32, #tpu.memory_space<vmem>>, vector<16x128xf32>,
    return
  }
  func.func @transform_0(%arg0: i32) -> (i32, i32) {
    %c0_i32 = arith.constant 0 : i32
    %c0_i32_0 = arith.constant 0 : i32
    return %arg0, %c0_i32 : i32, i32
  }
  func.func @transform_1(%arg0: i32) -> (i32, i32) {
    %c0_i32 = arith.constant 0 : i32
    %c0_i32_0 = arith.constant 0 : i32
    %c0_i32_1 = arith.constant 0 : i32
    return %c0_i32, %c0_i32_0 : i32, i32
  }
  func.func @transform_2(%arg0: i32) -> (i32, i32) {
    %c0_i32 = arith.constant 0 : i32
    %c0_i32_0 = arith.constant 0 : i32
    %c0_i32_1 = arith.constant 0 : i32
    return %c0_i32, %c0_i32_0 : i32, i32
  }
  func.func @transform_3(%arg0: i32) -> (i32, i32) {
    %c0_i32 = arith.constant 0 : i32
    %c0_i32_0 = arith.constant 0 : i32
    %c0_i32_1 = arith.constant 0 : i32
    return %c0_i32, %c0_i32_0 : i32, i32
  }
  func.func @transform_4(%arg0: i32) -> (i32, i32) {
    %c0_i32 = arith.constant 0 : i32
    %c0_i32_0 = arith.constant 0 : i32
    %c0_i32_1 = arith.constant 0 : i32
    return %c0_i32, %c0_i32_0 : i32, i32
  }
  func.func @transform_5(%arg0: i32) -> (i32, i32) {
    %c0_i32 = arith.constant 0 : i32
    %c0_i32_0 = arith.constant 0 : i32
    %c0_i32_1 = arith.constant 0 : i32
    return %c0_i32, %c0_i32_0 : i32, i32
  }
  func.func @transform_6(%arg0: i32) -> (i32, i32) {
    %c0_i32 = arith.constant 0 : i32
    %c0_i32_0 = arith.constant 0 : i32
    %c0_i32_1 = arith.constant 0 : i32
    return %c0_i32, %c0_i32_0 : i32, i32
  }
  func.func @transform_7(%arg0: i32) -> (i32, i32) {
    %c0_i32 = arith.constant 0 : i32
    %c0_i32_0 = arith.constant 0 : i32
    return %arg0, %c0_i32 : i32, i32
  }
}

</mosaic_0001>

<bundles_post_ra>
// kernel: tpu_custom_call.1
= control target key start
LH: loop header
LB: loop body
LE: loop exit
PB: predicated region body
PF: predicated region fallthrough
CT: control target
= control target key end

     0   :  { %12 = vsyncpa [#allocation3], 0  ;;  %s10153_s0 = inlined_call_operand.hbm [shape: bf16[16,1280], index: 0, kind: input, shape index: {}]   ;;  %s10154_s1 = inlined_call_operand.hbm [shape: bf16[1280,1024], index: 1, kind: input, shape index: {}]   ;;  %s10155_s2 = inlined_call_operand.hbm [shape: f32[3,1024], index: 2, kind: input, shape index: {}]   ;;  %s10156_s3 = inlined_call_operand.hbm [shape: bf16[1024,512], index: 3, kind: input, shape index: {}]   ;;  %s10157_s4 = inlined_call_operand.hbm [shape: f32[3,512], index: 4, kind: input, shape index: {}]   ;;  %s10158_s5 = inlined_call_operand.hbm [shape: bf16[512,128], index: 5, kind: input, shape index: {}]   ;;  %s10159_s6 = inlined_call_operand.hbm [shape: f32[1,128], index: 6, kind: input, shape index: {}]   ;;  %s10160_s7 = inlined_call_operand.hbm [shape: f32[16,128], index: 7, kind: output, shape index: {}]  }
   0x1   :  { %13 = vsyncpa [#allocation6], 0 }
   0x2   :  { %14 = vsyncpa [#allocation9], 0 }
   0x3   :  { %15 = vsyncpa [#allocation12], 0 }
   0x4   :  { %16 = vsyncpa [#allocation4], 0  ;;  %s9538_s24 = smov [#allocation5]   ;;  %s9352_s28 = scalar_lea.hbm %s10154_s1, 81920 }
   0x5   :  { %s34_s25 = sshll.u32 %s9538_s24, 4  ;;  %p9353_p0 = scmp.ne.s32.totalorder %s10154_s1, %s9352_s28  ;;  %s35_s25 = int_to_ptr.vmem [resolvable:$true] %s34_s25 }
   0x6   :  { %p9356_p1 = scmp.lt.u32.totalorder %s9352_s28, %s10154_s1 }
   0x8   :  { %p9358_p2 = pnand %p9356_p1, %p9353_p0 }
   0xa   :  { %9361 = shalt.err (!%p9358_p2)
}
   0xb   :  { %s9362_s10 = scalar_lea.vmem %s35_s25, 81920  ;;  %p9367_p4 = scmp.lt.s32.totalorder %s35_s25, %s35_s25 }
   0xc   :  { %p9363_p3 = scmp.ne.s32.totalorder %s35_s25, %s9362_s10  ;;  %p9368_p5 = scmp.lt.s32.totalorder %s9362_s10, %s9362_s10 }
   0xe   :  { %p9369_p6 = por %p9368_p5, %p9367_p4 }
  0x10   :  { %p9370_p7 = pnand %p9369_p6, %p9363_p3 }
  0x12   :  { %9373 = shalt.err (!%p9370_p7)
}
  0x13   :  { %s9539_s11 = smov 512   ;;  %s9540_s12 = smov 32  }
  0x14   :  { %40 = dma.hbm_to_vmem [thread:$0]  %s10154_s1, 81920, %s35_s25, [#allocation6], %s9539_s11, %s9539_s11, %s9540_s12  }
  0x15   :  { %s9541_s15 = smov [#allocation8]   ;;  %s9374_s19 = scalar_lea.hbm %s10156_s3, 32768 }
  0x16   :  { %s56_s16 = sshll.u32 %s9541_s15, 4  ;;  %p9375_p8 = scmp.ne.s32.totalorder %s10156_s3, %s9374_s19  ;;  %s57_s16 = int_to_ptr.vmem [resolvable:$true] %s56_s16 }
  0x17   :  { %p9378_p9 = scmp.lt.u32.totalorder %s9374_s19, %s10156_s3 }
  0x19   :  { %p9380_p10 = pnand %p9378_p9, %p9375_p8 }
  0x1b   :  { %9383 = shalt.err (!%p9380_p10)
}
  0x1c   :  { %s9384_s24 = scalar_lea.vmem %s57_s16, 32768  ;;  %p9389_p12 = scmp.lt.s32.totalorder %s57_s16, %s57_s16 }
  0x1d   :  { %p9385_p11 = scmp.ne.s32.totalorder %s57_s16, %s9384_s24  ;;  %p9390_p13 = scmp.lt.s32.totalorder %s9384_s24, %s9384_s24 }
  0x1f   :  { %p9391_p0 = por %p9390_p13, %p9389_p12 }
  0x21   :  { %p9392_p1 = pnand %p9391_p0, %p9385_p11 }
  0x23   :  { %9395 = shalt.err (!%p9392_p1)
}
  0x24   :  { %s9542_s1 = smov 256   ;;  %s9543_s25 = smov 16  }
  0x25   :  { %62 = dma.hbm_to_vmem [thread:$0]  %s10156_s3, 32768, %s57_s16, [#allocation9], %s9542_s1, %s9542_s1, %s9543_s25  }
  0x26   :  { %s9544_s28 = smov [#allocation11]   ;;  %s9396_s9 = scalar_lea.hbm %s10158_s5, 4096 }
  0x27   :  { %s78_s29 = sshll.u32 %s9544_s28, 4  ;;  %p9397_p2 = scmp.ne.s32.totalorder %s10158_s5, %s9396_s9  ;;  %s79_s29 = int_to_ptr.vmem [resolvable:$true] %s78_s29 }
  0x28   :  { %p9400_p3 = scmp.lt.u32.totalorder %s9396_s9, %s10158_s5 }
  0x2a   :  { %p9402_p4 = pnand %p9400_p3, %p9397_p2 }
  0x2c   :  { %9405 = shalt.err (!%p9402_p4)
}
  0x2d   :  { %s9406_s14 = scalar_lea.vmem %s79_s29, 4096  ;;  %p9411_p6 = scmp.lt.s32.totalorder %s79_s29, %s79_s29 }
  0x2e   :  { %p9407_p5 = scmp.ne.s32.totalorder %s79_s29, %s9406_s14  ;;  %p9412_p7 = scmp.lt.s32.totalorder %s9406_s14, %s9406_s14 }
  0x30   :  { %p9413_p8 = por %p9412_p7, %p9411_p6 }
  0x32   :  { %p9414_p9 = pnand %p9413_p8, %p9407_p5 }
  0x34   :  { %9417 = shalt.err (!%p9414_p9)
}
  0x35   :  { %s9545_s3 = smov 64   ;;  %s9546_s15 = smov 4  }
  0x36   :  { %84 = dma.hbm_to_vmem [thread:$0]  %s10158_s5, 4096, %s79_s29, [#allocation12], %s9545_s3, %s9545_s3, %s9546_s15  }
  0x37   :  { %s9547_s18 = smov [#allocation2]   ;;  %s9418_s22 = scalar_lea.hbm %s10153_s0, 1280 }
  0x38   :  { %s22_s19 = sshll.u32 %s9547_s18, 4  ;;  %p9419_p10 = scmp.ne.s32.totalorder %s10153_s0, %s9418_s22  ;;  %s23_s19 = int_to_ptr.vmem [resolvable:$true] %s22_s19 }
  0x39   :  { %p9422_p11 = scmp.lt.u32.totalorder %s9418_s22, %s10153_s0 }
  0x3b   :  { %p9424_p12 = pnand %p9422_p11, %p9419_p10 }
  0x3d   :  { %9427 = shalt.err (!%p9424_p12)
}
  0x3e   :  { %s9428_s26 = scalar_lea.vmem %s23_s19, 1280  ;;  %p9433_p0 = scmp.lt.s32.totalorder %s23_s19, %s23_s19 }
  0x3f   :  { %p9429_p13 = scmp.ne.s32.totalorder %s23_s19, %s9428_s26  ;;  %p9434_p1 = scmp.lt.s32.totalorder %s9428_s26, %s9428_s26 }
  0x41   :  { %p9435_p2 = por %p9434_p1, %p9433_p0 }
  0x43   :  { %p9436_p3 = pnand %p9435_p2, %p9429_p13 }
  0x45   :  { %9439 = shalt.err (!%p9436_p3)
}
  0x46   :  { %s9548_s5 = smov 640   ;;  %s9549_s27 = smov 40  }
  0x47   :  { %28 = dma.hbm_to_vmem [thread:$0]  %s10153_s0, 1280, %s23_s19, [#allocation3], %s9548_s5, %s9548_s5, %s9549_s27  }
  0x48   :  { %s9550_s30 = smov [#allocation7]   ;;  %s9551_s9 = smov [#allocation10]  }
  0x49   :  { %s47_s8 = sshll.u32 %s9550_s30, 4  ;;  %s69_s10 = sshll.u32 %s9551_s9, 4  ;;  %s48_s8 = int_to_ptr.vmem [resolvable:$true] %s47_s8  ;;  %s70_s10 = int_to_ptr.vmem [resolvable:$true] %s69_s10 }
  0x4a   :  { %s9440_s13 = scalar_lea.hbm %s10155_s2, 512 }
  0x4b   :  { %p9441_p4 = scmp.ne.s32.totalorder %s10155_s2, %s9440_s13  ;;  %p9444_p5 = scmp.lt.u32.totalorder %s9440_s13, %s10155_s2 }
  0x4d   :  { %p9446_p6 = pnand %p9444_p5, %p9441_p4 }
  0x4f   :  { %9449 = shalt.err (!%p9446_p6)
}
  0x50   :  { %s9450_s0 = scalar_lea.vmem %s48_s8, 512  ;;  %p9455_p8 = scmp.lt.s32.totalorder %s48_s8, %s48_s8 }
  0x51   :  { %p9451_p7 = scmp.ne.s32.totalorder %s48_s8, %s9450_s0  ;;  %p9456_p9 = scmp.lt.s32.totalorder %s9450_s0, %s9450_s0 }
  0x53   :  { %p9457_p10 = por %p9456_p9, %p9455_p8 }
  0x55   :  { %p9458_p11 = pnand %p9457_p10, %p9451_p7 }
  0x57   :  { %9461 = shalt.err (!%p9458_p11)
}
  0x58   :  { %50 = dma.hbm_to_vmem [thread:$0]  %s10155_s2, 512, %s48_s8, [#allocation6]  }
  0x59   :  { %s9462_s21 = scalar_lea.hbm %s10157_s4, 256 }
  0x5a   :  { %p9463_p12 = scmp.ne.s32.totalorder %s10157_s4, %s9462_s21  ;;  %p9466_p13 = scmp.lt.u32.totalorder %s9462_s21, %s10157_s4 }
  0x5c   :  { %p9468_p0 = pnand %p9466_p13, %p9463_p12 }
  0x5e   :  { %9471 = shalt.err (!%p9468_p0)
}
  0x5f   :  { %s9472_s25 = scalar_lea.vmem %s70_s10, 256  ;;  %p9477_p2 = scmp.lt.s32.totalorder %s70_s10, %s70_s10 }
  0x60   :  { %p9473_p1 = scmp.ne.s32.totalorder %s70_s10, %s9472_s25  ;;  %p9478_p3 = scmp.lt.s32.totalorder %s9472_s25, %s9472_s25 }
  0x62   :  { %p9479_p4 = por %p9478_p3, %p9477_p2 }
  0x64   :  { %p9480_p5 = pnand %p9479_p4, %p9473_p1 }
  0x66   :  { %9483 = shalt.err (!%p9480_p5)
}
  0x67   :  { %72 = dma.hbm_to_vmem [thread:$0]  %s10157_s4, 256, %s70_s10, [#allocation9]  }
  0x68   :  { %s9552_s5 = smov [#allocation13]   ;;  %s9484_s30 = scalar_lea.hbm %s10159_s6, 16 }
  0x69   :  { %s91_s27 = sshll.u32 %s9552_s5, 4  ;;  %p9485_p6 = scmp.ne.s32.totalorder %s10159_s6, %s9484_s30  ;;  %s92_s27 = int_to_ptr.vmem [resolvable:$true] %s91_s27 }
  0x6a   :  { %p9488_p7 = scmp.lt.u32.totalorder %s9484_s30, %s10159_s6 }
  0x6c   :  { %p9490_p8 = pnand %p9488_p7, %p9485_p6 }
  0x6e   :  { %9493 = shalt.err (!%p9490_p8)
}
  0x6f   :  { %s9494_s13 = scalar_lea.vmem %s92_s27, 16  ;;  %s9498_s4 = scalar_lea.vmem %s92_s27, 32 }
  0x70   :  { %p9495_p9 = scmp.ne.s32.totalorder %s92_s27, %s9494_s13  ;;  %p9499_p10 = scmp.lt.s32.totalorder %s92_s27, %s92_s27 }
  0x71   :  { %p9500_p11 = scmp.lt.s32.totalorder %s9498_s4, %s9494_s13 }
  0x73   :  { %p9501_p12 = por %p9500_p11, %p9499_p10 }
  0x75   :  { %p9502_p13 = pnand %p9501_p12, %p9495_p9 }
  0x77   :  { %9505 = shalt.err (!%p9502_p13)
}
  0x78   :  { %94 = dma.hbm_to_vmem [thread:$0]  %s10159_s6, 16, %s92_s27, [#allocation12]  }
  0x79   :  { %9528 = dma.done.wait [#allocation3], 1280  }
  0x7a   :  { %9529 = vsyncadd [#allocation3], 4294966016 }
  0x7b   :  { %9530 = dma.done.wait [#allocation6], 82432  }
  0x7c   :  { %9531 = vsyncadd [#allocation6], 4294884864 }
  0x7d   :  { %9532 = dma.done.wait [#allocation9], 33024  }
  0x7e   :  { %9533 = vsyncadd [#allocation9], 4294934272 }
  0x7f   :  { %9534 = dma.done.wait [#allocation12], 4112  }
  0x80   :  { %9535 = vsyncadd [#allocation12], 4294963184  ;;  %v127_v0 = vld [vmem:[#allocation5] sm:$0xff]  ;;  %v128_v2 = vld [vmem:[#allocation5 + $0x8] sm:$0xff]  ;;  %s9553_s6 = smov [#allocation14]  }
  0x81   :  { %v131_v1 = vld [vmem:[#allocation5 + $0x20] sm:$0xff]  ;;  %v132_v4 = vld [vmem:[#allocation5 + $0x28] sm:$0xff]  ;;  %v8855_v56 = vld [vmem:[#allocation2 + $0x4] ss:$40 sps:$4 sm:$0xff]   ;;  %s7727_s3 = sshll.u32 %s9553_s6, 4  ;;  %s7728_s3 = int_to_ptr.vmem [resolvable:$true] %s7727_s3 }
  0x82   :  { %v7753_v3 = vcombine.high %v127_v0, %v131_v1  ;;  %v7752_v5 = vcombine.low %v127_v0, %v131_v1  ;;  %v135_v6 = vld [vmem:[#allocation5 + $0x40] sm:$0xff]  ;;  %v7755_v8 = vcombine.high %v128_v2, %v132_v4  ;;  %v7754_v9 = vcombine.low %v128_v2, %v132_v4  ;;  %v136_v11 = vld [vmem:[#allocation5 + $0x48] sm:$0xff]  ;;  %4091 = vmatprep.mubr.bf16.mxu0 %v8855_v56  ;;  %s9506_s15 = scalar_lea.vmem %s7728_s3, 256  ;;  %p9511_p1 = scmp.lt.s32.totalorder %s7728_s3, %s7728_s3 }
  0x83   :  { %v139_v7 = vld [vmem:[#allocation5 + $0x60] sm:$0xff]  ;;  %v140_v12 = vld [vmem:[#allocation5 + $0x68] sm:$0xff]  ;;  %4306 = vmatprep.mubr.bf16.mxu1 %v8855_v56  ;;  %p9507_p0 = scmp.ne.s32.totalorder %s7728_s3, %s9506_s15  ;;  %p9512_p2 = scmp.lt.s32.totalorder %s9506_s15, %s9506_s15 }
  0x84   :  { %v7761_v10 = vcombine.high %v135_v6, %v139_v7  ;;  %v143_v13 = vld [vmem:[#allocation5 + $0x80] sm:$0xff]  ;;  %4059 = vmatprep.subr.bf16.mxu0 %v7753_v3  ;;  %v7763_v14 = vcombine.high %v136_v11, %v140_v12  ;;  %v144_v16 = vld [vmem:[#allocation5 + $0x88] sm:$0xff]  ;;  %4274 = vmatprep.subr.bf16.mxu1 %v7755_v8  ;;  %v7760_v18 = vcombine.low %v135_v6, %v139_v7 }
  0x85   :  { %v147_v15 = vld [vmem:[#allocation5 + $0xa0] sm:$0xff]  ;;  %v148_v17 = vld [vmem:[#allocation5 + $0xa8] sm:$0xff]  ;;  %4060 = vmatpush1.bf16.msra.mxu0 %v7752_v5  ;;  %4275 = vmatpush1.bf16.msra.mxu1 %v7754_v9  ;;  %v7762_v19 = vcombine.low %v136_v11, %v140_v12  ;;  %p9513_p3 = por %p9512_p2, %p9511_p1 }
  0x86   :  { %4061 = vmatprep.subr.bf16.mxu0 %v7761_v10  ;;  %v7769_v20 = vcombine.high %v143_v13, %v147_v15  ;;  %4276 = vmatprep.subr.bf16.mxu1 %v7763_v14  ;;  %v7771_v21 = vcombine.high %v144_v16, %v148_v17  ;;  %v151_v22 = vld [vmem:[#allocation5 + $0xc0] sm:$0xff]  ;;  %v152_v24 = vld [vmem:[#allocation5 + $0xc8] sm:$0xff]  ;;  %v7768_v26 = vcombine.low %v143_v13, %v147_v15 }
  0x87   :  { %v155_v23 = vld [vmem:[#allocation5 + $0xe0] sm:$0xff]  ;;  %v156_v25 = vld [vmem:[#allocation5 + $0xe8] sm:$0xff]  ;;  %v7770_v27 = vcombine.low %v144_v16, %v148_v17  ;;  %p9514_p4 = pnand %p9513_p3, %p9507_p0 }
  0x88   :  { %v7777_v28 = vcombine.high %v151_v22, %v155_v23  ;;  %v7779_v29 = vcombine.high %v152_v24, %v156_v25  ;;  %v159_v30 = vld [vmem:[#allocation5 + $0x100] sm:$0xff]  ;;  %v160_v32 = vld [vmem:[#allocation5 + $0x108] sm:$0xff]  ;;  %v7776_v34 = vcombine.low %v151_v22, %v155_v23  ;;  %v7778_v35 = vcombine.low %v152_v24, %v156_v25 }
  0x89   :  { %4062 = vmatpush1.bf16.msra.mxu0 %v7760_v18  ;;  %4277 = vmatpush1.bf16.msra.mxu1 %v7762_v19  ;;  %v163_v31 = vld [vmem:[#allocation5 + $0x120] sm:$0xff]  ;;  %v164_v33 = vld [vmem:[#allocation5 + $0x128] sm:$0xff] }
  0x8a   :  { %4063 = vmatprep.subr.bf16.mxu0 %v7769_v20  ;;  %4278 = vmatprep.subr.bf16.mxu1 %v7771_v21  ;;  %v7785_v36 = vcombine.high %v159_v30, %v163_v31  ;;  %v7787_v37 = vcombine.high %v160_v32, %v164_v33  ;;  %v167_v38 = vld [vmem:[#allocation5 + $0x140] sm:$0xff]  ;;  %v168_v40 = vld [vmem:[#allocation5 + $0x148] sm:$0xff]  ;;  %v7784_v42 = vcombine.low %v159_v30, %v163_v31 }
  0x8b   :  { %v171_v39 = vld [vmem:[#allocation5 + $0x160] sm:$0xff]  ;;  %v172_v41 = vld [vmem:[#allocation5 + $0x168] sm:$0xff]  ;;  %v7786_v43 = vcombine.low %v160_v32, %v164_v33 }
  0x8c   :  { %v7793_v44 = vcombine.high %v167_v38, %v171_v39  ;;  %v7795_v45 = vcombine.high %v168_v40, %v172_v41  ;;  %v175_v46 = vld [vmem:[#allocation5 + $0x180] sm:$0xff]  ;;  %v176_v48 = vld [vmem:[#allocation5 + $0x188] sm:$0xff]  ;;  %v7792_v50 = vcombine.low %v167_v38, %v171_v39  ;;  %v7794_v51 = vcombine.low %v168_v40, %v172_v41 }
  0x8d   :  { %4064 = vmatpush1.bf16.msra.mxu0 %v7768_v26  ;;  %4279 = vmatpush1.bf16.msra.mxu1 %v7770_v27  ;;  %v179_v47 = vld [vmem:[#allocation5 + $0x1a0] sm:$0xff]  ;;  %v180_v49 = vld [vmem:[#allocation5 + $0x1a8] sm:$0xff] }
  0x8e   :  { %4065 = vmatprep.subr.bf16.mxu0 %v7777_v28  ;;  %4280 = vmatprep.subr.bf16.mxu1 %v7779_v29  ;;  %v7801_v52 = vcombine.high %v175_v46, %v179_v47  ;;  %v7803_v53 = vcombine.high %v176_v48, %v180_v49  ;;  %v183_v54 = vld [vmem:[#allocation5 + $0x1c0] sm:$0xff]  ;;  %v184_v57 = vld [vmem:[#allocation5 + $0x1c8] sm:$0xff]  ;;  %v7800_v59 = vcombine.low %v175_v46, %v179_v47 }
  0x8f   :  { %v187_v55 = vld [vmem:[#allocation5 + $0x1e0] sm:$0xff]  ;;  %v188_v58 = vld [vmem:[#allocation5 + $0x1e8] sm:$0xff]  ;;  %v7802_v60 = vcombine.low %v176_v48, %v180_v49 }
  0x90   :  { %v7809_v61 = vcombine.high %v183_v54, %v187_v55  ;;  %v7811_v62 = vcombine.high %v184_v57, %v188_v58  ;;  %v191_v63 = vld [vmem:[#allocation5 + $0x200] sm:$0xff]  ;;  %v192_v1 = vld [vmem:[#allocation5 + $0x208] sm:$0xff]  ;;  %v7808_v3 = vcombine.low %v183_v54, %v187_v55  ;;  %v7810_v4 = vcombine.low %v184_v57, %v188_v58 }
  0x91   :  { %4066 = vmatpush1.bf16.msra.mxu0 %v7776_v34  ;;  %4281 = vmatpush1.bf16.msra.mxu1 %v7778_v35  ;;  %v195_v0 = vld [vmem:[#allocation5 + $0x220] sm:$0xff]  ;;  %v196_v2 = vld [vmem:[#allocation5 + $0x228] sm:$0xff] }
  0x92   :  { %4067 = vmatprep.subr.bf16.mxu0 %v7785_v36  ;;  %4282 = vmatprep.subr.bf16.mxu1 %v7787_v37  ;;  %v7817_v5 = vcombine.high %v191_v63, %v195_v0  ;;  %v7819_v6 = vcombine.high %v192_v1, %v196_v2  ;;  %v199_v7 = vld [vmem:[#allocation5 + $0x240] sm:$0xff]  ;;  %v200_v9 = vld [vmem:[#allocation5 + $0x248] sm:$0xff]  ;;  %v7816_v11 = vcombine.low %v191_v63, %v195_v0 }
  0x93   :  { %v203_v8 = vld [vmem:[#allocation5 + $0x260] sm:$0xff]  ;;  %v204_v10 = vld [vmem:[#allocation5 + $0x268] sm:$0xff]  ;;  %v7818_v12 = vcombine.low %v192_v1, %v196_v2 }
  0x94   :  { %v7825_v13 = vcombine.high %v199_v7, %v203_v8  ;;  %v7827_v14 = vcombine.high %v200_v9, %v204_v10  ;;  %v207_v15 = vld [vmem:[#allocation5 + $0x280] sm:$0xff]  ;;  %v208_v17 = vld [vmem:[#allocation5 + $0x288] sm:$0xff]  ;;  %v7824_v19 = vcombine.low %v199_v7, %v203_v8  ;;  %v7826_v20 = vcombine.low %v200_v9, %v204_v10  ;;  %v8857_v9 = vld [vmem:[#allocation2] ss:$40 sps:$4 sm:$0xff]  }
  0x95   :  { %4068 = vmatpush1.bf16.msra.mxu0 %v7784_v42  ;;  %4283 = vmatpush1.bf16.msra.mxu1 %v7786_v43  ;;  %v211_v16 = vld [vmem:[#allocation5 + $0x2a0] sm:$0xff]  ;;  %v212_v18 = vld [vmem:[#allocation5 + $0x2a8] sm:$0xff] }
  0x96   :  { %4069 = vmatprep.subr.bf16.mxu0 %v7793_v44  ;;  %4284 = vmatprep.subr.bf16.mxu1 %v7795_v45  ;;  %v7833_v21 = vcombine.high %v207_v15, %v211_v16  ;;  %v7835_v22 = vcombine.high %v208_v17, %v212_v18  ;;  %v215_v23 = vld [vmem:[#allocation5 + $0x2c0] sm:$0xff]  ;;  %v216_v25 = vld [vmem:[#allocation5 + $0x2c8] sm:$0xff]  ;;  %v7832_v27 = vcombine.low %v207_v15, %v211_v16 }
  0x97   :  { %v219_v24 = vld [vmem:[#allocation5 + $0x2e0] sm:$0xff]  ;;  %v220_v26 = vld [vmem:[#allocation5 + $0x2e8] sm:$0xff]  ;;  %v7834_v28 = vcombine.low %v208_v17, %v212_v18 }
  0x98   :  { %v7841_v29 = vcombine.high %v215_v23, %v219_v24  ;;  %v7843_v30 = vcombine.high %v216_v25, %v220_v26  ;;  %v223_v31 = vld [vmem:[#allocation5 + $0x300] sm:$0xff]  ;;  %v224_v33 = vld [vmem:[#allocation5 + $0x308] sm:$0xff]  ;;  %v7840_v35 = vcombine.low %v215_v23, %v219_v24  ;;  %v7842_v36 = vcombine.low %v216_v25, %v220_v26 }
  0x99   :  { %4070 = vmatpush1.bf16.msra.mxu0 %v7792_v50  ;;  %4285 = vmatpush1.bf16.msra.mxu1 %v7794_v51  ;;  %v227_v32 = vld [vmem:[#allocation5 + $0x320] sm:$0xff]  ;;  %v228_v34 = vld [vmem:[#allocation5 + $0x328] sm:$0xff] }
  0x9a   :  { %4071 = vmatprep.subr.bf16.mxu0 %v7801_v52  ;;  %4286 = vmatprep.subr.bf16.mxu1 %v7803_v53  ;;  %v7849_v37 = vcombine.high %v223_v31, %v227_v32  ;;  %v7851_v38 = vcombine.high %v224_v33, %v228_v34  ;;  %v231_v39 = vld [vmem:[#allocation5 + $0x340] sm:$0xff]  ;;  %v232_v41 = vld [vmem:[#allocation5 + $0x348] sm:$0xff]  ;;  %v7848_v43 = vcombine.low %v223_v31, %v227_v32 }
  0x9b   :  { %v235_v40 = vld [vmem:[#allocation5 + $0x360] sm:$0xff]  ;;  %v236_v42 = vld [vmem:[#allocation5 + $0x368] sm:$0xff]  ;;  %v7850_v44 = vcombine.low %v224_v33, %v228_v34 }
  0x9c   :  { %v7857_v45 = vcombine.high %v231_v39, %v235_v40  ;;  %v7859_v46 = vcombine.high %v232_v41, %v236_v42  ;;  %v239_v47 = vld [vmem:[#allocation5 + $0x380] sm:$0xff]  ;;  %v240_v49 = vld [vmem:[#allocation5 + $0x388] sm:$0xff]  ;;  %v7856_v51 = vcombine.low %v231_v39, %v235_v40  ;;  %v7858_v52 = vcombine.low %v232_v41, %v236_v42 }
  0x9d   :  { %4072 = vmatpush1.bf16.msra.mxu0 %v7800_v59  ;;  %4287 = vmatpush1.bf16.msra.mxu1 %v7802_v60  ;;  %v243_v48 = vld [vmem:[#allocation5 + $0x3a0] sm:$0xff]  ;;  %v244_v50 = vld [vmem:[#allocation5 + $0x3a8] sm:$0xff] }
  0x9e   :  { %4073 = vmatprep.subr.bf16.mxu0 %v7809_v61  ;;  %4288 = vmatprep.subr.bf16.mxu1 %v7811_v62  ;;  %v7865_v53 = vcombine.high %v239_v47, %v243_v48  ;;  %v7867_v54 = vcombine.high %v240_v49, %v244_v50  ;;  %v247_v55 = vld [vmem:[#allocation5 + $0x3c0] sm:$0xff]  ;;  %v248_v57 = vld [vmem:[#allocation5 + $0x3c8] sm:$0xff]  ;;  %v7864_v59 = vcombine.low %v239_v47, %v243_v48 }
  0x9f   :  { %v251_v56 = vld [vmem:[#allocation5 + $0x3e0] sm:$0xff]  ;;  %v252_v58 = vld [vmem:[#allocation5 + $0x3e8] sm:$0xff]  ;;  %v7866_v60 = vcombine.low %v240_v49, %v244_v50 }
  0xa0   :  { %v7873_v61 = vcombine.high %v247_v55, %v251_v56  ;;  %v7875_v62 = vcombine.high %v248_v57, %v252_v58  ;;  %v255_v63 = vld [vmem:[#allocation5 + $0x400] sm:$0xff]  ;;  %v256_v1 = vld [vmem:[#allocation5 + $0x408] sm:$0xff] }
  0xa1   :  { %4074 = vmatpush1.bf16.msra.mxu0 %v7808_v3  ;;  %4289 = vmatpush1.bf16.msra.mxu1 %v7810_v4  ;;  %v259_v0 = vld [vmem:[#allocation5 + $0x420] sm:$0xff]  ;;  %v260_v2 = vld [vmem:[#allocation5 + $0x428] sm:$0xff]  ;;  %v7872_v3 = vcombine.low %v247_v55, %v251_v56  ;;  %v7874_v4 = vcombine.low %v248_v57, %v252_v58 }
  0xa2   :  { %4075 = vmatprep.subr.bf16.mxu0 %v7817_v5  ;;  %4290 = vmatprep.subr.bf16.mxu1 %v7819_v6  ;;  %v7881_v5 = vcombine.high %v255_v63, %v259_v0  ;;  %v7883_v6 = vcombine.high %v256_v1, %v260_v2  ;;  %v263_v7 = vld [vmem:[#allocation5 + $0x440] sm:$0xff]  ;;  %v264_v10 = vld [vmem:[#allocation5 + $0x448] sm:$0xff] }
  0xa3   :  { %v267_v8 = vld [vmem:[#allocation5 + $0x460] sm:$0xff]  ;;  %v288_v34 = vld [vmem:[#allocation5 + $0x508] sm:$0xff] }
  0xa4   :  { %v271_v15 = vld [vmem:[#allocation5 + $0x480] sm:$0xff]  ;;  %v296_v42 = vld [vmem:[#allocation5 + $0x548] sm:$0xff] }
  0xa5   :  { %4076 = vmatpush1.bf16.msra.mxu0 %v7816_v11  ;;  %4291 = vmatpush1.bf16.msra.mxu1 %v7818_v12  ;;  %v268_v11 = vld [vmem:[#allocation5 + $0x468] sm:$0xff]  ;;  %v7880_v12 = vcombine.low %v255_v63, %v259_v0  ;;  %v275_v17 = vld [vmem:[#allocation5 + $0x4a0] sm:$0xff] }
  0xa6   :  { %4077 = vmatprep.subr.bf16.mxu0 %v7825_v13  ;;  %4292 = vmatprep.subr.bf16.mxu1 %v7827_v14  ;;  %v7882_v13 = vcombine.low %v256_v1, %v260_v2  ;;  %v7889_v14 = vcombine.high %v263_v7, %v267_v8  ;;  %v7891_v16 = vcombine.high %v264_v10, %v268_v11  ;;  %v8858_v18 = vld [vmem:[#allocation2 + $0xc] ss:$40 sps:$4 sm:$0xff]   ;;  %v304_v50 = vld [vmem:[#allocation5 + $0x588] sm:$0xff] }
  0xa7   :  { %v7897_v23 = vcombine.high %v271_v15, %v275_v17  ;;  %v279_v24 = vld [vmem:[#allocation5 + $0x4c0] sm:$0xff]  ;;  %v312_v58 = vld [vmem:[#allocation5 + $0x5c8] sm:$0xff] }
  0xa8   :  { %v283_v25 = vld [vmem:[#allocation5 + $0x4e0] sm:$0xff]  ;;  %v320_v2 = vld [vmem:[#allocation5 + $0x608] sm:$0xff] }
  0xa9   :  { %4078 = vmatpush1.bf16.msra.mxu0 %v7824_v19  ;;  %4293 = vmatpush1.bf16.msra.mxu1 %v7826_v20  ;;  %v272_v19 = vld [vmem:[#allocation5 + $0x488] sm:$0xff]  ;;  %v7905_v31 = vcombine.high %v279_v24, %v283_v25  ;;  %v287_v32 = vld [vmem:[#allocation5 + $0x500] sm:$0xff] }
  0xaa   :  { %4079 = vmatprep.subr.bf16.mxu0 %v7833_v21  ;;  %4294 = vmatprep.subr.bf16.mxu1 %v7835_v22  ;;  %v276_v20 = vld [vmem:[#allocation5 + $0x4a8] sm:$0xff]  ;;  %v7888_v21 = vcombine.low %v263_v7, %v267_v8  ;;  %v7890_v22 = vcombine.low %v264_v10, %v268_v11  ;;  %v291_v33 = vld [vmem:[#allocation5 + $0x520] sm:$0xff] }
  0xab   :  { %v7899_v26 = vcombine.high %v272_v19, %v276_v20  ;;  %v7913_v39 = vcombine.high %v287_v32, %v291_v33  ;;  %v295_v40 = vld [vmem:[#allocation5 + $0x540] sm:$0xff]  ;;  %v328_v10 = vld [vmem:[#allocation5 + $0x648] sm:$0xff] }
  0xac   :  { %v299_v41 = vld [vmem:[#allocation5 + $0x560] sm:$0xff] }
  0xad   :  { %4080 = vmatpush1.bf16.msra.mxu0 %v7832_v27  ;;  %4295 = vmatpush1.bf16.msra.mxu1 %v7834_v28  ;;  %v280_v27 = vld [vmem:[#allocation5 + $0x4c8] sm:$0xff]  ;;  %v7921_v47 = vcombine.high %v295_v40, %v299_v41  ;;  %v303_v48 = vld [vmem:[#allocation5 + $0x580] sm:$0xff] }
  0xae   :  { %4081 = vmatprep.subr.bf16.mxu0 %v7841_v29  ;;  %4296 = vmatprep.subr.bf16.mxu1 %v7843_v30  ;;  %v284_v28 = vld [vmem:[#allocation5 + $0x4e8] sm:$0xff]  ;;  %v7896_v29 = vcombine.low %v271_v15, %v275_v17  ;;  %v7898_v30 = vcombine.low %v272_v19, %v276_v20  ;;  %v307_v49 = vld [vmem:[#allocation5 + $0x5a0] sm:$0xff] }
  0xaf   :  { %v7929_v55 = vcombine.high %v303_v48, %v307_v49  ;;  %v311_v56 = vld [vmem:[#allocation5 + $0x5c0] sm:$0xff]  ;;  %v340_v20 = vld [vmem:[#allocation5 + $0x6a8] sm:$0xff] }
  0xb0   :  { %v315_v57 = vld [vmem:[#allocation5 + $0x5e0] sm:$0xff] }
  0xb1   :  { %4082 = vmatpush1.bf16.msra.mxu0 %v7840_v35  ;;  %4297 = vmatpush1.bf16.msra.mxu1 %v7842_v36  ;;  %v7907_v35 = vcombine.high %v280_v27, %v284_v28  ;;  %v292_v36 = vld [vmem:[#allocation5 + $0x528] sm:$0xff]  ;;  %v7937_v63 = vcombine.high %v311_v56, %v315_v57  ;;  %v319_v0 = vld [vmem:[#allocation5 + $0x600] sm:$0xff] }
  0xb2   :  { %4083 = vmatprep.subr.bf16.mxu0 %v7849_v37  ;;  %4298 = vmatprep.subr.bf16.mxu1 %v7851_v38  ;;  %v7904_v37 = vcombine.low %v279_v24, %v283_v25  ;;  %v7906_v38 = vcombine.low %v280_v27, %v284_v28  ;;  %v323_v1 = vld [vmem:[#allocation5 + $0x620] sm:$0xff]  ;;  %v348_v28 = vld [vmem:[#allocation5 + $0x6e8] sm:$0xff] }
  0xb3   :  { %v7945_v7 = vcombine.high %v319_v0, %v323_v1  ;;  %v327_v8 = vld [vmem:[#allocation5 + $0x640] sm:$0xff] }
  0xb4   :  { %v339_v17 = vld [vmem:[#allocation5 + $0x6a0] sm:$0xff] }
  0xb5   :  { %4084 = vmatpush1.bf16.msra.mxu0 %v7848_v43  ;;  %4299 = vmatpush1.bf16.msra.mxu1 %v7850_v44  ;;  %v7915_v43 = vcombine.high %v288_v34, %v292_v36  ;;  %v300_v44 = vld [vmem:[#allocation5 + $0x568] sm:$0xff]  ;;  %v343_v24 = vld [vmem:[#allocation5 + $0x6c0] sm:$0xff] }
  0xb6   :  { %4085 = vmatprep.subr.bf16.mxu0 %v7857_v45  ;;  %4300 = vmatprep.subr.bf16.mxu1 %v7859_v46  ;;  %v7912_v45 = vcombine.low %v287_v32, %v291_v33  ;;  %v7914_v46 = vcombine.low %v288_v34, %v292_v36  ;;  %v347_v25 = vld [vmem:[#allocation5 + $0x6e0] sm:$0xff]  ;;  %v352_v34 = vld [vmem:[#allocation5 + $0x708] sm:$0xff] }
  0xb7   :  { %v351_v32 = vld [vmem:[#allocation5 + $0x700] sm:$0xff]  ;;  %v356_v36 = vld [vmem:[#allocation5 + $0x728] sm:$0xff] }
  0xb8   :  { %v355_v33 = vld [vmem:[#allocation5 + $0x720] sm:$0xff] }
  0xb9   :  { %4086 = vmatpush1.bf16.msra.mxu0 %v7856_v51  ;;  %4301 = vmatpush1.bf16.msra.mxu1 %v7858_v52  ;;  %v7923_v51 = vcombine.high %v296_v42, %v300_v44  ;;  %v308_v52 = vld [vmem:[#allocation5 + $0x5a8] sm:$0xff] }
  0xba   :  { %4087 = vmatprep.subr.bf16.mxu0 %v7865_v53  ;;  %4302 = vmatprep.subr.bf16.mxu1 %v7867_v54  ;;  %v7920_v53 = vcombine.low %v295_v40, %v299_v41  ;;  %v7922_v54 = vcombine.low %v296_v42, %v300_v44  ;;  %v359_v40 = vld [vmem:[#allocation5 + $0x740] sm:$0xff]  ;;  %v360_v42 = vld [vmem:[#allocation5 + $0x748] sm:$0xff] }
  0xbb   :  { %v363_v41 = vld [vmem:[#allocation5 + $0x760] sm:$0xff]  ;;  %v364_v44 = vld [vmem:[#allocation5 + $0x768] sm:$0xff] }
  0xbd   :  { %4088 = vmatpush1.bf16.msra.mxu0 %v7864_v59  ;;  %4303 = vmatpush1.bf16.msra.mxu1 %v7866_v60  ;;  %v7931_v59 = vcombine.high %v304_v50, %v308_v52  ;;  %v316_v60 = vld [vmem:[#allocation5 + $0x5e8] sm:$0xff] }
  0xbe   :  { %4089 = vmatprep.subr.bf16.mxu0 %v7873_v61  ;;  %4304 = vmatprep.subr.bf16.mxu1 %v7875_v62  ;;  %v7928_v61 = vcombine.low %v303_v48, %v307_v49  ;;  %v7930_v62 = vcombine.low %v304_v50, %v308_v52  ;;  %v367_v48 = vld [vmem:[#allocation5 + $0x780] sm:$0xff]  ;;  %v368_v50 = vld [vmem:[#allocation5 + $0x788] sm:$0xff] }
  0xbf   :  { %v371_v49 = vld [vmem:[#allocation5 + $0x7a0] sm:$0xff]  ;;  %v372_v52 = vld [vmem:[#allocation5 + $0x7a8] sm:$0xff] }
  0xc1   :  { %4090 = vmatpush1.bf16.msra.mxu0 %v7872_v3  ;;  %4305 = vmatpush1.bf16.msra.mxu1 %v7874_v4  ;;  %v7939_v3 = vcombine.high %v312_v58, %v316_v60  ;;  %v324_v4 = vld [vmem:[#allocation5 + $0x628] sm:$0xff] }
  0xc2   :  { %4102 = vmatprep.subr.bf16.mxu0 %v7881_v5  ;;  %4317 = vmatprep.subr.bf16.mxu1 %v7883_v6  ;;  %v7936_v5 = vcombine.low %v311_v56, %v315_v57  ;;  %v7938_v6 = vcombine.low %v312_v58, %v316_v60  ;;  %v7947_v11 = vcombine.high %v320_v2, %v324_v4  ;;  %v375_v56 = vld [vmem:[#allocation5 + $0x7c0] sm:$0xff]  ;;  %v376_v58 = vld [vmem:[#allocation5 + $0x7c8] sm:$0xff] }
  0xc3   :  { %v379_v57 = vld [vmem:[#allocation5 + $0x7e0] sm:$0xff]  ;;  %v380_v60 = vld [vmem:[#allocation5 + $0x7e8] sm:$0xff] }
  0xc4   :  { %4092 = vmatmul.mubr.bf16.vlgmr.msra.gmra.mrb[0].mxu0 %v8857_v9  ;;  %4307 = vmatmul.mubr.bf16.vlgmr.msra.gmra.mrb[0].mxu1 %v8857_v9  ;;  %v331_v9 = vld [vmem:[#allocation5 + $0x660] sm:$0xff] }
  0xc5   :  { %4103 = vmatpush1.bf16.msra.mxu0 %v7880_v12  ;;  %4318 = vmatpush1.bf16.msra.mxu1 %v7882_v13  ;;  %v332_v12 = vld [vmem:[#allocation5 + $0x668] sm:$0xff]  ;;  %v7944_v13 = vcombine.low %v319_v0, %v323_v1  ;;  %v7953_v15 = vcombine.high %v327_v8, %v331_v9  ;;  %v383_v0 = vld [vmem:[#allocation5 + $0x800] sm:$0xff] }
  0xc6   :  { %4104 = vmatprep.subr.bf16.mxu0 %v7889_v14  ;;  %4319 = vmatprep.subr.bf16.mxu1 %v7891_v16  ;;  %v7946_v14 = vcombine.low %v320_v2, %v324_v4  ;;  %v335_v16 = vld [vmem:[#allocation5 + $0x680] sm:$0xff]  ;;  %v7955_v19 = vcombine.high %v328_v10, %v332_v12  ;;  %v384_v2 = vld [vmem:[#allocation5 + $0x808] sm:$0xff] }
  0xc7   :  { %4134 = vmatprep.mubr.bf16.mxu0 %v8858_v18  ;;  %4349 = vmatprep.mubr.bf16.mxu1 %v8858_v18  ;;  %v336_v18 = vld [vmem:[#allocation5 + $0x688] sm:$0xff]  ;;  %v387_v1 = vld [vmem:[#allocation5 + $0x820] sm:$0xff] }
  0xc8   :  { %v7963_v27 = vcombine.high %v336_v18, %v340_v20  ;;  %v388_v4 = vld [vmem:[#allocation5 + $0x828] sm:$0xff] }
  0xc9   :  { %4105 = vmatpush1.bf16.msra.mxu0 %v7888_v21  ;;  %4320 = vmatpush1.bf16.msra.mxu1 %v7890_v22  ;;  %v7952_v21 = vcombine.low %v327_v8, %v331_v9  ;;  %v7954_v22 = vcombine.low %v328_v10, %v332_v12  ;;  %v8860_v8 = vld [vmem:[#allocation2 + $0x8] ss:$40 sps:$4 sm:$0xff]   ;;  %v8011_v12 = vcombine.high %v384_v2, %v388_v4 }
  0xca   :  { %4106 = vmatprep.subr.bf16.mxu0 %v7897_v23  ;;  %4321 = vmatprep.subr.bf16.mxu1 %v7899_v26  ;;  %v7961_v23 = vcombine.high %v335_v16, %v339_v17  ;;  %v344_v26 = vld [vmem:[#allocation5 + $0x6c8] sm:$0xff]  ;;  %v391_v9 = vld [vmem:[#allocation5 + $0x840] sm:$0xff] }
  0xcb   :  { %v395_v10 = vld [vmem:[#allocation5 + $0x860] sm:$0xff] }
  0xcd   :  { %4107 = vmatpush1.bf16.msra.mxu0 %v7896_v29  ;;  %4322 = vmatpush1.bf16.msra.mxu1 %v7898_v30  ;;  %v7960_v29 = vcombine.low %v335_v16, %v339_v17  ;;  %v7962_v30 = vcombine.low %v336_v18, %v340_v20  ;;  %v8017_v16 = vcombine.high %v391_v9, %v395_v10  ;;  %v399_v17 = vld [vmem:[#allocation5 + $0x880] sm:$0xff]  ;;  %v400_v20 = vld [vmem:[#allocation5 + $0x888] sm:$0xff] }
  0xce   :  { %4108 = vmatprep.subr.bf16.mxu0 %v7905_v31  ;;  %4323 = vmatprep.subr.bf16.mxu1 %v7907_v35  ;;  %v7969_v31 = vcombine.high %v343_v24, %v347_v25  ;;  %v7971_v35 = vcombine.high %v344_v26, %v348_v28  ;;  %v403_v18 = vld [vmem:[#allocation5 + $0x8a0] sm:$0xff] }
  0xd1   :  { %4109 = vmatpush1.bf16.msra.mxu0 %v7904_v37  ;;  %4324 = vmatpush1.bf16.msra.mxu1 %v7906_v38  ;;  %v7968_v37 = vcombine.low %v343_v24, %v347_v25  ;;  %v7970_v38 = vcombine.low %v344_v26, %v348_v28  ;;  %v8025_v25 = vcombine.high %v399_v17, %v403_v18  ;;  %v407_v26 = vld [vmem:[#allocation5 + $0x8c0] sm:$0xff]  ;;  %v408_v28 = vld [vmem:[#allocation5 + $0x8c8] sm:$0xff] }
  0xd2   :  { %4110 = vmatprep.subr.bf16.mxu0 %v7913_v39  ;;  %4325 = vmatprep.subr.bf16.mxu1 %v7915_v43  ;;  %v7977_v39 = vcombine.high %v351_v32, %v355_v33  ;;  %v7979_v43 = vcombine.high %v352_v34, %v356_v36 }
  0xd5   :  { %4111 = vmatpush1.bf16.msra.mxu0 %v7912_v45  ;;  %4326 = vmatpush1.bf16.msra.mxu1 %v7914_v46  ;;  %v7976_v45 = vcombine.low %v351_v32, %v355_v33  ;;  %v7978_v46 = vcombine.low %v352_v34, %v356_v36  ;;  %v415_v34 = vld [vmem:[#allocation5 + $0x900] sm:$0xff]  ;;  %v416_v36 = vld [vmem:[#allocation5 + $0x908] sm:$0xff] }
  0xd6   :  { %4112 = vmatprep.subr.bf16.mxu0 %v7921_v47  ;;  %4327 = vmatprep.subr.bf16.mxu1 %v7923_v51  ;;  %v7985_v47 = vcombine.high %v359_v40, %v363_v41  ;;  %v7987_v51 = vcombine.high %v360_v42, %v364_v44 }
  0xd9   :  { %4113 = vmatpush1.bf16.msra.mxu0 %v7920_v53  ;;  %4328 = vmatpush1.bf16.msra.mxu1 %v7922_v54  ;;  %v7984_v53 = vcombine.low %v359_v40, %v363_v41  ;;  %v7986_v54 = vcombine.low %v360_v42, %v364_v44  ;;  %v423_v42 = vld [vmem:[#allocation5 + $0x940] sm:$0xff]  ;;  %v424_v44 = vld [vmem:[#allocation5 + $0x948] sm:$0xff] }
  0xda   :  { %4114 = vmatprep.subr.bf16.mxu0 %v7929_v55  ;;  %4329 = vmatprep.subr.bf16.mxu1 %v7931_v59  ;;  %v7993_v55 = vcombine.high %v367_v48, %v371_v49  ;;  %v7995_v59 = vcombine.high %v368_v50, %v372_v52 }
  0xdd   :  { %4115 = vmatpush1.bf16.msra.mxu0 %v7928_v61  ;;  %4330 = vmatpush1.bf16.msra.mxu1 %v7930_v62  ;;  %v7992_v61 = vcombine.low %v367_v48, %v371_v49  ;;  %v7994_v62 = vcombine.low %v368_v50, %v372_v52  ;;  %v431_v50 = vld [vmem:[#allocation5 + $0x980] sm:$0xff]  ;;  %v432_v52 = vld [vmem:[#allocation5 + $0x988] sm:$0xff] }
  0xde   :  { %4116 = vmatprep.subr.bf16.mxu0 %v7937_v63  ;;  %4331 = vmatprep.subr.bf16.mxu1 %v7939_v3  ;;  %v8001_v63 = vcombine.high %v375_v56, %v379_v57  ;;  %v8003_v3 = vcombine.high %v376_v58, %v380_v60 }
  0xe1   :  { %4117 = vmatpush1.bf16.msra.mxu0 %v7936_v5  ;;  %4332 = vmatpush1.bf16.msra.mxu1 %v7938_v6  ;;  %v8000_v5 = vcombine.low %v375_v56, %v379_v57  ;;  %v8002_v6 = vcombine.low %v376_v58, %v380_v60  ;;  %v439_v58 = vld [vmem:[#allocation5 + $0x9c0] sm:$0xff]  ;;  %v440_v60 = vld [vmem:[#allocation5 + $0x9c8] sm:$0xff] }
  0xe2   :  { %4118 = vmatprep.subr.bf16.mxu0 %v7945_v7  ;;  %4333 = vmatprep.subr.bf16.mxu1 %v7947_v11  ;;  %v8009_v7 = vcombine.high %v383_v0, %v387_v1  ;;  %v392_v11 = vld [vmem:[#allocation5 + $0x848] sm:$0xff] }
  0xe5   :  { %4119 = vmatpush1.bf16.msra.mxu0 %v7944_v13  ;;  %4334 = vmatpush1.bf16.msra.mxu1 %v7946_v14  ;;  %v396_v13 = vld [vmem:[#allocation5 + $0x868] sm:$0xff]  ;;  %v8008_v14 = vcombine.low %v383_v0, %v387_v1 }
  0xe6   :  { %4120 = vmatprep.subr.bf16.mxu0 %v7953_v15  ;;  %4335 = vmatprep.subr.bf16.mxu1 %v7955_v19  ;;  %v8010_v15 = vcombine.low %v384_v2, %v388_v4  ;;  %v8019_v19 = vcombine.high %v392_v11, %v396_v13  ;;  %v8018_v24 = vcombine.low %v392_v11, %v396_v13  ;;  %v447_v2 = vld [vmem:[#allocation5 + $0xa00] sm:$0xff]  ;;  %v448_v4 = vld [vmem:[#allocation5 + $0xa08] sm:$0xff] }
  0xe7   :  { %v459_v11 = vld [vmem:[#allocation5 + $0xa60] sm:$0xff] }
  0xe9   :  { %4121 = vmatpush1.bf16.msra.mxu0 %v7952_v21  ;;  %4336 = vmatpush1.bf16.msra.mxu1 %v7954_v22  ;;  %v404_v21 = vld [vmem:[#allocation5 + $0x8a8] sm:$0xff] }
  0xea   :  { %4122 = vmatprep.subr.bf16.mxu0 %v7961_v23  ;;  %4337 = vmatprep.subr.bf16.mxu1 %v7963_v27  ;;  %v8861_v22 = vld [vmem:[#allocation2 + $0x14] ss:$40 sps:$4 sm:$0xff]   ;;  %v8016_v23 = vcombine.low %v391_v9, %v395_v10  ;;  %v8026_v32 = vcombine.low %v400_v20, %v404_v21 }
  0xeb   :  { %v411_v27 = vld [vmem:[#allocation5 + $0x8e0] sm:$0xff] }
  0xec   :  { %v8033_v33 = vcombine.high %v407_v26, %v411_v27  ;;  %v455_v10 = vld [vmem:[#allocation5 + $0xa40] sm:$0xff] }
  0xed   :  { %4123 = vmatpush1.bf16.msra.mxu0 %v7960_v29  ;;  %4338 = vmatpush1.bf16.msra.mxu1 %v7962_v30  ;;  %v8027_v29 = vcombine.high %v400_v20, %v404_v21  ;;  %v412_v30 = vld [vmem:[#allocation5 + $0x8e8] sm:$0xff] }
  0xee   :  { %4124 = vmatprep.subr.bf16.mxu0 %v7969_v31  ;;  %4339 = vmatprep.subr.bf16.mxu1 %v7971_v35  ;;  %v8024_v31 = vcombine.low %v399_v17, %v403_v18  ;;  %v419_v35 = vld [vmem:[#allocation5 + $0x920] sm:$0xff]  ;;  %v8034_v40 = vcombine.low %v408_v28, %v412_v30  ;;  %v8081_v17 = vcombine.high %v455_v10, %v459_v11  ;;  %v464_v20 = vld [vmem:[#allocation5 + $0xa88] sm:$0xff] }
  0xef   :  { %v8041_v41 = vcombine.high %v415_v34, %v419_v35  ;;  %v463_v18 = vld [vmem:[#allocation5 + $0xa80] sm:$0xff] }
  0xf1   :  { %4125 = vmatpush1.bf16.msra.mxu0 %v7968_v37  ;;  %4340 = vmatpush1.bf16.msra.mxu1 %v7970_v38  ;;  %v8035_v37 = vcombine.high %v408_v28, %v412_v30  ;;  %v420_v38 = vld [vmem:[#allocation5 + $0x928] sm:$0xff] }
  0xf2   :  { %4126 = vmatprep.subr.bf16.mxu0 %v7977_v39  ;;  %4341 = vmatprep.subr.bf16.mxu1 %v7979_v43  ;;  %v8032_v39 = vcombine.low %v407_v26, %v411_v27  ;;  %v427_v43 = vld [vmem:[#allocation5 + $0x960] sm:$0xff]  ;;  %v8042_v48 = vcombine.low %v416_v36, %v420_v38  ;;  %v472_v28 = vld [vmem:[#allocation5 + $0xac8] sm:$0xff] }
  0xf3   :  { %v8049_v49 = vcombine.high %v423_v42, %v427_v43  ;;  %v471_v26 = vld [vmem:[#allocation5 + $0xac0] sm:$0xff]  ;;  %v476_v30 = vld [vmem:[#allocation5 + $0xae8] sm:$0xff] }
  0xf4   :  { %v475_v27 = vld [vmem:[#allocation5 + $0xae0] sm:$0xff] }
  0xf5   :  { %4127 = vmatpush1.bf16.msra.mxu0 %v7976_v45  ;;  %4342 = vmatpush1.bf16.msra.mxu1 %v7978_v46  ;;  %v8043_v45 = vcombine.high %v416_v36, %v420_v38  ;;  %v428_v46 = vld [vmem:[#allocation5 + $0x968] sm:$0xff] }
  0xf6   :  { %4128 = vmatprep.subr.bf16.mxu0 %v7985_v47  ;;  %4343 = vmatprep.subr.bf16.mxu1 %v7987_v51  ;;  %v8040_v47 = vcombine.low %v415_v34, %v419_v35  ;;  %v435_v51 = vld [vmem:[#allocation5 + $0x9a0] sm:$0xff]  ;;  %v8050_v56 = vcombine.low %v424_v44, %v428_v46  ;;  %v480_v36 = vld [vmem:[#allocation5 + $0xb08] sm:$0xff] }
  0xf7   :  { %v8057_v57 = vcombine.high %v431_v50, %v435_v51  ;;  %v479_v34 = vld [vmem:[#allocation5 + $0xb00] sm:$0xff]  ;;  %v484_v38 = vld [vmem:[#allocation5 + $0xb28] sm:$0xff] }
  0xf8   :  { %v483_v35 = vld [vmem:[#allocation5 + $0xb20] sm:$0xff] }
  0xf9   :  { %4129 = vmatpush1.bf16.msra.mxu0 %v7984_v53  ;;  %4344 = vmatpush1.bf16.msra.mxu1 %v7986_v54  ;;  %v8051_v53 = vcombine.high %v424_v44, %v428_v46  ;;  %v436_v54 = vld [vmem:[#allocation5 + $0x9a8] sm:$0xff] }
  0xfa   :  { %4130 = vmatprep.subr.bf16.mxu0 %v7993_v55  ;;  %4345 = vmatprep.subr.bf16.mxu1 %v7995_v59  ;;  %v8048_v55 = vcombine.low %v423_v42, %v427_v43  ;;  %v443_v59 = vld [vmem:[#allocation5 + $0x9e0] sm:$0xff]  ;;  %v8058_v0 = vcombine.low %v432_v52, %v436_v54  ;;  %v488_v44 = vld [vmem:[#allocation5 + $0xb48] sm:$0xff] }
  0xfb   :  { %v8065_v1 = vcombine.high %v439_v58, %v443_v59  ;;  %v487_v42 = vld [vmem:[#allocation5 + $0xb40] sm:$0xff]  ;;  %v492_v46 = vld [vmem:[#allocation5 + $0xb68] sm:$0xff] }
  0xfc   :  { %v491_v43 = vld [vmem:[#allocation5 + $0xb60] sm:$0xff] }
  0xfd   :  { %4131 = vmatpush1.bf16.msra.mxu0 %v7992_v61  ;;  %4346 = vmatpush1.bf16.msra.mxu1 %v7994_v62  ;;  %v8059_v61 = vcombine.high %v432_v52, %v436_v54  ;;  %v444_v62 = vld [vmem:[#allocation5 + $0x9e8] sm:$0xff] }
  0xfe   :  { %4132 = vmatprep.subr.bf16.mxu0 %v8001_v63  ;;  %4347 = vmatprep.subr.bf16.mxu1 %v8003_v3  ;;  %v8056_v63 = vcombine.low %v431_v50, %v435_v51  ;;  %v451_v3 = vld [vmem:[#allocation5 + $0xa20] sm:$0xff]  ;;  %v496_v52 = vld [vmem:[#allocation5 + $0xb88] sm:$0xff] }
  0xff   :  { %v8073_v9 = vcombine.high %v447_v2, %v451_v3  ;;  %v495_v50 = vld [vmem:[#allocation5 + $0xb80] sm:$0xff]  ;;  %v500_v54 = vld [vmem:[#allocation5 + $0xba8] sm:$0xff] }
 0x100   :  { %v499_v51 = vld [vmem:[#allocation5 + $0xba0] sm:$0xff] }
 0x101   :  { %4133 = vmatpush1.bf16.msra.mxu0 %v8000_v5  ;;  %4348 = vmatpush1.bf16.msra.mxu1 %v8002_v6  ;;  %v8067_v5 = vcombine.high %v440_v60, %v444_v62  ;;  %v452_v6 = vld [vmem:[#allocation5 + $0xa28] sm:$0xff] }
 0x102   :  { %4145 = vmatprep.subr.bf16.mxu0 %v8009_v7  ;;  %4360 = vmatprep.subr.bf16.mxu1 %v8011_v12  ;;  %v8064_v7 = vcombine.low %v439_v58, %v443_v59  ;;  %v456_v12 = vld [vmem:[#allocation5 + $0xa48] sm:$0xff]  ;;  %v8075_v13 = vcombine.high %v448_v4, %v452_v6  ;;  %v503_v58 = vld [vmem:[#allocation5 + $0xbc0] sm:$0xff] }
 0x103   :  { %v507_v59 = vld [vmem:[#allocation5 + $0xbe0] sm:$0xff] }
 0x104   :  { %4135 = vmatmul.mubr.bf16.vlgmr.msra.gmra.mrb[0].mxu0 %v8860_v8  ;;  %4350 = vmatmul.mubr.bf16.vlgmr.msra.gmra.mrb[0].mxu1 %v8860_v8  ;;  %v8066_v8 = vcombine.low %v440_v60, %v444_v62  ;;  %v504_v60 = vld [vmem:[#allocation5 + $0xbc8] sm:$0xff] }
 0x105   :  { %4146 = vmatpush1.bf16.msra.mxu0 %v8008_v14  ;;  %4361 = vmatpush1.bf16.msra.mxu1 %v8010_v15  ;;  %v460_v14 = vld [vmem:[#allocation5 + $0xa68] sm:$0xff]  ;;  %v8072_v15 = vcombine.low %v447_v2, %v451_v3  ;;  %v511_v2 = vld [vmem:[#allocation5 + $0xc00] sm:$0xff] }
 0x106   :  { %4147 = vmatprep.subr.bf16.mxu0 %v8017_v16  ;;  %4362 = vmatprep.subr.bf16.mxu1 %v8019_v19  ;;  %v8074_v16 = vcombine.low %v448_v4, %v452_v6  ;;  %v467_v19 = vld [vmem:[#allocation5 + $0xaa0] sm:$0xff]  ;;  %v8083_v21 = vcombine.high %v456_v12, %v460_v14  ;;  %v508_v62 = vld [vmem:[#allocation5 + $0xbe8] sm:$0xff] }
 0x107   :  { %4177 = vmatprep.mubr.bf16.mxu0 %v8861_v22  ;;  %4392 = vmatprep.mubr.bf16.mxu1 %v8861_v22  ;;  %v468_v22 = vld [vmem:[#allocation5 + $0xaa8] sm:$0xff]  ;;  %v515_v3 = vld [vmem:[#allocation5 + $0xc20] sm:$0xff] }
 0x108   :  { %v512_v4 = vld [vmem:[#allocation5 + $0xc08] sm:$0xff] }
 0x109   :  { %4148 = vmatpush1.bf16.msra.mxu0 %v8016_v23  ;;  %4363 = vmatpush1.bf16.msra.mxu1 %v8018_v24  ;;  %v8080_v23 = vcombine.low %v455_v10, %v459_v11  ;;  %v8082_v24 = vcombine.low %v456_v12, %v460_v14  ;;  %v516_v6 = vld [vmem:[#allocation5 + $0xc28] sm:$0xff]  ;;  %v519_v11 = vld [vmem:[#allocation5 + $0xc40] sm:$0xff] }
 0x10a   :  { %4149 = vmatprep.subr.bf16.mxu0 %v8025_v25  ;;  %4364 = vmatprep.subr.bf16.mxu1 %v8027_v29  ;;  %v8089_v25 = vcombine.high %v463_v18, %v467_v19  ;;  %v8091_v29 = vcombine.high %v464_v20, %v468_v22  ;;  %v8863_v10 = vld [vmem:[#allocation2 + $0x10] ss:$40 sps:$4 sm:$0xff]   ;;  %v8139_v14 = vcombine.high %v512_v4, %v516_v6 }
 0x10b   :  { %v523_v12 = vld [vmem:[#allocation5 + $0xc60] sm:$0xff] }
 0x10d   :  { %4150 = vmatpush1.bf16.msra.mxu0 %v8024_v31  ;;  %4365 = vmatpush1.bf16.msra.mxu1 %v8026_v32  ;;  %v8088_v31 = vcombine.low %v463_v18, %v467_v19  ;;  %v8090_v32 = vcombine.low %v464_v20, %v468_v22  ;;  %v8145_v18 = vcombine.high %v519_v11, %v523_v12  ;;  %v527_v19 = vld [vmem:[#allocation5 + $0xc80] sm:$0xff]  ;;  %v528_v22 = vld [vmem:[#allocation5 + $0xc88] sm:$0xff] }
 0x10e   :  { %4151 = vmatprep.subr.bf16.mxu0 %v8033_v33  ;;  %4366 = vmatprep.subr.bf16.mxu1 %v8035_v37  ;;  %v8097_v33 = vcombine.high %v471_v26, %v475_v27  ;;  %v8099_v37 = vcombine.high %v472_v28, %v476_v30  ;;  %v531_v20 = vld [vmem:[#allocation5 + $0xca0] sm:$0xff] }
 0x111   :  { %4152 = vmatpush1.bf16.msra.mxu0 %v8032_v39  ;;  %4367 = vmatpush1.bf16.msra.mxu1 %v8034_v40  ;;  %v8096_v39 = vcombine.low %v471_v26, %v475_v27  ;;  %v8098_v40 = vcombine.low %v472_v28, %v476_v30  ;;  %v8153_v27 = vcombine.high %v527_v19, %v531_v20  ;;  %v535_v28 = vld [vmem:[#allocation5 + $0xcc0] sm:$0xff]  ;;  %v536_v30 = vld [vmem:[#allocation5 + $0xcc8] sm:$0xff] }
 0x112   :  { %4153 = vmatprep.subr.bf16.mxu0 %v8041_v41  ;;  %4368 = vmatprep.subr.bf16.mxu1 %v8043_v45  ;;  %v8105_v41 = vcombine.high %v479_v34, %v483_v35  ;;  %v8107_v45 = vcombine.high %v480_v36, %v484_v38 }
 0x115   :  { %4154 = vmatpush1.bf16.msra.mxu0 %v8040_v47  ;;  %4369 = vmatpush1.bf16.msra.mxu1 %v8042_v48  ;;  %v8104_v47 = vcombine.low %v479_v34, %v483_v35  ;;  %v8106_v48 = vcombine.low %v480_v36, %v484_v38  ;;  %v543_v36 = vld [vmem:[#allocation5 + $0xd00] sm:$0xff]  ;;  %v544_v38 = vld [vmem:[#allocation5 + $0xd08] sm:$0xff] }
 0x116   :  { %4155 = vmatprep.subr.bf16.mxu0 %v8049_v49  ;;  %4370 = vmatprep.subr.bf16.mxu1 %v8051_v53  ;;  %v8113_v49 = vcombine.high %v487_v42, %v491_v43  ;;  %v8115_v53 = vcombine.high %v488_v44, %v492_v46 }
 0x119   :  { %4156 = vmatpush1.bf16.msra.mxu0 %v8048_v55  ;;  %4371 = vmatpush1.bf16.msra.mxu1 %v8050_v56  ;;  %v8112_v55 = vcombine.low %v487_v42, %v491_v43  ;;  %v8114_v56 = vcombine.low %v488_v44, %v492_v46  ;;  %v551_v44 = vld [vmem:[#allocation5 + $0xd40] sm:$0xff]  ;;  %v552_v46 = vld [vmem:[#allocation5 + $0xd48] sm:$0xff] }
 0x11a   :  { %4157 = vmatprep.subr.bf16.mxu0 %v8057_v57  ;;  %4372 = vmatprep.subr.bf16.mxu1 %v8059_v61  ;;  %v8121_v57 = vcombine.high %v495_v50, %v499_v51  ;;  %v8123_v61 = vcombine.high %v496_v52, %v500_v54 }
 0x11d   :  { %4158 = vmatpush1.bf16.msra.mxu0 %v8056_v63  ;;  %4373 = vmatpush1.bf16.msra.mxu1 %v8058_v0  ;;  %v8120_v63 = vcombine.low %v495_v50, %v499_v51  ;;  %v8122_v0 = vcombine.low %v496_v52, %v500_v54  ;;  %v559_v52 = vld [vmem:[#allocation5 + $0xd80] sm:$0xff]  ;;  %v560_v54 = vld [vmem:[#allocation5 + $0xd88] sm:$0xff] }
 0x11e   :  { %4159 = vmatprep.subr.bf16.mxu0 %v8065_v1  ;;  %4374 = vmatprep.subr.bf16.mxu1 %v8067_v5  ;;  %v8129_v1 = vcombine.high %v503_v58, %v507_v59  ;;  %v8131_v5 = vcombine.high %v504_v60, %v508_v62 }
 0x121   :  { %4160 = vmatpush1.bf16.msra.mxu0 %v8064_v7  ;;  %4375 = vmatpush1.bf16.msra.mxu1 %v8066_v8  ;;  %v8128_v7 = vcombine.low %v503_v58, %v507_v59  ;;  %v8130_v8 = vcombine.low %v504_v60, %v508_v62  ;;  %v567_v60 = vld [vmem:[#allocation5 + $0xdc0] sm:$0xff]  ;;  %v568_v62 = vld [vmem:[#allocation5 + $0xdc8] sm:$0xff] }
 0x122   :  { %4161 = vmatprep.subr.bf16.mxu0 %v8073_v9  ;;  %4376 = vmatprep.subr.bf16.mxu1 %v8075_v13  ;;  %v8137_v9 = vcombine.high %v511_v2, %v515_v3  ;;  %v520_v13 = vld [vmem:[#allocation5 + $0xc48] sm:$0xff] }
 0x125   :  { %4162 = vmatpush1.bf16.msra.mxu0 %v8072_v15  ;;  %4377 = vmatpush1.bf16.msra.mxu1 %v8074_v16  ;;  %v524_v15 = vld [vmem:[#allocation5 + $0xc68] sm:$0xff]  ;;  %v8136_v16 = vcombine.low %v511_v2, %v515_v3 }
 0x126   :  { %4163 = vmatprep.subr.bf16.mxu0 %v8081_v17  ;;  %4378 = vmatprep.subr.bf16.mxu1 %v8083_v21  ;;  %v8138_v17 = vcombine.low %v512_v4, %v516_v6  ;;  %v8147_v21 = vcombine.high %v520_v13, %v524_v15  ;;  %v8146_v26 = vcombine.low %v520_v13, %v524_v15  ;;  %v575_v4 = vld [vmem:[#allocation5 + $0xe00] sm:$0xff]  ;;  %v576_v6 = vld [vmem:[#allocation5 + $0xe08] sm:$0xff] }
 0x127   :  { %v587_v13 = vld [vmem:[#allocation5 + $0xe60] sm:$0xff] }
 0x129   :  { %4164 = vmatpush1.bf16.msra.mxu0 %v8080_v23  ;;  %4379 = vmatpush1.bf16.msra.mxu1 %v8082_v24  ;;  %v532_v23 = vld [vmem:[#allocation5 + $0xca8] sm:$0xff] }
 0x12a   :  { %4165 = vmatprep.subr.bf16.mxu0 %v8089_v25  ;;  %4380 = vmatprep.subr.bf16.mxu1 %v8091_v29  ;;  %v8864_v24 = vld [vmem:[#allocation2 + $0x1c] ss:$40 sps:$4 sm:$0xff]   ;;  %v8144_v25 = vcombine.low %v519_v11, %v523_v12  ;;  %v539_v29 = vld [vmem:[#allocation5 + $0xce0] sm:$0xff]  ;;  %v8154_v34 = vcombine.low %v528_v22, %v532_v23 }
 0x12b   :  { %v8161_v35 = vcombine.high %v535_v28, %v539_v29  ;;  %v583_v12 = vld [vmem:[#allocation5 + $0xe40] sm:$0xff] }
 0x12d   :  { %4166 = vmatpush1.bf16.msra.mxu0 %v8088_v31  ;;  %4381 = vmatpush1.bf16.msra.mxu1 %v8090_v32  ;;  %v8155_v31 = vcombine.high %v528_v22, %v532_v23  ;;  %v540_v32 = vld [vmem:[#allocation5 + $0xce8] sm:$0xff] }
 0x12e   :  { %4167 = vmatprep.subr.bf16.mxu0 %v8097_v33  ;;  %4382 = vmatprep.subr.bf16.mxu1 %v8099_v37  ;;  %v8152_v33 = vcombine.low %v527_v19, %v531_v20  ;;  %v547_v37 = vld [vmem:[#allocation5 + $0xd20] sm:$0xff]  ;;  %v8162_v42 = vcombine.low %v536_v30, %v540_v32  ;;  %v8209_v19 = vcombine.high %v583_v12, %v587_v13  ;;  %v592_v22 = vld [vmem:[#allocation5 + $0xe88] sm:$0xff] }
 0x12f   :  { %v8169_v43 = vcombine.high %v543_v36, %v547_v37  ;;  %v591_v20 = vld [vmem:[#allocation5 + $0xe80] sm:$0xff] }
 0x131   :  { %4168 = vmatpush1.bf16.msra.mxu0 %v8096_v39  ;;  %4383 = vmatpush1.bf16.msra.mxu1 %v8098_v40  ;;  %v8163_v39 = vcombine.high %v536_v30, %v540_v32  ;;  %v548_v40 = vld [vmem:[#allocation5 + $0xd28] sm:$0xff] }
 0x132   :  { %4169 = vmatprep.subr.bf16.mxu0 %v8105_v41  ;;  %4384 = vmatprep.subr.bf16.mxu1 %v8107_v45  ;;  %v8160_v41 = vcombine.low %v535_v28, %v539_v29  ;;  %v555_v45 = vld [vmem:[#allocation5 + $0xd60] sm:$0xff]  ;;  %v8170_v50 = vcombine.low %v544_v38, %v548_v40  ;;  %v600_v30 = vld [vmem:[#allocation5 + $0xec8] sm:$0xff] }
 0x133   :  { %v8177_v51 = vcombine.high %v551_v44, %v555_v45  ;;  %v599_v28 = vld [vmem:[#allocation5 + $0xec0] sm:$0xff]  ;;  %v604_v32 = vld [vmem:[#allocation5 + $0xee8] sm:$0xff] }
 0x134   :  { %v603_v29 = vld [vmem:[#allocation5 + $0xee0] sm:$0xff] }
 0x135   :  { %4170 = vmatpush1.bf16.msra.mxu0 %v8104_v47  ;;  %4385 = vmatpush1.bf16.msra.mxu1 %v8106_v48  ;;  %v8171_v47 = vcombine.high %v544_v38, %v548_v40  ;;  %v556_v48 = vld [vmem:[#allocation5 + $0xd68] sm:$0xff]  ;;  %v611_v38 = vld [vmem:[#allocation5 + $0xf20] sm:$0xff] }
 0x136   :  { %4171 = vmatprep.subr.bf16.mxu0 %v8113_v49  ;;  %4386 = vmatprep.subr.bf16.mxu1 %v8115_v53  ;;  %v8168_v49 = vcombine.low %v543_v36, %v547_v37  ;;  %v563_v53 = vld [vmem:[#allocation5 + $0xda0] sm:$0xff]  ;;  %v8178_v58 = vcombine.low %v552_v46, %v556_v48  ;;  %v8227_v36 = vcombine.high %v600_v30, %v604_v32  ;;  %v612_v40 = vld [vmem:[#allocation5 + $0xf28] sm:$0xff] }
 0x137   :  { %v8185_v59 = vcombine.high %v559_v52, %v563_v53  ;;  %v607_v37 = vld [vmem:[#allocation5 + $0xf00] sm:$0xff] }
 0x139   :  { %4172 = vmatpush1.bf16.msra.mxu0 %v8112_v55  ;;  %4387 = vmatpush1.bf16.msra.mxu1 %v8114_v56  ;;  %v8179_v55 = vcombine.high %v552_v46, %v556_v48  ;;  %v564_v56 = vld [vmem:[#allocation5 + $0xda8] sm:$0xff]  ;;  %v619_v46 = vld [vmem:[#allocation5 + $0xf60] sm:$0xff] }
 0x13a   :  { %4173 = vmatprep.subr.bf16.mxu0 %v8121_v57  ;;  %4388 = vmatprep.subr.bf16.mxu1 %v8123_v61  ;;  %v8176_v57 = vcombine.low %v551_v44, %v555_v45  ;;  %v571_v61 = vld [vmem:[#allocation5 + $0xde0] sm:$0xff]  ;;  %v8186_v2 = vcombine.low %v560_v54, %v564_v56  ;;  %v620_v48 = vld [vmem:[#allocation5 + $0xf68] sm:$0xff] }
 0x13b   :  { %v8193_v3 = vcombine.high %v567_v60, %v571_v61  ;;  %v615_v45 = vld [vmem:[#allocation5 + $0xf40] sm:$0xff] }
 0x13d   :  { %4174 = vmatpush1.bf16.msra.mxu0 %v8120_v63  ;;  %4389 = vmatpush1.bf16.msra.mxu1 %v8122_v0  ;;  %v8187_v63 = vcombine.high %v560_v54, %v564_v56  ;;  %v572_v0 = vld [vmem:[#allocation5 + $0xde8] sm:$0xff]  ;;  %v627_v54 = vld [vmem:[#allocation5 + $0xfa0] sm:$0xff] }
 0x13e   :  { %4175 = vmatprep.subr.bf16.mxu0 %v8129_v1  ;;  %4390 = vmatprep.subr.bf16.mxu1 %v8131_v5  ;;  %v8184_v1 = vcombine.low %v559_v52, %v563_v53  ;;  %v579_v5 = vld [vmem:[#allocation5 + $0xe20] sm:$0xff]  ;;  %v628_v56 = vld [vmem:[#allocation5 + $0xfa8] sm:$0xff] }
 0x13f   :  { %v8201_v11 = vcombine.high %v575_v4, %v579_v5  ;;  %v623_v53 = vld [vmem:[#allocation5 + $0xf80] sm:$0xff] }
 0x141   :  { %4176 = vmatpush1.bf16.msra.mxu0 %v8128_v7  ;;  %4391 = vmatpush1.bf16.msra.mxu1 %v8130_v8  ;;  %v8195_v7 = vcombine.high %v568_v62, %v572_v0  ;;  %v580_v8 = vld [vmem:[#allocation5 + $0xe28] sm:$0xff] }
 0x142   :  { %4188 = vmatprep.subr.bf16.mxu0 %v8137_v9  ;;  %4403 = vmatprep.subr.bf16.mxu1 %v8139_v14  ;;  %v8192_v9 = vcombine.low %v567_v60, %v571_v61  ;;  %v584_v14 = vld [vmem:[#allocation5 + $0xe48] sm:$0xff]  ;;  %v8203_v15 = vcombine.high %v576_v6, %v580_v8  ;;  %v631_v61 = vld [vmem:[#allocation5 + $0xfc0] sm:$0xff] }
 0x144   :  { %4178 = vmatmul.mubr.bf16.vlgmr.msra.gmra.mrb[0].mxu0 %v8863_v10  ;;  %4393 = vmatmul.mubr.bf16.vlgmr.msra.gmra.mrb[0].mxu1 %v8863_v10  ;;  %v8194_v10 = vcombine.low %v568_v62, %v572_v0  ;;  %v635_v62 = vld [vmem:[#allocation5 + $0xfe0] sm:$0xff]  ;;  %v636_v0 = vld [vmem:[#allocation5 + $0xfe8] sm:$0xff] }
 0x145   :  { %4189 = vmatpush1.bf16.msra.mxu0 %v8136_v16  ;;  %4404 = vmatpush1.bf16.msra.mxu1 %v8138_v17  ;;  %v588_v16 = vld [vmem:[#allocation5 + $0xe68] sm:$0xff]  ;;  %v8200_v17 = vcombine.low %v575_v4, %v579_v5  ;;  %v639_v5 = vld [vmem:[#allocation5 + $0x1000] sm:$0xff] }
 0x146   :  { %4190 = vmatprep.subr.bf16.mxu0 %v8145_v18  ;;  %4405 = vmatprep.subr.bf16.mxu1 %v8147_v21  ;;  %v8202_v18 = vcombine.low %v576_v6, %v580_v8  ;;  %v595_v21 = vld [vmem:[#allocation5 + $0xea0] sm:$0xff]  ;;  %v8211_v23 = vcombine.high %v584_v14, %v588_v16  ;;  %v644_v8 = vld [vmem:[#allocation5 + $0x1028] sm:$0xff] }
 0x147   :  { %4220 = vmatprep.mubr.bf16.mxu0 %v8864_v24  ;;  %4435 = vmatprep.mubr.bf16.mxu1 %v8864_v24  ;;  %v596_v24 = vld [vmem:[#allocation5 + $0xea8] sm:$0xff]  ;;  %v643_v6 = vld [vmem:[#allocation5 + $0x1020] sm:$0xff] }
 0x149   :  { %4191 = vmatpush1.bf16.msra.mxu0 %v8144_v25  ;;  %4406 = vmatpush1.bf16.msra.mxu1 %v8146_v26  ;;  %v8208_v25 = vcombine.low %v583_v12, %v587_v13  ;;  %v8210_v26 = vcombine.low %v584_v14, %v588_v16  ;;  %v647_v13 = vld [vmem:[#allocation5 + $0x1040] sm:$0xff]  ;;  %v648_v16 = vld [vmem:[#allocation5 + $0x1048] sm:$0xff] }
 0x14a   :  { %4192 = vmatprep.subr.bf16.mxu0 %v8153_v27  ;;  %4407 = vmatprep.subr.bf16.mxu1 %v8155_v31  ;;  %v8217_v27 = vcombine.high %v591_v20, %v595_v21  ;;  %v8219_v31 = vcombine.high %v592_v22, %v596_v24  ;;  %v651_v14 = vld [vmem:[#allocation5 + $0x1060] sm:$0xff] }
 0x14d   :  { %4193 = vmatpush1.bf16.msra.mxu0 %v8152_v33  ;;  %4408 = vmatpush1.bf16.msra.mxu1 %v8154_v34  ;;  %v8216_v33 = vcombine.low %v591_v20, %v595_v21  ;;  %v8218_v34 = vcombine.low %v592_v22, %v596_v24  ;;  %v8273_v20 = vcombine.high %v647_v13, %v651_v14  ;;  %v655_v22 = vld [vmem:[#allocation5 + $0x1080] sm:$0xff]  ;;  %v8867_v24 = vld [vmem:[#allocation2 + $0x24] ss:$40 sps:$4 sm:$0xff]  }
 0x14e   :  { %4194 = vmatprep.subr.bf16.mxu0 %v8161_v35  ;;  %4409 = vmatprep.subr.bf16.mxu1 %v8163_v39  ;;  %v8225_v35 = vcombine.high %v599_v28, %v603_v29  ;;  %v608_v39 = vld [vmem:[#allocation5 + $0xf08] sm:$0xff] }
 0x14f   :  { %v8235_v44 = vcombine.high %v608_v39, %v612_v40 }
 0x151   :  { %4195 = vmatpush1.bf16.msra.mxu0 %v8160_v41  ;;  %4410 = vmatpush1.bf16.msra.mxu1 %v8162_v42  ;;  %v8224_v41 = vcombine.low %v599_v28, %v603_v29  ;;  %v8226_v42 = vcombine.low %v600_v30, %v604_v32  ;;  %v667_v32 = vld [vmem:[#allocation5 + $0x10e0] sm:$0xff] }
 0x152   :  { %4196 = vmatprep.subr.bf16.mxu0 %v8169_v43  ;;  %4411 = vmatprep.subr.bf16.mxu1 %v8171_v47  ;;  %v8233_v43 = vcombine.high %v607_v37, %v611_v38  ;;  %v616_v47 = vld [vmem:[#allocation5 + $0xf48] sm:$0xff] }
 0x153   :  { %v8243_v52 = vcombine.high %v616_v47, %v620_v48 }
 0x155   :  { %4197 = vmatpush1.bf16.msra.mxu0 %v8168_v49  ;;  %4412 = vmatpush1.bf16.msra.mxu1 %v8170_v50  ;;  %v8232_v49 = vcombine.low %v607_v37, %v611_v38  ;;  %v8234_v50 = vcombine.low %v608_v39, %v612_v40  ;;  %v671_v39 = vld [vmem:[#allocation5 + $0x1100] sm:$0xff] }
 0x156   :  { %4198 = vmatprep.subr.bf16.mxu0 %v8177_v51  ;;  %4413 = vmatprep.subr.bf16.mxu1 %v8179_v55  ;;  %v8241_v51 = vcombine.high %v615_v45, %v619_v46  ;;  %v624_v55 = vld [vmem:[#allocation5 + $0xf88] sm:$0xff]  ;;  %v675_v40 = vld [vmem:[#allocation5 + $0x1120] sm:$0xff] }
 0x157   :  { %v8251_v60 = vcombine.high %v624_v55, %v628_v56 }
 0x159   :  { %4199 = vmatpush1.bf16.msra.mxu0 %v8176_v57  ;;  %4414 = vmatpush1.bf16.msra.mxu1 %v8178_v58  ;;  %v8240_v57 = vcombine.low %v615_v45, %v619_v46  ;;  %v8242_v58 = vcombine.low %v616_v47, %v620_v48  ;;  %v8297_v45 = vcombine.high %v671_v39, %v675_v40  ;;  %v679_v47 = vld [vmem:[#allocation5 + $0x1140] sm:$0xff] }
 0x15a   :  { %4200 = vmatprep.subr.bf16.mxu0 %v8185_v59  ;;  %4415 = vmatprep.subr.bf16.mxu1 %v8187_v63  ;;  %v8249_v59 = vcombine.high %v623_v53, %v627_v54  ;;  %v632_v63 = vld [vmem:[#allocation5 + $0xfc8] sm:$0xff]  ;;  %v683_v48 = vld [vmem:[#allocation5 + $0x1160] sm:$0xff] }
 0x15b   :  { %v8259_v4 = vcombine.high %v632_v63, %v636_v0 }
 0x15d   :  { %4201 = vmatpush1.bf16.msra.mxu0 %v8184_v1  ;;  %4416 = vmatpush1.bf16.msra.mxu1 %v8186_v2  ;;  %v8248_v1 = vcombine.low %v623_v53, %v627_v54  ;;  %v8250_v2 = vcombine.low %v624_v55, %v628_v56  ;;  %v8305_v53 = vcombine.high %v679_v47, %v683_v48  ;;  %v687_v55 = vld [vmem:[#allocation5 + $0x1180] sm:$0xff] }
 0x15e   :  { %4202 = vmatprep.subr.bf16.mxu0 %v8193_v3  ;;  %4417 = vmatprep.subr.bf16.mxu1 %v8195_v7  ;;  %v8257_v3 = vcombine.high %v631_v61, %v635_v62  ;;  %v640_v7 = vld [vmem:[#allocation5 + $0x1008] sm:$0xff]  ;;  %v691_v56 = vld [vmem:[#allocation5 + $0x11a0] sm:$0xff] }
 0x15f   :  { %v8267_v12 = vcombine.high %v640_v7, %v644_v8 }
 0x161   :  { %4203 = vmatpush1.bf16.msra.mxu0 %v8192_v9  ;;  %4418 = vmatpush1.bf16.msra.mxu1 %v8194_v10  ;;  %v8256_v9 = vcombine.low %v631_v61, %v635_v62  ;;  %v8258_v10 = vcombine.low %v632_v63, %v636_v0  ;;  %v8313_v61 = vcombine.high %v687_v55, %v691_v56  ;;  %v695_v63 = vld [vmem:[#allocation5 + $0x11c0] sm:$0xff] }
 0x162   :  { %4204 = vmatprep.subr.bf16.mxu0 %v8201_v11  ;;  %4419 = vmatprep.subr.bf16.mxu1 %v8203_v15  ;;  %v8265_v11 = vcombine.high %v639_v5, %v643_v6  ;;  %v8866_v15 = vld [vmem:[#allocation2 + $0x18] ss:$40 sps:$4 sm:$0xff]   ;;  %v699_v0 = vld [vmem:[#allocation5 + $0x11e0] sm:$0xff] }
 0x165   :  { %4205 = vmatpush1.bf16.msra.mxu0 %v8200_v17  ;;  %4420 = vmatpush1.bf16.msra.mxu1 %v8202_v18  ;;  %v652_v17 = vld [vmem:[#allocation5 + $0x1068] sm:$0xff]  ;;  %v8264_v18 = vcombine.low %v639_v5, %v643_v6  ;;  %v8321_v5 = vcombine.high %v695_v63, %v699_v0 }
 0x166   :  { %4206 = vmatprep.subr.bf16.mxu0 %v8209_v19  ;;  %4421 = vmatprep.subr.bf16.mxu1 %v8211_v23  ;;  %v8266_v19 = vcombine.low %v640_v7, %v644_v8  ;;  %v8275_v21 = vcombine.high %v648_v16, %v652_v17  ;;  %v659_v23 = vld [vmem:[#allocation5 + $0x10a0] sm:$0xff]  ;;  %v8274_v28 = vcombine.low %v648_v16, %v652_v17  ;;  %v712_v17 = vld [vmem:[#allocation5 + $0x1248] sm:$0xff] }
 0x167   :  { %v8281_v29 = vcombine.high %v655_v22, %v659_v23  ;;  %v703_v7 = vld [vmem:[#allocation5 + $0x1200] sm:$0xff] }
 0x168   :  { %v707_v8 = vld [vmem:[#allocation5 + $0x1220] sm:$0xff] }
 0x169   :  { %4207 = vmatpush1.bf16.msra.mxu0 %v8208_v25  ;;  %4422 = vmatpush1.bf16.msra.mxu1 %v8210_v26  ;;  %v656_v25 = vld [vmem:[#allocation5 + $0x1088] sm:$0xff]  ;;  %v715_v16 = vld [vmem:[#allocation5 + $0x1260] sm:$0xff] }
 0x16a   :  { %4208 = vmatprep.subr.bf16.mxu0 %v8217_v27  ;;  %4423 = vmatprep.subr.bf16.mxu1 %v8219_v31  ;;  %v660_v26 = vld [vmem:[#allocation5 + $0x10a8] sm:$0xff]  ;;  %v8272_v27 = vcombine.low %v647_v13, %v651_v14  ;;  %v663_v31 = vld [vmem:[#allocation5 + $0x10c0] sm:$0xff]  ;;  %v8329_v13 = vcombine.high %v703_v7, %v707_v8 }
 0x16b   :  { %v8283_v30 = vcombine.high %v656_v25, %v660_v26  ;;  %v8289_v37 = vcombine.high %v663_v31, %v667_v32 }
 0x16d   :  { %4209 = vmatpush1.bf16.msra.mxu0 %v8216_v33  ;;  %4424 = vmatpush1.bf16.msra.mxu1 %v8218_v34  ;;  %v664_v33 = vld [vmem:[#allocation5 + $0x10c8] sm:$0xff] }
 0x16e   :  { %4210 = vmatprep.subr.bf16.mxu0 %v8225_v35  ;;  %4425 = vmatprep.subr.bf16.mxu1 %v8227_v36  ;;  %v668_v34 = vld [vmem:[#allocation5 + $0x10e8] sm:$0xff]  ;;  %v8280_v35 = vcombine.low %v655_v22, %v659_v23  ;;  %v8282_v36 = vcombine.low %v656_v25, %v660_v26  ;;  %v719_v23 = vld [vmem:[#allocation5 + $0x1280] sm:$0xff] }
 0x16f   :  { %v8291_v38 = vcombine.high %v664_v33, %v668_v34  ;;  %v720_v25 = vld [vmem:[#allocation5 + $0x1288] sm:$0xff] }
 0x170   :  { %v724_v26 = vld [vmem:[#allocation5 + $0x12a8] sm:$0xff] }
 0x171   :  { %4211 = vmatpush1.bf16.msra.mxu0 %v8224_v41  ;;  %4426 = vmatpush1.bf16.msra.mxu1 %v8226_v42  ;;  %v672_v41 = vld [vmem:[#allocation5 + $0x1108] sm:$0xff] }
 0x172   :  { %4212 = vmatprep.subr.bf16.mxu0 %v8233_v43  ;;  %4427 = vmatprep.subr.bf16.mxu1 %v8235_v44  ;;  %v676_v42 = vld [vmem:[#allocation5 + $0x1128] sm:$0xff]  ;;  %v8288_v43 = vcombine.low %v663_v31, %v667_v32  ;;  %v8290_v44 = vcombine.low %v664_v33, %v668_v34  ;;  %v727_v31 = vld [vmem:[#allocation5 + $0x12c0] sm:$0xff] }
 0x173   :  { %v8299_v46 = vcombine.high %v672_v41, %v676_v42  ;;  %v731_v32 = vld [vmem:[#allocation5 + $0x12e0] sm:$0xff]  ;;  %v728_v33 = vld [vmem:[#allocation5 + $0x12c8] sm:$0xff] }
 0x174   :  { %v732_v34 = vld [vmem:[#allocation5 + $0x12e8] sm:$0xff] }
 0x175   :  { %4213 = vmatpush1.bf16.msra.mxu0 %v8232_v49  ;;  %4428 = vmatpush1.bf16.msra.mxu1 %v8234_v50  ;;  %v680_v49 = vld [vmem:[#allocation5 + $0x1148] sm:$0xff] }
 0x176   :  { %4214 = vmatprep.subr.bf16.mxu0 %v8241_v51  ;;  %4429 = vmatprep.subr.bf16.mxu1 %v8243_v52  ;;  %v684_v50 = vld [vmem:[#allocation5 + $0x1168] sm:$0xff]  ;;  %v8296_v51 = vcombine.low %v671_v39, %v675_v40  ;;  %v8298_v52 = vcombine.low %v672_v41, %v676_v42  ;;  %v735_v39 = vld [vmem:[#allocation5 + $0x1300] sm:$0xff] }
 0x177   :  { %v8307_v54 = vcombine.high %v680_v49, %v684_v50  ;;  %v739_v40 = vld [vmem:[#allocation5 + $0x1320] sm:$0xff]  ;;  %v736_v41 = vld [vmem:[#allocation5 + $0x1308] sm:$0xff] }
 0x178   :  { %v740_v42 = vld [vmem:[#allocation5 + $0x1328] sm:$0xff] }
 0x179   :  { %4215 = vmatpush1.bf16.msra.mxu0 %v8240_v57  ;;  %4430 = vmatpush1.bf16.msra.mxu1 %v8242_v58  ;;  %v688_v57 = vld [vmem:[#allocation5 + $0x1188] sm:$0xff] }
 0x17a   :  { %4216 = vmatprep.subr.bf16.mxu0 %v8249_v59  ;;  %4431 = vmatprep.subr.bf16.mxu1 %v8251_v60  ;;  %v692_v58 = vld [vmem:[#allocation5 + $0x11a8] sm:$0xff]  ;;  %v8304_v59 = vcombine.low %v679_v47, %v683_v48  ;;  %v8306_v60 = vcombine.low %v680_v49, %v684_v50  ;;  %v743_v47 = vld [vmem:[#allocation5 + $0x1340] sm:$0xff] }
 0x17b   :  { %v8315_v62 = vcombine.high %v688_v57, %v692_v58  ;;  %v747_v48 = vld [vmem:[#allocation5 + $0x1360] sm:$0xff]  ;;  %v744_v49 = vld [vmem:[#allocation5 + $0x1348] sm:$0xff] }
 0x17c   :  { %v748_v50 = vld [vmem:[#allocation5 + $0x1368] sm:$0xff] }
 0x17d   :  { %4217 = vmatpush1.bf16.msra.mxu0 %v8248_v1  ;;  %4432 = vmatpush1.bf16.msra.mxu1 %v8250_v2  ;;  %v696_v1 = vld [vmem:[#allocation5 + $0x11c8] sm:$0xff] }
 0x17e   :  { %4218 = vmatprep.subr.bf16.mxu0 %v8257_v3  ;;  %4433 = vmatprep.subr.bf16.mxu1 %v8259_v4  ;;  %v700_v2 = vld [vmem:[#allocation5 + $0x11e8] sm:$0xff]  ;;  %v8312_v3 = vcombine.low %v687_v55, %v691_v56  ;;  %v8314_v4 = vcombine.low %v688_v57, %v692_v58  ;;  %v751_v55 = vld [vmem:[#allocation5 + $0x1380] sm:$0xff] }
 0x17f   :  { %v8323_v6 = vcombine.high %v696_v1, %v700_v2  ;;  %v755_v56 = vld [vmem:[#allocation5 + $0x13a0] sm:$0xff]  ;;  %v752_v57 = vld [vmem:[#allocation5 + $0x1388] sm:$0xff] }
 0x180   :  { %v756_v58 = vld [vmem:[#allocation5 + $0x13a8] sm:$0xff] }
 0x181   :  { %4219 = vmatpush1.bf16.msra.mxu0 %v8256_v9  ;;  %4434 = vmatpush1.bf16.msra.mxu1 %v8258_v10  ;;  %v704_v9 = vld [vmem:[#allocation5 + $0x1208] sm:$0xff] }
 0x182   :  { %4231 = vmatprep.subr.bf16.mxu0 %v8265_v11  ;;  %4446 = vmatprep.subr.bf16.mxu1 %v8267_v12  ;;  %v708_v10 = vld [vmem:[#allocation5 + $0x1228] sm:$0xff]  ;;  %v8320_v11 = vcombine.low %v695_v63, %v699_v0  ;;  %v8322_v12 = vcombine.low %v696_v1, %v700_v2  ;;  %v759_v63 = vld [vmem:[#allocation5 + $0x13c0] sm:$0xff] }
 0x183   :  { %v8331_v14 = vcombine.high %v704_v9, %v708_v10  ;;  %v763_v0 = vld [vmem:[#allocation5 + $0x13e0] sm:$0xff]  ;;  %v760_v1 = vld [vmem:[#allocation5 + $0x13c8] sm:$0xff] }
 0x184   :  { %4221 = vmatmul.mubr.bf16.vlgmr.msra.gmra.mrb[0].mxu0 %v8866_v15  ;;  %4436 = vmatmul.mubr.bf16.vlgmr.msra.gmra.mrb[0].mxu1 %v8866_v15  ;;  %v711_v15 = vld [vmem:[#allocation5 + $0x1240] sm:$0xff]  ;;  %v764_v2 = vld [vmem:[#allocation5 + $0x13e8] sm:$0xff] }
 0x185   :  { %4232 = vmatpush1.bf16.msra.mxu0 %v8264_v18  ;;  %4447 = vmatpush1.bf16.msra.mxu1 %v8266_v19  ;;  %v716_v18 = vld [vmem:[#allocation5 + $0x1268] sm:$0xff]  ;;  %v8328_v19 = vcombine.low %v703_v7, %v707_v8  ;;  %v129_v7 = vld [vmem:[#allocation5 + $0x10] sm:$0xff] }
 0x186   :  { %4233 = vmatprep.subr.bf16.mxu0 %v8273_v20  ;;  %4448 = vmatprep.subr.bf16.mxu1 %v8275_v21  ;;  %v8330_v20 = vcombine.low %v704_v9, %v708_v10  ;;  %v8337_v21 = vcombine.high %v711_v15, %v715_v16  ;;  %v8339_v22 = vcombine.high %v712_v17, %v716_v18  ;;  %v133_v8 = vld [vmem:[#allocation5 + $0x30] sm:$0xff]  ;;  %v130_v9 = vld [vmem:[#allocation5 + $0x18] sm:$0xff] }
 0x187   :  { %4263 = vmatprep.mubr.bf16.mxu0 %v8867_v24  ;;  %4478 = vmatprep.mubr.bf16.mxu1 %v8867_v24  ;;  %v723_v24 = vld [vmem:[#allocation5 + $0x12a0] sm:$0xff]  ;;  %v134_v10 = vld [vmem:[#allocation5 + $0x38] sm:$0xff] }
 0x189   :  { %4234 = vmatpush1.bf16.msra.mxu0 %v8272_v27  ;;  %4449 = vmatpush1.bf16.msra.mxu1 %v8274_v28  ;;  %v8336_v27 = vcombine.low %v711_v15, %v715_v16  ;;  %v8338_v28 = vcombine.low %v712_v17, %v716_v18  ;;  %v137_v15 = vld [vmem:[#allocation5 + $0x50] sm:$0xff]  ;;  %v138_v18 = vld [vmem:[#allocation5 + $0x58] sm:$0xff] }
 0x18a   :  { %4235 = vmatprep.subr.bf16.mxu0 %v8281_v29  ;;  %4450 = vmatprep.subr.bf16.mxu1 %v8283_v30  ;;  %v8345_v29 = vcombine.high %v719_v23, %v723_v24  ;;  %v8347_v30 = vcombine.high %v720_v25, %v724_v26  ;;  %v141_v16 = vld [vmem:[#allocation5 + $0x70] sm:$0xff] }
 0x18b   :  { %v8869_v17 = vld [vmem:[#allocation2 + $0x20] ss:$40 sps:$4 sm:$0xff]  }
 0x18d   :  { %4236 = vmatpush1.bf16.msra.mxu0 %v8280_v35  ;;  %4451 = vmatpush1.bf16.msra.mxu1 %v8282_v36  ;;  %v8344_v35 = vcombine.low %v719_v23, %v723_v24  ;;  %v8346_v36 = vcombine.low %v720_v25, %v724_v26  ;;  %v145_v24 = vld [vmem:[#allocation5 + $0x90] sm:$0xff]  ;;  %v146_v26 = vld [vmem:[#allocation5 + $0x98] sm:$0xff] }
 0x18e   :  { %4237 = vmatprep.subr.bf16.mxu0 %v8289_v37  ;;  %4452 = vmatprep.subr.bf16.mxu1 %v8291_v38  ;;  %v8353_v37 = vcombine.high %v727_v31, %v731_v32  ;;  %v8355_v38 = vcombine.high %v728_v33, %v732_v34  ;;  %v149_v25 = vld [vmem:[#allocation5 + $0xb0] sm:$0xff] }
 0x191   :  { %4238 = vmatpush1.bf16.msra.mxu0 %v8288_v43  ;;  %4453 = vmatpush1.bf16.msra.mxu1 %v8290_v44  ;;  %v8352_v43 = vcombine.low %v727_v31, %v731_v32  ;;  %v8354_v44 = vcombine.low %v728_v33, %v732_v34  ;;  %v153_v32 = vld [vmem:[#allocation5 + $0xd0] sm:$0xff] }
 0x192   :  { %4239 = vmatprep.subr.bf16.mxu0 %v8297_v45  ;;  %4454 = vmatprep.subr.bf16.mxu1 %v8299_v46  ;;  %v8361_v45 = vcombine.high %v735_v39, %v739_v40  ;;  %v8363_v46 = vcombine.high %v736_v41, %v740_v42  ;;  %v157_v33 = vld [vmem:[#allocation5 + $0xf0] sm:$0xff] }
 0x193   :  { %v9342_v34 = vld [vmem:[#allocation2 + $0x4] ss:$40 sps:$4 sm:$0xff]  }
 0x195   :  { %4240 = vmatpush1.bf16.msra.mxu0 %v8296_v51  ;;  %4455 = vmatpush1.bf16.msra.mxu1 %v8298_v52  ;;  %v8360_v51 = vcombine.low %v735_v39, %v739_v40  ;;  %v8362_v52 = vcombine.low %v736_v41, %v740_v42  ;;  %v7781_v39 = vcombine.high %v153_v32, %v157_v33  ;;  %v161_v41 = vld [vmem:[#allocation5 + $0x110] sm:$0xff] }
 0x196   :  { %4241 = vmatprep.subr.bf16.mxu0 %v8305_v53  ;;  %4456 = vmatprep.subr.bf16.mxu1 %v8307_v54  ;;  %v8369_v53 = vcombine.high %v743_v47, %v747_v48  ;;  %v8371_v54 = vcombine.high %v744_v49, %v748_v50  ;;  %v165_v42 = vld [vmem:[#allocation5 + $0x130] sm:$0xff] }
 0x199   :  { %4242 = vmatpush1.bf16.msra.mxu0 %v8304_v59  ;;  %4457 = vmatpush1.bf16.msra.mxu1 %v8306_v60  ;;  %v8368_v59 = vcombine.low %v743_v47, %v747_v48  ;;  %v8370_v60 = vcombine.low %v744_v49, %v748_v50  ;;  %v7789_v47 = vcombine.high %v161_v41, %v165_v42  ;;  %v169_v49 = vld [vmem:[#allocation5 + $0x150] sm:$0xff] }
 0x19a   :  { %4243 = vmatprep.subr.bf16.mxu0 %v8313_v61  ;;  %4458 = vmatprep.subr.bf16.mxu1 %v8315_v62  ;;  %v8377_v61 = vcombine.high %v751_v55, %v755_v56  ;;  %v8379_v62 = vcombine.high %v752_v57, %v756_v58  ;;  %v173_v50 = vld [vmem:[#allocation5 + $0x170] sm:$0xff] }
 0x19d   :  { %4244 = vmatpush1.bf16.msra.mxu0 %v8312_v3  ;;  %4459 = vmatpush1.bf16.msra.mxu1 %v8314_v4  ;;  %v8376_v3 = vcombine.low %v751_v55, %v755_v56  ;;  %v8378_v4 = vcombine.low %v752_v57, %v756_v58  ;;  %v7797_v55 = vcombine.high %v169_v49, %v173_v50  ;;  %v177_v57 = vld [vmem:[#allocation5 + $0x190] sm:$0xff] }
 0x19e   :  { %4245 = vmatprep.subr.bf16.mxu0 %v8321_v5  ;;  %4460 = vmatprep.subr.bf16.mxu1 %v8323_v6  ;;  %v8385_v5 = vcombine.high %v759_v63, %v763_v0  ;;  %v8387_v6 = vcombine.high %v760_v1, %v764_v2  ;;  %v181_v58 = vld [vmem:[#allocation5 + $0x1b0] sm:$0xff] }
 0x1a1   :  { %4246 = vmatpush1.bf16.msra.mxu0 %v8320_v11  ;;  %4461 = vmatpush1.bf16.msra.mxu1 %v8322_v12  ;;  %v8384_v11 = vcombine.low %v759_v63, %v763_v0  ;;  %v8386_v12 = vcombine.low %v760_v1, %v764_v2  ;;  %v7805_v63 = vcombine.high %v177_v57, %v181_v58  ;;  %v185_v1 = vld [vmem:[#allocation5 + $0x1d0] sm:$0xff] }
 0x1a2   :  { %4247 = vmatprep.subr.bf16.mxu0 %v8329_v13  ;;  %4462 = vmatprep.subr.bf16.mxu1 %v8331_v14  ;;  %v7757_v13 = vcombine.high %v129_v7, %v133_v8  ;;  %v7759_v14 = vcombine.high %v130_v9, %v134_v10  ;;  %v189_v2 = vld [vmem:[#allocation5 + $0x1f0] sm:$0xff] }
 0x1a5   :  { %4248 = vmatpush1.bf16.msra.mxu0 %v8328_v19  ;;  %4463 = vmatpush1.bf16.msra.mxu1 %v8330_v20  ;;  %v142_v19 = vld [vmem:[#allocation5 + $0x78] sm:$0xff]  ;;  %v7756_v20 = vcombine.low %v129_v7, %v133_v8  ;;  %v7813_v7 = vcombine.high %v185_v1, %v189_v2 }
 0x1a6   :  { %4249 = vmatprep.subr.bf16.mxu0 %v8337_v21  ;;  %4464 = vmatprep.subr.bf16.mxu1 %v8339_v22  ;;  %v7758_v21 = vcombine.low %v130_v9, %v134_v10  ;;  %v7765_v22 = vcombine.high %v137_v15, %v141_v16  ;;  %v7767_v23 = vcombine.high %v138_v18, %v142_v19  ;;  %v193_v9 = vld [vmem:[#allocation5 + $0x210] sm:$0xff] }
 0x1a7   :  { %v197_v10 = vld [vmem:[#allocation5 + $0x230] sm:$0xff] }
 0x1a9   :  { %4250 = vmatpush1.bf16.msra.mxu0 %v8336_v27  ;;  %4465 = vmatpush1.bf16.msra.mxu1 %v8338_v28  ;;  %v150_v27 = vld [vmem:[#allocation5 + $0xb8] sm:$0xff]  ;;  %v7764_v28 = vcombine.low %v137_v15, %v141_v16  ;;  %v7821_v15 = vcombine.high %v193_v9, %v197_v10 }
 0x1aa   :  { %4251 = vmatprep.subr.bf16.mxu0 %v8345_v29  ;;  %4466 = vmatprep.subr.bf16.mxu1 %v8347_v30  ;;  %v7766_v29 = vcombine.low %v138_v18, %v142_v19  ;;  %v7773_v30 = vcombine.high %v145_v24, %v149_v25  ;;  %v7775_v31 = vcombine.high %v146_v26, %v150_v27  ;;  %v205_v18 = vld [vmem:[#allocation5 + $0x270] sm:$0xff]  ;;  %v202_v19 = vld [vmem:[#allocation5 + $0x258] sm:$0xff] }
 0x1ad   :  { %4252 = vmatpush1.bf16.msra.mxu0 %v8344_v35  ;;  %4467 = vmatpush1.bf16.msra.mxu1 %v8346_v36  ;;  %v154_v35 = vld [vmem:[#allocation5 + $0xd8] sm:$0xff] }
 0x1ae   :  { %4253 = vmatprep.subr.bf16.mxu0 %v8353_v37  ;;  %4468 = vmatprep.subr.bf16.mxu1 %v8355_v38  ;;  %v158_v36 = vld [vmem:[#allocation5 + $0xf8] sm:$0xff]  ;;  %v7772_v37 = vcombine.low %v145_v24, %v149_v25  ;;  %v7774_v38 = vcombine.low %v146_v26, %v150_v27  ;;  %v209_v25 = vld [vmem:[#allocation5 + $0x290] sm:$0xff] }
 0x1af   :  { %v7783_v40 = vcombine.high %v154_v35, %v158_v36  ;;  %v213_v26 = vld [vmem:[#allocation5 + $0x2b0] sm:$0xff]  ;;  %v210_v27 = vld [vmem:[#allocation5 + $0x298] sm:$0xff] }
 0x1b1   :  { %4254 = vmatpush1.bf16.msra.mxu0 %v8352_v43  ;;  %4469 = vmatpush1.bf16.msra.mxu1 %v8354_v44  ;;  %v162_v43 = vld [vmem:[#allocation5 + $0x118] sm:$0xff] }
 0x1b2   :  { %4255 = vmatprep.subr.bf16.mxu0 %v8361_v45  ;;  %4470 = vmatprep.subr.bf16.mxu1 %v8363_v46  ;;  %v166_v44 = vld [vmem:[#allocation5 + $0x138] sm:$0xff]  ;;  %v7780_v45 = vcombine.low %v153_v32, %v157_v33  ;;  %v7782_v46 = vcombine.low %v154_v35, %v158_v36  ;;  %v217_v33 = vld [vmem:[#allocation5 + $0x2d0] sm:$0xff] }
 0x1b3   :  { %v7791_v48 = vcombine.high %v162_v43, %v166_v44  ;;  %v218_v35 = vld [vmem:[#allocation5 + $0x2d8] sm:$0xff] }
 0x1b4   :  { %v222_v36 = vld [vmem:[#allocation5 + $0x2f8] sm:$0xff] }
 0x1b5   :  { %4256 = vmatpush1.bf16.msra.mxu0 %v8360_v51  ;;  %4471 = vmatpush1.bf16.msra.mxu1 %v8362_v52  ;;  %v170_v51 = vld [vmem:[#allocation5 + $0x158] sm:$0xff] }
 0x1b6   :  { %4257 = vmatprep.subr.bf16.mxu0 %v8369_v53  ;;  %4472 = vmatprep.subr.bf16.mxu1 %v8371_v54  ;;  %v174_v52 = vld [vmem:[#allocation5 + $0x178] sm:$0xff]  ;;  %v7788_v53 = vcombine.low %v161_v41, %v165_v42  ;;  %v7790_v54 = vcombine.low %v162_v43, %v166_v44  ;;  %v225_v41 = vld [vmem:[#allocation5 + $0x310] sm:$0xff] }
 0x1b7   :  { %v7799_v56 = vcombine.high %v170_v51, %v174_v52  ;;  %v229_v42 = vld [vmem:[#allocation5 + $0x330] sm:$0xff]  ;;  %v226_v43 = vld [vmem:[#allocation5 + $0x318] sm:$0xff] }
 0x1b8   :  { %v230_v44 = vld [vmem:[#allocation5 + $0x338] sm:$0xff] }
 0x1b9   :  { %4258 = vmatpush1.bf16.msra.mxu0 %v8368_v59  ;;  %4473 = vmatpush1.bf16.msra.mxu1 %v8370_v60  ;;  %v178_v59 = vld [vmem:[#allocation5 + $0x198] sm:$0xff] }
 0x1ba   :  { %4259 = vmatprep.subr.bf16.mxu0 %v8377_v61  ;;  %4474 = vmatprep.subr.bf16.mxu1 %v8379_v62  ;;  %v182_v60 = vld [vmem:[#allocation5 + $0x1b8] sm:$0xff]  ;;  %v7796_v61 = vcombine.low %v169_v49, %v173_v50  ;;  %v7798_v62 = vcombine.low %v170_v51, %v174_v52  ;;  %v233_v49 = vld [vmem:[#allocation5 + $0x350] sm:$0xff] }
 0x1bb   :  { %v7807_v0 = vcombine.high %v178_v59, %v182_v60  ;;  %v237_v50 = vld [vmem:[#allocation5 + $0x370] sm:$0xff]  ;;  %v234_v51 = vld [vmem:[#allocation5 + $0x358] sm:$0xff] }
 0x1bc   :  { %v238_v52 = vld [vmem:[#allocation5 + $0x378] sm:$0xff] }
 0x1bd   :  { %4260 = vmatpush1.bf16.msra.mxu0 %v8376_v3  ;;  %4475 = vmatpush1.bf16.msra.mxu1 %v8378_v4  ;;  %v186_v3 = vld [vmem:[#allocation5 + $0x1d8] sm:$0xff] }
 0x1be   :  { %4261 = vmatprep.subr.bf16.mxu0 %v8385_v5  ;;  %4476 = vmatprep.subr.bf16.mxu1 %v8387_v6  ;;  %v190_v4 = vld [vmem:[#allocation5 + $0x1f8] sm:$0xff]  ;;  %v7804_v5 = vcombine.low %v177_v57, %v181_v58  ;;  %v7806_v6 = vcombine.low %v178_v59, %v182_v60  ;;  %v241_v57 = vld [vmem:[#allocation5 + $0x390] sm:$0xff] }
 0x1bf   :  { %v7815_v8 = vcombine.high %v186_v3, %v190_v4  ;;  %v245_v58 = vld [vmem:[#allocation5 + $0x3b0] sm:$0xff]  ;;  %v242_v59 = vld [vmem:[#allocation5 + $0x398] sm:$0xff] }
 0x1c0   :  { %v246_v60 = vld [vmem:[#allocation5 + $0x3b8] sm:$0xff] }
 0x1c1   :  { %4262 = vmatpush1.bf16.msra.mxu0 %v8384_v11  ;;  %4477 = vmatpush1.bf16.msra.mxu1 %v8386_v12  ;;  %v194_v11 = vld [vmem:[#allocation5 + $0x218] sm:$0xff] }
 0x1c2   :  { %4489 = vmatprep.subr.bf16.mxu0 %v7757_v13  ;;  %4704 = vmatprep.subr.bf16.mxu1 %v7759_v14  ;;  %v198_v12 = vld [vmem:[#allocation5 + $0x238] sm:$0xff]  ;;  %v7812_v13 = vcombine.low %v185_v1, %v189_v2  ;;  %v7814_v14 = vcombine.low %v186_v3, %v190_v4  ;;  %v249_v1 = vld [vmem:[#allocation5 + $0x3d0] sm:$0xff] }
 0x1c3   :  { %v7823_v16 = vcombine.high %v194_v11, %v198_v12  ;;  %v253_v2 = vld [vmem:[#allocation5 + $0x3f0] sm:$0xff]  ;;  %v250_v3 = vld [vmem:[#allocation5 + $0x3d8] sm:$0xff] }
 0x1c4   :  { %4264 = vmatmul.mubr.bf16.vlgmr.msra.gmra.mrb[0].mxu0 %v8869_v17  ;;  %4479 = vmatmul.mubr.bf16.vlgmr.msra.gmra.mrb[0].mxu1 %v8869_v17  ;;  %v201_v17 = vld [vmem:[#allocation5 + $0x250] sm:$0xff]  ;;  %v254_v4 = vld [vmem:[#allocation5 + $0x3f8] sm:$0xff] }
 0x1c5   :  { %4490 = vmatpush1.bf16.msra.mxu0 %v7756_v20  ;;  %4705 = vmatpush1.bf16.msra.mxu1 %v7758_v21  ;;  %v206_v20 = vld [vmem:[#allocation5 + $0x278] sm:$0xff]  ;;  %v7820_v21 = vcombine.low %v193_v9, %v197_v10  ;;  %v257_v9 = vld [vmem:[#allocation5 + $0x410] sm:$0xff] }
 0x1c6   :  { %4491 = vmatprep.subr.bf16.mxu0 %v7765_v22  ;;  %4706 = vmatprep.subr.bf16.mxu1 %v7767_v23  ;;  %v7822_v22 = vcombine.low %v194_v11, %v198_v12  ;;  %v7829_v23 = vcombine.high %v201_v17, %v205_v18  ;;  %v7831_v24 = vcombine.high %v202_v19, %v206_v20  ;;  %v261_v10 = vld [vmem:[#allocation5 + $0x430] sm:$0xff]  ;;  %v258_v11 = vld [vmem:[#allocation5 + $0x418] sm:$0xff] }
 0x1c7   :  { %4521 = vmatprep.mubr.bf16.mxu0 %v9342_v34  ;;  %4736 = vmatprep.mubr.bf16.mxu1 %v9342_v34  ;;  %v221_v34 = vld [vmem:[#allocation5 + $0x2f0] sm:$0xff]  ;;  %v262_v12 = vld [vmem:[#allocation5 + $0x438] sm:$0xff] }
 0x1c9   :  { %4492 = vmatpush1.bf16.msra.mxu0 %v7764_v28  ;;  %4707 = vmatpush1.bf16.msra.mxu1 %v7766_v29  ;;  %v214_v28 = vld [vmem:[#allocation5 + $0x2b8] sm:$0xff]  ;;  %v7828_v29 = vcombine.low %v201_v17, %v205_v18  ;;  %v265_v17 = vld [vmem:[#allocation5 + $0x450] sm:$0xff] }
 0x1ca   :  { %4493 = vmatprep.subr.bf16.mxu0 %v7773_v30  ;;  %4708 = vmatprep.subr.bf16.mxu1 %v7775_v31  ;;  %v7830_v30 = vcombine.low %v202_v19, %v206_v20  ;;  %v7837_v31 = vcombine.high %v209_v25, %v213_v26  ;;  %v7839_v32 = vcombine.high %v210_v27, %v214_v28  ;;  %v269_v18 = vld [vmem:[#allocation5 + $0x470] sm:$0xff]  ;;  %v266_v19 = vld [vmem:[#allocation5 + $0x458] sm:$0xff] }
 0x1cb   :  { %v270_v20 = vld [vmem:[#allocation5 + $0x478] sm:$0xff] }
 0x1cd   :  { %4494 = vmatpush1.bf16.msra.mxu0 %v7772_v37  ;;  %4709 = vmatpush1.bf16.msra.mxu1 %v7774_v38  ;;  %v7836_v37 = vcombine.low %v209_v25, %v213_v26  ;;  %v7838_v38 = vcombine.low %v210_v27, %v214_v28  ;;  %v273_v25 = vld [vmem:[#allocation5 + $0x490] sm:$0xff]  ;;  %v274_v28 = vld [vmem:[#allocation5 + $0x498] sm:$0xff] }
 0x1ce   :  { %4495 = vmatprep.subr.bf16.mxu0 %v7781_v39  ;;  %4710 = vmatprep.subr.bf16.mxu1 %v7783_v40  ;;  %v7845_v39 = vcombine.high %v217_v33, %v221_v34  ;;  %v7847_v40 = vcombine.high %v218_v35, %v222_v36  ;;  %v277_v26 = vld [vmem:[#allocation5 + $0x4b0] sm:$0xff] }
 0x1cf   :  { %v9343_v27 = vld [vmem:[#allocation2] ss:$40 sps:$4 sm:$0xff]  }
 0x1d1   :  { %4496 = vmatpush1.bf16.msra.mxu0 %v7780_v45  ;;  %4711 = vmatpush1.bf16.msra.mxu1 %v7782_v46  ;;  %v7844_v45 = vcombine.low %v217_v33, %v221_v34  ;;  %v7846_v46 = vcombine.low %v218_v35, %v222_v36  ;;  %v281_v34 = vld [vmem:[#allocation5 + $0x4d0] sm:$0xff]  ;;  %v9344_v36 = vld [vmem:[#allocation2 + $0xc] ss:$40 sps:$4 sm:$0xff]  }
 0x1d2   :  { %4497 = vmatprep.subr.bf16.mxu0 %v7789_v47  ;;  %4712 = vmatprep.subr.bf16.mxu1 %v7791_v48  ;;  %v7853_v47 = vcombine.high %v225_v41, %v229_v42  ;;  %v7855_v48 = vcombine.high %v226_v43, %v230_v44  ;;  %v285_v35 = vld [vmem:[#allocation5 + $0x4f0] sm:$0xff] }
 0x1d5   :  { %4498 = vmatpush1.bf16.msra.mxu0 %v7788_v53  ;;  %4713 = vmatpush1.bf16.msra.mxu1 %v7790_v54  ;;  %v7852_v53 = vcombine.low %v225_v41, %v229_v42  ;;  %v7854_v54 = vcombine.low %v226_v43, %v230_v44  ;;  %v7909_v41 = vcombine.high %v281_v34, %v285_v35  ;;  %v289_v43 = vld [vmem:[#allocation5 + $0x510] sm:$0xff] }
 0x1d6   :  { %4499 = vmatprep.subr.bf16.mxu0 %v7797_v55  ;;  %4714 = vmatprep.subr.bf16.mxu1 %v7799_v56  ;;  %v7861_v55 = vcombine.high %v233_v49, %v237_v50  ;;  %v7863_v56 = vcombine.high %v234_v51, %v238_v52  ;;  %v293_v44 = vld [vmem:[#allocation5 + $0x530] sm:$0xff] }
 0x1d9   :  { %4500 = vmatpush1.bf16.msra.mxu0 %v7796_v61  ;;  %4715 = vmatpush1.bf16.msra.mxu1 %v7798_v62  ;;  %v7860_v61 = vcombine.low %v233_v49, %v237_v50  ;;  %v7862_v62 = vcombine.low %v234_v51, %v238_v52  ;;  %v7917_v49 = vcombine.high %v289_v43, %v293_v44  ;;  %v297_v51 = vld [vmem:[#allocation5 + $0x550] sm:$0xff] }
 0x1da   :  { %4501 = vmatprep.subr.bf16.mxu0 %v7805_v63  ;;  %4716 = vmatprep.subr.bf16.mxu1 %v7807_v0  ;;  %v7869_v63 = vcombine.high %v241_v57, %v245_v58  ;;  %v7871_v0 = vcombine.high %v242_v59, %v246_v60  ;;  %v301_v52 = vld [vmem:[#allocation5 + $0x570] sm:$0xff] }
 0x1dd   :  { %4502 = vmatpush1.bf16.msra.mxu0 %v7804_v5  ;;  %4717 = vmatpush1.bf16.msra.mxu1 %v7806_v6  ;;  %v7868_v5 = vcombine.low %v241_v57, %v245_v58  ;;  %v7870_v6 = vcombine.low %v242_v59, %v246_v60  ;;  %v7925_v57 = vcombine.high %v297_v51, %v301_v52  ;;  %v305_v59 = vld [vmem:[#allocation5 + $0x590] sm:$0xff] }
 0x1de   :  { %4503 = vmatprep.subr.bf16.mxu0 %v7813_v7  ;;  %4718 = vmatprep.subr.bf16.mxu1 %v7815_v8  ;;  %v7877_v7 = vcombine.high %v249_v1, %v253_v2  ;;  %v7879_v8 = vcombine.high %v250_v3, %v254_v4  ;;  %v309_v60 = vld [vmem:[#allocation5 + $0x5b0] sm:$0xff] }
 0x1e1   :  { %4504 = vmatpush1.bf16.msra.mxu0 %v7812_v13  ;;  %4719 = vmatpush1.bf16.msra.mxu1 %v7814_v14  ;;  %v7876_v13 = vcombine.low %v249_v1, %v253_v2  ;;  %v7878_v14 = vcombine.low %v250_v3, %v254_v4  ;;  %v7933_v1 = vcombine.high %v305_v59, %v309_v60  ;;  %v313_v3 = vld [vmem:[#allocation5 + $0x5d0] sm:$0xff] }
 0x1e2   :  { %4505 = vmatprep.subr.bf16.mxu0 %v7821_v15  ;;  %4720 = vmatprep.subr.bf16.mxu1 %v7823_v16  ;;  %v7885_v15 = vcombine.high %v257_v9, %v261_v10  ;;  %v7887_v16 = vcombine.high %v258_v11, %v262_v12  ;;  %v317_v4 = vld [vmem:[#allocation5 + $0x5f0] sm:$0xff] }
 0x1e5   :  { %4506 = vmatpush1.bf16.msra.mxu0 %v7820_v21  ;;  %4721 = vmatpush1.bf16.msra.mxu1 %v7822_v22  ;;  %v7884_v21 = vcombine.low %v257_v9, %v261_v10  ;;  %v7886_v22 = vcombine.low %v258_v11, %v262_v12  ;;  %v7941_v9 = vcombine.high %v313_v3, %v317_v4  ;;  %v321_v11 = vld [vmem:[#allocation5 + $0x610] sm:$0xff] }
 0x1e6   :  { %4507 = vmatprep.subr.bf16.mxu0 %v7829_v23  ;;  %4722 = vmatprep.subr.bf16.mxu1 %v7831_v24  ;;  %v7893_v23 = vcombine.high %v265_v17, %v269_v18  ;;  %v7895_v24 = vcombine.high %v266_v19, %v270_v20  ;;  %v325_v12 = vld [vmem:[#allocation5 + $0x630] sm:$0xff] }
 0x1e9   :  { %4508 = vmatpush1.bf16.msra.mxu0 %v7828_v29  ;;  %4723 = vmatpush1.bf16.msra.mxu1 %v7830_v30  ;;  %v278_v29 = vld [vmem:[#allocation5 + $0x4b8] sm:$0xff]  ;;  %v7892_v30 = vcombine.low %v265_v17, %v269_v18  ;;  %v7949_v17 = vcombine.high %v321_v11, %v325_v12 }
 0x1ea   :  { %4509 = vmatprep.subr.bf16.mxu0 %v7837_v31  ;;  %4724 = vmatprep.subr.bf16.mxu1 %v7839_v32  ;;  %v7894_v31 = vcombine.low %v266_v19, %v270_v20  ;;  %v7901_v32 = vcombine.high %v273_v25, %v277_v26  ;;  %v7903_v33 = vcombine.high %v274_v28, %v278_v29  ;;  %v329_v19 = vld [vmem:[#allocation5 + $0x650] sm:$0xff] }
 0x1eb   :  { %v333_v20 = vld [vmem:[#allocation5 + $0x670] sm:$0xff] }
 0x1ed   :  { %4510 = vmatpush1.bf16.msra.mxu0 %v7836_v37  ;;  %4725 = vmatpush1.bf16.msra.mxu1 %v7838_v38  ;;  %v282_v37 = vld [vmem:[#allocation5 + $0x4d8] sm:$0xff] }
 0x1ee   :  { %4511 = vmatprep.subr.bf16.mxu0 %v7845_v39  ;;  %4726 = vmatprep.subr.bf16.mxu1 %v7847_v40  ;;  %v286_v38 = vld [vmem:[#allocation5 + $0x4f8] sm:$0xff]  ;;  %v7900_v39 = vcombine.low %v273_v25, %v277_v26  ;;  %v7902_v40 = vcombine.low %v274_v28, %v278_v29  ;;  %v7957_v25 = vcombine.high %v329_v19, %v333_v20  ;;  %v341_v28 = vld [vmem:[#allocation5 + $0x6b0] sm:$0xff] }
 0x1ef   :  { %v7911_v42 = vcombine.high %v282_v37, %v286_v38  ;;  %v338_v29 = vld [vmem:[#allocation5 + $0x698] sm:$0xff] }
 0x1f1   :  { %4512 = vmatpush1.bf16.msra.mxu0 %v7844_v45  ;;  %4727 = vmatpush1.bf16.msra.mxu1 %v7846_v46  ;;  %v290_v45 = vld [vmem:[#allocation5 + $0x518] sm:$0xff] }
 0x1f2   :  { %4513 = vmatprep.subr.bf16.mxu0 %v7853_v47  ;;  %4728 = vmatprep.subr.bf16.mxu1 %v7855_v48  ;;  %v294_v46 = vld [vmem:[#allocation5 + $0x538] sm:$0xff]  ;;  %v7908_v47 = vcombine.low %v281_v34, %v285_v35  ;;  %v7910_v48 = vcombine.low %v282_v37, %v286_v38  ;;  %v345_v35 = vld [vmem:[#allocation5 + $0x6d0] sm:$0xff] }
 0x1f3   :  { %v7919_v50 = vcombine.high %v290_v45, %v294_v46  ;;  %v346_v37 = vld [vmem:[#allocation5 + $0x6d8] sm:$0xff] }
 0x1f4   :  { %v350_v38 = vld [vmem:[#allocation5 + $0x6f8] sm:$0xff] }
 0x1f5   :  { %4514 = vmatpush1.bf16.msra.mxu0 %v7852_v53  ;;  %4729 = vmatpush1.bf16.msra.mxu1 %v7854_v54  ;;  %v298_v53 = vld [vmem:[#allocation5 + $0x558] sm:$0xff] }
 0x1f6   :  { %4515 = vmatprep.subr.bf16.mxu0 %v7861_v55  ;;  %4730 = vmatprep.subr.bf16.mxu1 %v7863_v56  ;;  %v302_v54 = vld [vmem:[#allocation5 + $0x578] sm:$0xff]  ;;  %v7916_v55 = vcombine.low %v289_v43, %v293_v44  ;;  %v7918_v56 = vcombine.low %v290_v45, %v294_v46  ;;  %v353_v43 = vld [vmem:[#allocation5 + $0x710] sm:$0xff] }
 0x1f7   :  { %v7927_v58 = vcombine.high %v298_v53, %v302_v54  ;;  %v357_v44 = vld [vmem:[#allocation5 + $0x730] sm:$0xff]  ;;  %v354_v45 = vld [vmem:[#allocation5 + $0x718] sm:$0xff] }
 0x1f8   :  { %v358_v46 = vld [vmem:[#allocation5 + $0x738] sm:$0xff] }
 0x1f9   :  { %4516 = vmatpush1.bf16.msra.mxu0 %v7860_v61  ;;  %4731 = vmatpush1.bf16.msra.mxu1 %v7862_v62  ;;  %v306_v61 = vld [vmem:[#allocation5 + $0x598] sm:$0xff] }
 0x1fa   :  { %4517 = vmatprep.subr.bf16.mxu0 %v7869_v63  ;;  %4732 = vmatprep.subr.bf16.mxu1 %v7871_v0  ;;  %v310_v62 = vld [vmem:[#allocation5 + $0x5b8] sm:$0xff]  ;;  %v7924_v63 = vcombine.low %v297_v51, %v301_v52  ;;  %v7926_v0 = vcombine.low %v298_v53, %v302_v54  ;;  %v361_v51 = vld [vmem:[#allocation5 + $0x750] sm:$0xff] }
 0x1fb   :  { %v7935_v2 = vcombine.high %v306_v61, %v310_v62  ;;  %v365_v52 = vld [vmem:[#allocation5 + $0x770] sm:$0xff]  ;;  %v362_v53 = vld [vmem:[#allocation5 + $0x758] sm:$0xff] }
 0x1fc   :  { %v366_v54 = vld [vmem:[#allocation5 + $0x778] sm:$0xff] }
 0x1fd   :  { %4518 = vmatpush1.bf16.msra.mxu0 %v7868_v5  ;;  %4733 = vmatpush1.bf16.msra.mxu1 %v7870_v6  ;;  %v314_v5 = vld [vmem:[#allocation5 + $0x5d8] sm:$0xff] }
 0x1fe   :  { %4519 = vmatprep.subr.bf16.mxu0 %v7877_v7  ;;  %4734 = vmatprep.subr.bf16.mxu1 %v7879_v8  ;;  %v318_v6 = vld [vmem:[#allocation5 + $0x5f8] sm:$0xff]  ;;  %v7932_v7 = vcombine.low %v305_v59, %v309_v60  ;;  %v7934_v8 = vcombine.low %v306_v61, %v310_v62  ;;  %v369_v59 = vld [vmem:[#allocation5 + $0x790] sm:$0xff] }
 0x1ff   :  { %v7943_v10 = vcombine.high %v314_v5, %v318_v6  ;;  %v373_v60 = vld [vmem:[#allocation5 + $0x7b0] sm:$0xff]  ;;  %v370_v61 = vld [vmem:[#allocation5 + $0x798] sm:$0xff] }
 0x200   :  { %v374_v62 = vld [vmem:[#allocation5 + $0x7b8] sm:$0xff] }
 0x201   :  { %4520 = vmatpush1.bf16.msra.mxu0 %v7876_v13  ;;  %4735 = vmatpush1.bf16.msra.mxu1 %v7878_v14  ;;  %v322_v13 = vld [vmem:[#allocation5 + $0x618] sm:$0xff] }
 0x202   :  { %4532 = vmatprep.subr.bf16.mxu0 %v7885_v15  ;;  %4747 = vmatprep.subr.bf16.mxu1 %v7887_v16  ;;  %v326_v14 = vld [vmem:[#allocation5 + $0x638] sm:$0xff]  ;;  %v7940_v15 = vcombine.low %v313_v3, %v317_v4  ;;  %v7942_v16 = vcombine.low %v314_v5, %v318_v6  ;;  %v377_v3 = vld [vmem:[#allocation5 + $0x7d0] sm:$0xff] }
 0x203   :  { %v7951_v18 = vcombine.high %v322_v13, %v326_v14  ;;  %v381_v4 = vld [vmem:[#allocation5 + $0x7f0] sm:$0xff]  ;;  %v378_v5 = vld [vmem:[#allocation5 + $0x7d8] sm:$0xff] }
 0x204   :  { %4522 = vmatmul.mubr.bf16.vlgmr.msra.gmra.mrb[4].mxu0 %v9343_v27  ;;  %4737 = vmatmul.mubr.bf16.vlgmr.msra.gmra.mrb[4].mxu1 %v9343_v27  ;;  %v337_v27 = vld [vmem:[#allocation5 + $0x690] sm:$0xff]  ;;  %v382_v6 = vld [vmem:[#allocation5 + $0x7f8] sm:$0xff] }
 0x205   :  { %4533 = vmatpush1.bf16.msra.mxu0 %v7884_v21  ;;  %4748 = vmatpush1.bf16.msra.mxu1 %v7886_v22  ;;  %v330_v21 = vld [vmem:[#allocation5 + $0x658] sm:$0xff] }
 0x206   :  { %4534 = vmatprep.subr.bf16.mxu0 %v7893_v23  ;;  %4749 = vmatprep.subr.bf16.mxu1 %v7895_v24  ;;  %v334_v22 = vld [vmem:[#allocation5 + $0x678] sm:$0xff]  ;;  %v7948_v23 = vcombine.low %v321_v11, %v325_v12  ;;  %v7950_v24 = vcombine.low %v322_v13, %v326_v14  ;;  %v385_v11 = vld [vmem:[#allocation5 + $0x810] sm:$0xff] }
 0x207   :  { %4564 = vmatprep.mubr.bf16.mxu0 %v9344_v36  ;;  %4779 = vmatprep.mubr.bf16.mxu1 %v9344_v36  ;;  %v7959_v26 = vcombine.high %v330_v21, %v334_v22  ;;  %v349_v36 = vld [vmem:[#allocation5 + $0x6f0] sm:$0xff]  ;;  %v386_v13 = vld [vmem:[#allocation5 + $0x818] sm:$0xff] }
 0x208   :  { %v389_v12 = vld [vmem:[#allocation5 + $0x830] sm:$0xff]  ;;  %v390_v14 = vld [vmem:[#allocation5 + $0x838] sm:$0xff] }
 0x209   :  { %4535 = vmatpush1.bf16.msra.mxu0 %v7892_v30  ;;  %4750 = vmatpush1.bf16.msra.mxu1 %v7894_v31  ;;  %v342_v30 = vld [vmem:[#allocation5 + $0x6b8] sm:$0xff]  ;;  %v7956_v31 = vcombine.low %v329_v19, %v333_v20  ;;  %v393_v19 = vld [vmem:[#allocation5 + $0x850] sm:$0xff] }
 0x20a   :  { %4536 = vmatprep.subr.bf16.mxu0 %v7901_v32  ;;  %4751 = vmatprep.subr.bf16.mxu1 %v7903_v33  ;;  %v7958_v32 = vcombine.low %v330_v21, %v334_v22  ;;  %v7965_v33 = vcombine.high %v337_v27, %v341_v28  ;;  %v7967_v34 = vcombine.high %v338_v29, %v342_v30  ;;  %v397_v20 = vld [vmem:[#allocation5 + $0x870] sm:$0xff]  ;;  %v394_v21 = vld [vmem:[#allocation5 + $0x858] sm:$0xff] }
 0x20b   :  { %v398_v22 = vld [vmem:[#allocation5 + $0x878] sm:$0xff] }
 0x20d   :  { %4537 = vmatpush1.bf16.msra.mxu0 %v7900_v39  ;;  %4752 = vmatpush1.bf16.msra.mxu1 %v7902_v40  ;;  %v7964_v39 = vcombine.low %v337_v27, %v341_v28  ;;  %v7966_v40 = vcombine.low %v338_v29, %v342_v30  ;;  %v401_v27 = vld [vmem:[#allocation5 + $0x890] sm:$0xff]  ;;  %v9345_v29 = vld [vmem:[#allocation2 + $0x8] ss:$40 sps:$4 sm:$0xff]  }
 0x20e   :  { %4538 = vmatprep.subr.bf16.mxu0 %v7909_v41  ;;  %4753 = vmatprep.subr.bf16.mxu1 %v7911_v42  ;;  %v7973_v41 = vcombine.high %v345_v35, %v349_v36  ;;  %v7975_v42 = vcombine.high %v346_v37, %v350_v38  ;;  %v405_v28 = vld [vmem:[#allocation5 + $0x8b0] sm:$0xff]  ;;  %v402_v30 = vld [vmem:[#allocation5 + $0x898] sm:$0xff] }
 0x211   :  { %4539 = vmatpush1.bf16.msra.mxu0 %v7908_v47  ;;  %4754 = vmatpush1.bf16.msra.mxu1 %v7910_v48  ;;  %v7972_v47 = vcombine.low %v345_v35, %v349_v36  ;;  %v7974_v48 = vcombine.low %v346_v37, %v350_v38  ;;  %v409_v36 = vld [vmem:[#allocation5 + $0x8d0] sm:$0xff]  ;;  %v9346_v38 = vld [vmem:[#allocation2 + $0x14] ss:$40 sps:$4 sm:$0xff]  }
 0x212   :  { %4540 = vmatprep.subr.bf16.mxu0 %v7917_v49  ;;  %4755 = vmatprep.subr.bf16.mxu1 %v7919_v50  ;;  %v7981_v49 = vcombine.high %v353_v43, %v357_v44  ;;  %v7983_v50 = vcombine.high %v354_v45, %v358_v46  ;;  %v413_v37 = vld [vmem:[#allocation5 + $0x8f0] sm:$0xff] }
 0x215   :  { %4541 = vmatpush1.bf16.msra.mxu0 %v7916_v55  ;;  %4756 = vmatpush1.bf16.msra.mxu1 %v7918_v56  ;;  %v7980_v55 = vcombine.low %v353_v43, %v357_v44  ;;  %v7982_v56 = vcombine.low %v354_v45, %v358_v46  ;;  %v8037_v43 = vcombine.high %v409_v36, %v413_v37  ;;  %v417_v45 = vld [vmem:[#allocation5 + $0x910] sm:$0xff] }
 0x216   :  { %4542 = vmatprep.subr.bf16.mxu0 %v7925_v57  ;;  %4757 = vmatprep.subr.bf16.mxu1 %v7927_v58  ;;  %v7989_v57 = vcombine.high %v361_v51, %v365_v52  ;;  %v7991_v58 = vcombine.high %v362_v53, %v366_v54  ;;  %v421_v46 = vld [vmem:[#allocation5 + $0x930] sm:$0xff] }
 0x219   :  { %4543 = vmatpush1.bf16.msra.mxu0 %v7924_v63  ;;  %4758 = vmatpush1.bf16.msra.mxu1 %v7926_v0  ;;  %v7988_v63 = vcombine.low %v361_v51, %v365_v52  ;;  %v7990_v0 = vcombine.low %v362_v53, %v366_v54  ;;  %v8045_v51 = vcombine.high %v417_v45, %v421_v46  ;;  %v425_v53 = vld [vmem:[#allocation5 + $0x950] sm:$0xff] }
 0x21a   :  { %4544 = vmatprep.subr.bf16.mxu0 %v7933_v1  ;;  %4759 = vmatprep.subr.bf16.mxu1 %v7935_v2  ;;  %v7997_v1 = vcombine.high %v369_v59, %v373_v60  ;;  %v7999_v2 = vcombine.high %v370_v61, %v374_v62  ;;  %v429_v54 = vld [vmem:[#allocation5 + $0x970] sm:$0xff] }
 0x21d   :  { %4545 = vmatpush1.bf16.msra.mxu0 %v7932_v7  ;;  %4760 = vmatpush1.bf16.msra.mxu1 %v7934_v8  ;;  %v7996_v7 = vcombine.low %v369_v59, %v373_v60  ;;  %v7998_v8 = vcombine.low %v370_v61, %v374_v62  ;;  %v8053_v59 = vcombine.high %v425_v53, %v429_v54  ;;  %v433_v61 = vld [vmem:[#allocation5 + $0x990] sm:$0xff] }
 0x21e   :  { %4546 = vmatprep.subr.bf16.mxu0 %v7941_v9  ;;  %4761 = vmatprep.subr.bf16.mxu1 %v7943_v10  ;;  %v8005_v9 = vcombine.high %v377_v3, %v381_v4  ;;  %v8007_v10 = vcombine.high %v378_v5, %v382_v6  ;;  %v437_v62 = vld [vmem:[#allocation5 + $0x9b0] sm:$0xff] }
 0x221   :  { %4547 = vmatpush1.bf16.msra.mxu0 %v7940_v15  ;;  %4762 = vmatpush1.bf16.msra.mxu1 %v7942_v16  ;;  %v8004_v15 = vcombine.low %v377_v3, %v381_v4  ;;  %v8006_v16 = vcombine.low %v378_v5, %v382_v6  ;;  %v8061_v3 = vcombine.high %v433_v61, %v437_v62  ;;  %v441_v5 = vld [vmem:[#allocation5 + $0x9d0] sm:$0xff] }
 0x222   :  { %4548 = vmatprep.subr.bf16.mxu0 %v7949_v17  ;;  %4763 = vmatprep.subr.bf16.mxu1 %v7951_v18  ;;  %v8013_v17 = vcombine.high %v385_v11, %v389_v12  ;;  %v8015_v18 = vcombine.high %v386_v13, %v390_v14  ;;  %v445_v6 = vld [vmem:[#allocation5 + $0x9f0] sm:$0xff] }
 0x225   :  { %4549 = vmatpush1.bf16.msra.mxu0 %v7948_v23  ;;  %4764 = vmatpush1.bf16.msra.mxu1 %v7950_v24  ;;  %v8012_v23 = vcombine.low %v385_v11, %v389_v12  ;;  %v8014_v24 = vcombine.low %v386_v13, %v390_v14  ;;  %v8069_v11 = vcombine.high %v441_v5, %v445_v6  ;;  %v449_v13 = vld [vmem:[#allocation5 + $0xa10] sm:$0xff] }
 0x226   :  { %4550 = vmatprep.subr.bf16.mxu0 %v7957_v25  ;;  %4765 = vmatprep.subr.bf16.mxu1 %v7959_v26  ;;  %v8021_v25 = vcombine.high %v393_v19, %v397_v20  ;;  %v8023_v26 = vcombine.high %v394_v21, %v398_v22  ;;  %v453_v14 = vld [vmem:[#allocation5 + $0xa30] sm:$0xff] }
 0x229   :  { %4551 = vmatpush1.bf16.msra.mxu0 %v7956_v31  ;;  %4766 = vmatpush1.bf16.msra.mxu1 %v7958_v32  ;;  %v406_v31 = vld [vmem:[#allocation5 + $0x8b8] sm:$0xff]  ;;  %v8020_v32 = vcombine.low %v393_v19, %v397_v20  ;;  %v8077_v19 = vcombine.high %v449_v13, %v453_v14 }
 0x22a   :  { %4552 = vmatprep.subr.bf16.mxu0 %v7965_v33  ;;  %4767 = vmatprep.subr.bf16.mxu1 %v7967_v34  ;;  %v8022_v33 = vcombine.low %v394_v21, %v398_v22  ;;  %v8029_v34 = vcombine.high %v401_v27, %v405_v28  ;;  %v8031_v35 = vcombine.high %v402_v30, %v406_v31  ;;  %v457_v21 = vld [vmem:[#allocation5 + $0xa50] sm:$0xff] }
 0x22b   :  { %v461_v22 = vld [vmem:[#allocation5 + $0xa70] sm:$0xff] }
 0x22d   :  { %4553 = vmatpush1.bf16.msra.mxu0 %v7964_v39  ;;  %4768 = vmatpush1.bf16.msra.mxu1 %v7966_v40  ;;  %v410_v39 = vld [vmem:[#allocation5 + $0x8d8] sm:$0xff] }
 0x22e   :  { %4554 = vmatprep.subr.bf16.mxu0 %v7973_v41  ;;  %4769 = vmatprep.subr.bf16.mxu1 %v7975_v42  ;;  %v414_v40 = vld [vmem:[#allocation5 + $0x8f8] sm:$0xff]  ;;  %v8028_v41 = vcombine.low %v401_v27, %v405_v28  ;;  %v8030_v42 = vcombine.low %v402_v30, %v406_v31  ;;  %v8085_v27 = vcombine.high %v457_v21, %v461_v22  ;;  %v469_v30 = vld [vmem:[#allocation5 + $0xab0] sm:$0xff] }
 0x22f   :  { %v8039_v44 = vcombine.high %v410_v39, %v414_v40  ;;  %v466_v31 = vld [vmem:[#allocation5 + $0xa98] sm:$0xff] }
 0x231   :  { %4555 = vmatpush1.bf16.msra.mxu0 %v7972_v47  ;;  %4770 = vmatpush1.bf16.msra.mxu1 %v7974_v48  ;;  %v418_v47 = vld [vmem:[#allocation5 + $0x918] sm:$0xff] }
 0x232   :  { %4556 = vmatprep.subr.bf16.mxu0 %v7981_v49  ;;  %4771 = vmatprep.subr.bf16.mxu1 %v7983_v50  ;;  %v422_v48 = vld [vmem:[#allocation5 + $0x938] sm:$0xff]  ;;  %v8036_v49 = vcombine.low %v409_v36, %v413_v37  ;;  %v8038_v50 = vcombine.low %v410_v39, %v414_v40  ;;  %v473_v37 = vld [vmem:[#allocation5 + $0xad0] sm:$0xff] }
 0x233   :  { %v8047_v52 = vcombine.high %v418_v47, %v422_v48  ;;  %v474_v39 = vld [vmem:[#allocation5 + $0xad8] sm:$0xff] }
 0x234   :  { %v478_v40 = vld [vmem:[#allocation5 + $0xaf8] sm:$0xff] }
 0x235   :  { %4557 = vmatpush1.bf16.msra.mxu0 %v7980_v55  ;;  %4772 = vmatpush1.bf16.msra.mxu1 %v7982_v56  ;;  %v426_v55 = vld [vmem:[#allocation5 + $0x958] sm:$0xff] }
 0x236   :  { %4558 = vmatprep.subr.bf16.mxu0 %v7989_v57  ;;  %4773 = vmatprep.subr.bf16.mxu1 %v7991_v58  ;;  %v430_v56 = vld [vmem:[#allocation5 + $0x978] sm:$0xff]  ;;  %v8044_v57 = vcombine.low %v417_v45, %v421_v46  ;;  %v8046_v58 = vcombine.low %v418_v47, %v422_v48  ;;  %v481_v45 = vld [vmem:[#allocation5 + $0xb10] sm:$0xff] }
 0x237   :  { %v8055_v60 = vcombine.high %v426_v55, %v430_v56  ;;  %v485_v46 = vld [vmem:[#allocation5 + $0xb30] sm:$0xff]  ;;  %v482_v47 = vld [vmem:[#allocation5 + $0xb18] sm:$0xff] }
 0x238   :  { %v486_v48 = vld [vmem:[#allocation5 + $0xb38] sm:$0xff] }
 0x239   :  { %4559 = vmatpush1.bf16.msra.mxu0 %v7988_v63  ;;  %4774 = vmatpush1.bf16.msra.mxu1 %v7990_v0  ;;  %v434_v63 = vld [vmem:[#allocation5 + $0x998] sm:$0xff] }
 0x23a   :  { %4560 = vmatprep.subr.bf16.mxu0 %v7997_v1  ;;  %4775 = vmatprep.subr.bf16.mxu1 %v7999_v2  ;;  %v438_v0 = vld [vmem:[#allocation5 + $0x9b8] sm:$0xff]  ;;  %v8052_v1 = vcombine.low %v425_v53, %v429_v54  ;;  %v8054_v2 = vcombine.low %v426_v55, %v430_v56  ;;  %v489_v53 = vld [vmem:[#allocation5 + $0xb50] sm:$0xff] }
 0x23b   :  { %v8063_v4 = vcombine.high %v434_v63, %v438_v0  ;;  %v493_v54 = vld [vmem:[#allocation5 + $0xb70] sm:$0xff]  ;;  %v490_v55 = vld [vmem:[#allocation5 + $0xb58] sm:$0xff] }
 0x23c   :  { %v494_v56 = vld [vmem:[#allocation5 + $0xb78] sm:$0xff] }
 0x23d   :  { %4561 = vmatpush1.bf16.msra.mxu0 %v7996_v7  ;;  %4776 = vmatpush1.bf16.msra.mxu1 %v7998_v8  ;;  %v442_v7 = vld [vmem:[#allocation5 + $0x9d8] sm:$0xff] }
 0x23e   :  { %4562 = vmatprep.subr.bf16.mxu0 %v8005_v9  ;;  %4777 = vmatprep.subr.bf16.mxu1 %v8007_v10  ;;  %v446_v8 = vld [vmem:[#allocation5 + $0x9f8] sm:$0xff]  ;;  %v8060_v9 = vcombine.low %v433_v61, %v437_v62  ;;  %v8062_v10 = vcombine.low %v434_v63, %v438_v0  ;;  %v497_v61 = vld [vmem:[#allocation5 + $0xb90] sm:$0xff] }
 0x23f   :  { %v8071_v12 = vcombine.high %v442_v7, %v446_v8  ;;  %v501_v62 = vld [vmem:[#allocation5 + $0xbb0] sm:$0xff]  ;;  %v498_v63 = vld [vmem:[#allocation5 + $0xb98] sm:$0xff] }
 0x240   :  { %v502_v0 = vld [vmem:[#allocation5 + $0xbb8] sm:$0xff] }
 0x241   :  { %4563 = vmatpush1.bf16.msra.mxu0 %v8004_v15  ;;  %4778 = vmatpush1.bf16.msra.mxu1 %v8006_v16  ;;  %v450_v15 = vld [vmem:[#allocation5 + $0xa18] sm:$0xff] }
 0x242   :  { %4575 = vmatprep.subr.bf16.mxu0 %v8013_v17  ;;  %4790 = vmatprep.subr.bf16.mxu1 %v8015_v18  ;;  %v454_v16 = vld [vmem:[#allocation5 + $0xa38] sm:$0xff]  ;;  %v8068_v17 = vcombine.low %v441_v5, %v445_v6  ;;  %v8070_v18 = vcombine.low %v442_v7, %v446_v8  ;;  %v505_v5 = vld [vmem:[#allocation5 + $0xbd0] sm:$0xff] }
 0x243   :  { %v8079_v20 = vcombine.high %v450_v15, %v454_v16  ;;  %v509_v6 = vld [vmem:[#allocation5 + $0xbf0] sm:$0xff]  ;;  %v506_v7 = vld [vmem:[#allocation5 + $0xbd8] sm:$0xff] }
 0x244   :  { %4565 = vmatmul.mubr.bf16.vlgmr.msra.gmra.mrb[4].mxu0 %v9345_v29  ;;  %4780 = vmatmul.mubr.bf16.vlgmr.msra.gmra.mrb[4].mxu1 %v9345_v29  ;;  %v465_v29 = vld [vmem:[#allocation5 + $0xa90] sm:$0xff]  ;;  %v510_v8 = vld [vmem:[#allocation5 + $0xbf8] sm:$0xff] }
 0x245   :  { %4576 = vmatpush1.bf16.msra.mxu0 %v8012_v23  ;;  %4791 = vmatpush1.bf16.msra.mxu1 %v8014_v24  ;;  %v458_v23 = vld [vmem:[#allocation5 + $0xa58] sm:$0xff] }
 0x246   :  { %4577 = vmatprep.subr.bf16.mxu0 %v8021_v25  ;;  %4792 = vmatprep.subr.bf16.mxu1 %v8023_v26  ;;  %v462_v24 = vld [vmem:[#allocation5 + $0xa78] sm:$0xff]  ;;  %v8076_v25 = vcombine.low %v449_v13, %v453_v14  ;;  %v8078_v26 = vcombine.low %v450_v15, %v454_v16  ;;  %v513_v13 = vld [vmem:[#allocation5 + $0xc10] sm:$0xff] }
 0x247   :  { %4607 = vmatprep.mubr.bf16.mxu0 %v9346_v38  ;;  %4822 = vmatprep.mubr.bf16.mxu1 %v9346_v38  ;;  %v8087_v28 = vcombine.high %v458_v23, %v462_v24  ;;  %v477_v38 = vld [vmem:[#allocation5 + $0xaf0] sm:$0xff]  ;;  %v514_v15 = vld [vmem:[#allocation5 + $0xc18] sm:$0xff] }
 0x248   :  { %v517_v14 = vld [vmem:[#allocation5 + $0xc30] sm:$0xff]  ;;  %v518_v16 = vld [vmem:[#allocation5 + $0xc38] sm:$0xff] }
 0x249   :  { %4578 = vmatpush1.bf16.msra.mxu0 %v8020_v32  ;;  %4793 = vmatpush1.bf16.msra.mxu1 %v8022_v33  ;;  %v470_v32 = vld [vmem:[#allocation5 + $0xab8] sm:$0xff]  ;;  %v8084_v33 = vcombine.low %v457_v21, %v461_v22  ;;  %v521_v21 = vld [vmem:[#allocation5 + $0xc50] sm:$0xff] }
 0x24a   :  { %4579 = vmatprep.subr.bf16.mxu0 %v8029_v34  ;;  %4794 = vmatprep.subr.bf16.mxu1 %v8031_v35  ;;  %v8086_v34 = vcombine.low %v458_v23, %v462_v24  ;;  %v8093_v35 = vcombine.high %v465_v29, %v469_v30  ;;  %v8095_v36 = vcombine.high %v466_v31, %v470_v32  ;;  %v525_v22 = vld [vmem:[#allocation5 + $0xc70] sm:$0xff]  ;;  %v522_v23 = vld [vmem:[#allocation5 + $0xc58] sm:$0xff] }
 0x24b   :  { %v526_v24 = vld [vmem:[#allocation5 + $0xc78] sm:$0xff] }
 0x24d   :  { %4580 = vmatpush1.bf16.msra.mxu0 %v8028_v41  ;;  %4795 = vmatpush1.bf16.msra.mxu1 %v8030_v42  ;;  %v8092_v41 = vcombine.low %v465_v29, %v469_v30  ;;  %v8094_v42 = vcombine.low %v466_v31, %v470_v32  ;;  %v529_v29 = vld [vmem:[#allocation5 + $0xc90] sm:$0xff]  ;;  %v9347_v31 = vld [vmem:[#allocation2 + $0x10] ss:$40 sps:$4 sm:$0xff]   ;;  %v530_v32 = vld [vmem:[#allocation5 + $0xc98] sm:$0xff] }
 0x24e   :  { %4581 = vmatprep.subr.bf16.mxu0 %v8037_v43  ;;  %4796 = vmatprep.subr.bf16.mxu1 %v8039_v44  ;;  %v8101_v43 = vcombine.high %v473_v37, %v477_v38  ;;  %v8103_v44 = vcombine.high %v474_v39, %v478_v40  ;;  %v533_v30 = vld [vmem:[#allocation5 + $0xcb0] sm:$0xff] }
 0x251   :  { %4582 = vmatpush1.bf16.msra.mxu0 %v8036_v49  ;;  %4797 = vmatpush1.bf16.msra.mxu1 %v8038_v50  ;;  %v8100_v49 = vcombine.low %v473_v37, %v477_v38  ;;  %v8102_v50 = vcombine.low %v474_v39, %v478_v40  ;;  %v537_v38 = vld [vmem:[#allocation5 + $0xcd0] sm:$0xff] }
 0x252   :  { %4583 = vmatprep.subr.bf16.mxu0 %v8045_v51  ;;  %4798 = vmatprep.subr.bf16.mxu1 %v8047_v52  ;;  %v8109_v51 = vcombine.high %v481_v45, %v485_v46  ;;  %v8111_v52 = vcombine.high %v482_v47, %v486_v48  ;;  %v541_v39 = vld [vmem:[#allocation5 + $0xcf0] sm:$0xff] }
 0x253   :  { %v9348_v40 = vld [vmem:[#allocation2 + $0x1c] ss:$40 sps:$4 sm:$0xff]  }
 0x255   :  { %4584 = vmatpush1.bf16.msra.mxu0 %v8044_v57  ;;  %4799 = vmatpush1.bf16.msra.mxu1 %v8046_v58  ;;  %v8108_v57 = vcombine.low %v481_v45, %v485_v46  ;;  %v8110_v58 = vcombine.low %v482_v47, %v486_v48  ;;  %v8165_v45 = vcombine.high %v537_v38, %v541_v39  ;;  %v545_v47 = vld [vmem:[#allocation5 + $0xd10] sm:$0xff] }
 0x256   :  { %4585 = vmatprep.subr.bf16.mxu0 %v8053_v59  ;;  %4800 = vmatprep.subr.bf16.mxu1 %v8055_v60  ;;  %v8117_v59 = vcombine.high %v489_v53, %v493_v54  ;;  %v8119_v60 = vcombine.high %v490_v55, %v494_v56  ;;  %v549_v48 = vld [vmem:[#allocation5 + $0xd30] sm:$0xff] }
 0x259   :  { %4586 = vmatpush1.bf16.msra.mxu0 %v8052_v1  ;;  %4801 = vmatpush1.bf16.msra.mxu1 %v8054_v2  ;;  %v8116_v1 = vcombine.low %v489_v53, %v493_v54  ;;  %v8118_v2 = vcombine.low %v490_v55, %v494_v56  ;;  %v8173_v53 = vcombine.high %v545_v47, %v549_v48  ;;  %v553_v55 = vld [vmem:[#allocation5 + $0xd50] sm:$0xff] }
 0x25a   :  { %4587 = vmatprep.subr.bf16.mxu0 %v8061_v3  ;;  %4802 = vmatprep.subr.bf16.mxu1 %v8063_v4  ;;  %v8125_v3 = vcombine.high %v497_v61, %v501_v62  ;;  %v8127_v4 = vcombine.high %v498_v63, %v502_v0  ;;  %v557_v56 = vld [vmem:[#allocation5 + $0xd70] sm:$0xff] }
 0x25d   :  { %4588 = vmatpush1.bf16.msra.mxu0 %v8060_v9  ;;  %4803 = vmatpush1.bf16.msra.mxu1 %v8062_v10  ;;  %v8124_v9 = vcombine.low %v497_v61, %v501_v62  ;;  %v8126_v10 = vcombine.low %v498_v63, %v502_v0  ;;  %v8181_v61 = vcombine.high %v553_v55, %v557_v56  ;;  %v561_v63 = vld [vmem:[#allocation5 + $0xd90] sm:$0xff] }
 0x25e   :  { %4589 = vmatprep.subr.bf16.mxu0 %v8069_v11  ;;  %4804 = vmatprep.subr.bf16.mxu1 %v8071_v12  ;;  %v8133_v11 = vcombine.high %v505_v5, %v509_v6  ;;  %v8135_v12 = vcombine.high %v506_v7, %v510_v8  ;;  %v565_v0 = vld [vmem:[#allocation5 + $0xdb0] sm:$0xff] }
 0x261   :  { %4590 = vmatpush1.bf16.msra.mxu0 %v8068_v17  ;;  %4805 = vmatpush1.bf16.msra.mxu1 %v8070_v18  ;;  %v8132_v17 = vcombine.low %v505_v5, %v509_v6  ;;  %v8134_v18 = vcombine.low %v506_v7, %v510_v8  ;;  %v8189_v5 = vcombine.high %v561_v63, %v565_v0  ;;  %v569_v8 = vld [vmem:[#allocation5 + $0xdd0] sm:$0xff] }
 0x262   :  { %4591 = vmatprep.subr.bf16.mxu0 %v8077_v19  ;;  %4806 = vmatprep.subr.bf16.mxu1 %v8079_v20  ;;  %v8141_v19 = vcombine.high %v513_v13, %v517_v14  ;;  %v8143_v20 = vcombine.high %v514_v15, %v518_v16 }
 0x265   :  { %4592 = vmatpush1.bf16.msra.mxu0 %v8076_v25  ;;  %4807 = vmatpush1.bf16.msra.mxu1 %v8078_v26  ;;  %v8140_v25 = vcombine.low %v513_v13, %v517_v14  ;;  %v8142_v26 = vcombine.low %v514_v15, %v518_v16  ;;  %v574_v13 = vld [vmem:[#allocation5 + $0xdf8] sm:$0xff]  ;;  %v8188_v16 = vcombine.low %v561_v63, %v565_v0  ;;  %v617_v63 = vld [vmem:[#allocation5 + $0xf50] sm:$0xff] }
 0x266   :  { %4593 = vmatprep.subr.bf16.mxu0 %v8085_v27  ;;  %4808 = vmatprep.subr.bf16.mxu1 %v8087_v28  ;;  %v8149_v27 = vcombine.high %v521_v21, %v525_v22  ;;  %v8151_v28 = vcombine.high %v522_v23, %v526_v24  ;;  %v621_v0 = vld [vmem:[#allocation5 + $0xf70] sm:$0xff] }
 0x269   :  { %4594 = vmatpush1.bf16.msra.mxu0 %v8084_v33  ;;  %4809 = vmatpush1.bf16.msra.mxu1 %v8086_v34  ;;  %v534_v33 = vld [vmem:[#allocation5 + $0xcb8] sm:$0xff]  ;;  %v8148_v34 = vcombine.low %v521_v21, %v525_v22 }
 0x26a   :  { %4595 = vmatprep.subr.bf16.mxu0 %v8093_v35  ;;  %4810 = vmatprep.subr.bf16.mxu1 %v8095_v36  ;;  %v8150_v35 = vcombine.low %v522_v23, %v526_v24  ;;  %v8157_v36 = vcombine.high %v529_v29, %v533_v30  ;;  %v8159_v37 = vcombine.high %v530_v32, %v534_v33  ;;  %v577_v23 = vld [vmem:[#allocation5 + $0xe10] sm:$0xff] }
 0x26b   :  { %v581_v24 = vld [vmem:[#allocation5 + $0xe30] sm:$0xff] }
 0x26d   :  { %4596 = vmatpush1.bf16.msra.mxu0 %v8092_v41  ;;  %4811 = vmatpush1.bf16.msra.mxu1 %v8094_v42  ;;  %v538_v41 = vld [vmem:[#allocation5 + $0xcd8] sm:$0xff] }
 0x26e   :  { %4597 = vmatprep.subr.bf16.mxu0 %v8101_v43  ;;  %4812 = vmatprep.subr.bf16.mxu1 %v8103_v44  ;;  %v542_v42 = vld [vmem:[#allocation5 + $0xcf8] sm:$0xff]  ;;  %v8156_v43 = vcombine.low %v529_v29, %v533_v30  ;;  %v8158_v44 = vcombine.low %v530_v32, %v534_v33  ;;  %v8205_v29 = vcombine.high %v577_v23, %v581_v24  ;;  %v589_v32 = vld [vmem:[#allocation5 + $0xe70] sm:$0xff] }
 0x26f   :  { %v8167_v46 = vcombine.high %v538_v41, %v542_v42  ;;  %v586_v33 = vld [vmem:[#allocation5 + $0xe58] sm:$0xff] }
 0x271   :  { %4598 = vmatpush1.bf16.msra.mxu0 %v8100_v49  ;;  %4813 = vmatpush1.bf16.msra.mxu1 %v8102_v50  ;;  %v546_v49 = vld [vmem:[#allocation5 + $0xd18] sm:$0xff] }
 0x272   :  { %4599 = vmatprep.subr.bf16.mxu0 %v8109_v51  ;;  %4814 = vmatprep.subr.bf16.mxu1 %v8111_v52  ;;  %v550_v50 = vld [vmem:[#allocation5 + $0xd38] sm:$0xff]  ;;  %v8164_v51 = vcombine.low %v537_v38, %v541_v39  ;;  %v8166_v52 = vcombine.low %v538_v41, %v542_v42  ;;  %v593_v39 = vld [vmem:[#allocation5 + $0xe90] sm:$0xff] }
 0x273   :  { %v8175_v54 = vcombine.high %v546_v49, %v550_v50  ;;  %v594_v41 = vld [vmem:[#allocation5 + $0xe98] sm:$0xff] }
 0x274   :  { %v598_v42 = vld [vmem:[#allocation5 + $0xeb8] sm:$0xff] }
 0x275   :  { %4600 = vmatpush1.bf16.msra.mxu0 %v8108_v57  ;;  %4815 = vmatpush1.bf16.msra.mxu1 %v8110_v58  ;;  %v554_v57 = vld [vmem:[#allocation5 + $0xd58] sm:$0xff] }
 0x276   :  { %4601 = vmatprep.subr.bf16.mxu0 %v8117_v59  ;;  %4816 = vmatprep.subr.bf16.mxu1 %v8119_v60  ;;  %v558_v58 = vld [vmem:[#allocation5 + $0xd78] sm:$0xff]  ;;  %v8172_v59 = vcombine.low %v545_v47, %v549_v48  ;;  %v8174_v60 = vcombine.low %v546_v49, %v550_v50  ;;  %v601_v47 = vld [vmem:[#allocation5 + $0xed0] sm:$0xff] }
 0x277   :  { %v8183_v62 = vcombine.high %v554_v57, %v558_v58  ;;  %v605_v48 = vld [vmem:[#allocation5 + $0xef0] sm:$0xff]  ;;  %v602_v49 = vld [vmem:[#allocation5 + $0xed8] sm:$0xff] }
 0x278   :  { %v606_v50 = vld [vmem:[#allocation5 + $0xef8] sm:$0xff] }
 0x279   :  { %4602 = vmatpush1.bf16.msra.mxu0 %v8116_v1  ;;  %4817 = vmatpush1.bf16.msra.mxu1 %v8118_v2  ;;  %v562_v1 = vld [vmem:[#allocation5 + $0xd98] sm:$0xff] }
 0x27a   :  { %4603 = vmatprep.subr.bf16.mxu0 %v8125_v3  ;;  %4818 = vmatprep.subr.bf16.mxu1 %v8127_v4  ;;  %v566_v2 = vld [vmem:[#allocation5 + $0xdb8] sm:$0xff]  ;;  %v8180_v3 = vcombine.low %v553_v55, %v557_v56  ;;  %v8182_v4 = vcombine.low %v554_v57, %v558_v58  ;;  %v609_v55 = vld [vmem:[#allocation5 + $0xf10] sm:$0xff] }
 0x27b   :  { %v8191_v7 = vcombine.high %v562_v1, %v566_v2  ;;  %v613_v56 = vld [vmem:[#allocation5 + $0xf30] sm:$0xff]  ;;  %v610_v57 = vld [vmem:[#allocation5 + $0xf18] sm:$0xff] }
 0x27c   :  { %v614_v58 = vld [vmem:[#allocation5 + $0xf38] sm:$0xff] }
 0x27d   :  { %4604 = vmatpush1.bf16.msra.mxu0 %v8124_v9  ;;  %4819 = vmatpush1.bf16.msra.mxu1 %v8126_v10  ;;  %v573_v9 = vld [vmem:[#allocation5 + $0xdf0] sm:$0xff] }
 0x27e   :  { %4605 = vmatprep.subr.bf16.mxu0 %v8133_v11  ;;  %4820 = vmatprep.subr.bf16.mxu1 %v8135_v12  ;;  %v570_v12 = vld [vmem:[#allocation5 + $0xdd8] sm:$0xff] }
 0x27f   :  { %v8199_v22 = vcombine.high %v570_v12, %v574_v13 }
 0x281   :  { %4606 = vmatpush1.bf16.msra.mxu0 %v8132_v17  ;;  %4821 = vmatpush1.bf16.msra.mxu1 %v8134_v18 }
 0x282   :  { %4618 = vmatprep.subr.bf16.mxu0 %v8141_v19  ;;  %4833 = vmatprep.subr.bf16.mxu1 %v8143_v20  ;;  %v8190_v19 = vcombine.low %v562_v1, %v566_v2  ;;  %v8197_v20 = vcombine.high %v569_v8, %v573_v9  ;;  %v618_v1 = vld [vmem:[#allocation5 + $0xf58] sm:$0xff] }
 0x283   :  { %v622_v2 = vld [vmem:[#allocation5 + $0xf78] sm:$0xff] }
 0x284   :  { %4608 = vmatmul.mubr.bf16.vlgmr.msra.gmra.mrb[4].mxu0 %v9347_v31  ;;  %4823 = vmatmul.mubr.bf16.vlgmr.msra.gmra.mrb[4].mxu1 %v9347_v31  ;;  %v585_v31 = vld [vmem:[#allocation5 + $0xe50] sm:$0xff] }
 0x285   :  { %4619 = vmatpush1.bf16.msra.mxu0 %v8140_v25  ;;  %4834 = vmatpush1.bf16.msra.mxu1 %v8142_v26  ;;  %v578_v25 = vld [vmem:[#allocation5 + $0xe18] sm:$0xff] }
 0x286   :  { %4620 = vmatprep.subr.bf16.mxu0 %v8149_v27  ;;  %4835 = vmatprep.subr.bf16.mxu1 %v8151_v28  ;;  %v582_v26 = vld [vmem:[#allocation5 + $0xe38] sm:$0xff]  ;;  %v8196_v27 = vcombine.low %v569_v8, %v573_v9  ;;  %v8198_v28 = vcombine.low %v570_v12, %v574_v13  ;;  %v625_v8 = vld [vmem:[#allocation5 + $0xf90] sm:$0xff] }
 0x287   :  { %4650 = vmatprep.mubr.bf16.mxu0 %v9348_v40  ;;  %4865 = vmatprep.mubr.bf16.mxu1 %v9348_v40  ;;  %v8207_v30 = vcombine.high %v578_v25, %v582_v26  ;;  %v597_v40 = vld [vmem:[#allocation5 + $0xeb0] sm:$0xff]  ;;  %v626_v12 = vld [vmem:[#allocation5 + $0xf98] sm:$0xff] }
 0x288   :  { %v629_v9 = vld [vmem:[#allocation5 + $0xfb0] sm:$0xff]  ;;  %v630_v13 = vld [vmem:[#allocation5 + $0xfb8] sm:$0xff] }
 0x289   :  { %4621 = vmatpush1.bf16.msra.mxu0 %v8148_v34  ;;  %4836 = vmatpush1.bf16.msra.mxu1 %v8150_v35  ;;  %v590_v34 = vld [vmem:[#allocation5 + $0xe78] sm:$0xff]  ;;  %v8204_v35 = vcombine.low %v577_v23, %v581_v24  ;;  %v633_v23 = vld [vmem:[#allocation5 + $0xfd0] sm:$0xff] }
 0x28a   :  { %4622 = vmatprep.subr.bf16.mxu0 %v8157_v36  ;;  %4837 = vmatprep.subr.bf16.mxu1 %v8159_v37  ;;  %v8206_v36 = vcombine.low %v578_v25, %v582_v26  ;;  %v8213_v37 = vcombine.high %v585_v31, %v589_v32  ;;  %v8215_v38 = vcombine.high %v586_v33, %v590_v34  ;;  %v637_v24 = vld [vmem:[#allocation5 + $0xff0] sm:$0xff]  ;;  %v634_v25 = vld [vmem:[#allocation5 + $0xfd8] sm:$0xff] }
 0x28b   :  { %v638_v26 = vld [vmem:[#allocation5 + $0xff8] sm:$0xff] }
 0x28d   :  { %4623 = vmatpush1.bf16.msra.mxu0 %v8156_v43  ;;  %4838 = vmatpush1.bf16.msra.mxu1 %v8158_v44  ;;  %v8212_v43 = vcombine.low %v585_v31, %v589_v32  ;;  %v8214_v44 = vcombine.low %v586_v33, %v590_v34  ;;  %v641_v31 = vld [vmem:[#allocation5 + $0x1010] sm:$0xff]  ;;  %v642_v33 = vld [vmem:[#allocation5 + $0x1018] sm:$0xff] }
 0x28e   :  { %4624 = vmatprep.subr.bf16.mxu0 %v8165_v45  ;;  %4839 = vmatprep.subr.bf16.mxu1 %v8167_v46  ;;  %v8221_v45 = vcombine.high %v593_v39, %v597_v40  ;;  %v8223_v46 = vcombine.high %v594_v41, %v598_v42  ;;  %v645_v32 = vld [vmem:[#allocation5 + $0x1030] sm:$0xff]  ;;  %v646_v34 = vld [vmem:[#allocation5 + $0x1038] sm:$0xff] }
 0x291   :  { %4625 = vmatpush1.bf16.msra.mxu0 %v8164_v51  ;;  %4840 = vmatpush1.bf16.msra.mxu1 %v8166_v52  ;;  %v8220_v51 = vcombine.low %v593_v39, %v597_v40  ;;  %v8222_v52 = vcombine.low %v594_v41, %v598_v42  ;;  %v649_v39 = vld [vmem:[#allocation5 + $0x1050] sm:$0xff]  ;;  %v650_v41 = vld [vmem:[#allocation5 + $0x1058] sm:$0xff] }
 0x292   :  { %4626 = vmatprep.subr.bf16.mxu0 %v8173_v53  ;;  %4841 = vmatprep.subr.bf16.mxu1 %v8175_v54  ;;  %v8229_v53 = vcombine.high %v601_v47, %v605_v48  ;;  %v8231_v54 = vcombine.high %v602_v49, %v606_v50  ;;  %v653_v40 = vld [vmem:[#allocation5 + $0x1070] sm:$0xff]  ;;  %v654_v42 = vld [vmem:[#allocation5 + $0x1078] sm:$0xff] }
 0x295   :  { %4627 = vmatpush1.bf16.msra.mxu0 %v8172_v59  ;;  %4842 = vmatpush1.bf16.msra.mxu1 %v8174_v60  ;;  %v8228_v59 = vcombine.low %v601_v47, %v605_v48  ;;  %v8230_v60 = vcombine.low %v602_v49, %v606_v50  ;;  %v657_v47 = vld [vmem:[#allocation5 + $0x1090] sm:$0xff]  ;;  %v658_v50 = vld [vmem:[#allocation5 + $0x1098] sm:$0xff] }
 0x296   :  { %4628 = vmatprep.subr.bf16.mxu0 %v8181_v61  ;;  %4843 = vmatprep.subr.bf16.mxu1 %v8183_v62  ;;  %v8237_v61 = vcombine.high %v609_v55, %v613_v56  ;;  %v8239_v62 = vcombine.high %v610_v57, %v614_v58  ;;  %v661_v48 = vld [vmem:[#allocation5 + $0x10b0] sm:$0xff] }
 0x297   :  { %v9680_v6 = vpop.f32.mrb[0].mxu0  ;;  %v9682_v10 = vpop.f32.mrb[0].mxu1  ;;  %v9349_v49 = vld [vmem:[#allocation2 + $0x18] ss:$40 sps:$4 sm:$0xff]  }
 0x298   :  { %v9684_v11 = vpop.f32.mrb[1].mxu0  ;;  %v9686_v14 = vpop.f32.mrb[1].mxu1 }
 0x299   :  { %v9688_v15 = vpop.f32.mrb[2].mxu0  ;;  %4629 = vmatpush1.bf16.msra.mxu0 %v8180_v3  ;;  %v9690_v17 = vpop.f32.mrb[2].mxu1  ;;  %4844 = vmatpush1.bf16.msra.mxu1 %v8182_v4  ;;  %v8236_v3 = vcombine.low %v609_v55, %v613_v56  ;;  %v8238_v4 = vcombine.low %v610_v57, %v614_v58  ;;  %v665_v56 = vld [vmem:[#allocation5 + $0x10d0] sm:$0xff] }
 0x29a   :  { %v9692_v18 = vpop.f32.mrb[3].mxu0  ;;  %4630 = vmatprep.subr.bf16.mxu0 %v8189_v5  ;;  %v9694_v21 = vpop.f32.mrb[3].mxu1  ;;  %4845 = vmatprep.subr.bf16.mxu1 %v8191_v7  ;;  %v8245_v5 = vcombine.high %v617_v63, %v621_v0  ;;  %v8247_v7 = vcombine.high %v618_v1, %v622_v2  ;;  %v669_v57 = vld [vmem:[#allocation5 + $0x10f0] sm:$0xff] }
 0x29b   :  { %v9350_v58 = vld [vmem:[#allocation2 + $0x24] ss:$40 sps:$4 sm:$0xff]  }
 0x29d   :  { %4631 = vmatpush1.bf16.msra.mxu0 %v8188_v16  ;;  %4846 = vmatpush1.bf16.msra.mxu1 %v8190_v19  ;;  %v8244_v16 = vcombine.low %v617_v63, %v621_v0  ;;  %v8246_v19 = vcombine.low %v618_v1, %v622_v2  ;;  %v8293_v63 = vcombine.high %v665_v56, %v669_v57  ;;  %v673_v1 = vld [vmem:[#allocation5 + $0x1110] sm:$0xff] }
 0x29e   :  { %4632 = vmatprep.subr.bf16.mxu0 %v8197_v20  ;;  %4847 = vmatprep.subr.bf16.mxu1 %v8199_v22  ;;  %v8253_v20 = vcombine.high %v625_v8, %v629_v9  ;;  %v8255_v22 = vcombine.high %v626_v12, %v630_v13  ;;  %v677_v2 = vld [vmem:[#allocation5 + $0x1130] sm:$0xff] }
 0x2a1   :  { %4633 = vmatpush1.bf16.msra.mxu0 %v8196_v27  ;;  %4848 = vmatpush1.bf16.msra.mxu1 %v8198_v28  ;;  %v8252_v27 = vcombine.low %v625_v8, %v629_v9  ;;  %v8254_v28 = vcombine.low %v626_v12, %v630_v13  ;;  %v8301_v8 = vcombine.high %v673_v1, %v677_v2  ;;  %v681_v12 = vld [vmem:[#allocation5 + $0x1150] sm:$0xff] }
 0x2a2   :  { %4634 = vmatprep.subr.bf16.mxu0 %v8205_v29  ;;  %4849 = vmatprep.subr.bf16.mxu1 %v8207_v30  ;;  %v8261_v29 = vcombine.high %v633_v23, %v637_v24  ;;  %v8263_v30 = vcombine.high %v634_v25, %v638_v26  ;;  %v685_v13 = vld [vmem:[#allocation5 + $0x1170] sm:$0xff] }
 0x2a5   :  { %4635 = vmatpush1.bf16.msra.mxu0 %v8204_v35  ;;  %4850 = vmatpush1.bf16.msra.mxu1 %v8206_v36  ;;  %v8260_v35 = vcombine.low %v633_v23, %v637_v24  ;;  %v8262_v36 = vcombine.low %v634_v25, %v638_v26  ;;  %v8309_v23 = vcombine.high %v681_v12, %v685_v13  ;;  %v689_v25 = vld [vmem:[#allocation5 + $0x1190] sm:$0xff] }
 0x2a6   :  { %4636 = vmatprep.subr.bf16.mxu0 %v8213_v37  ;;  %4851 = vmatprep.subr.bf16.mxu1 %v8215_v38  ;;  %v8269_v37 = vcombine.high %v641_v31, %v645_v32  ;;  %v8271_v38 = vcombine.high %v642_v33, %v646_v34  ;;  %v693_v26 = vld [vmem:[#allocation5 + $0x11b0] sm:$0xff] }
 0x2a9   :  { %4637 = vmatpush1.bf16.msra.mxu0 %v8212_v43  ;;  %4852 = vmatpush1.bf16.msra.mxu1 %v8214_v44  ;;  %v8268_v43 = vcombine.low %v641_v31, %v645_v32  ;;  %v8270_v44 = vcombine.low %v642_v33, %v646_v34  ;;  %v8317_v31 = vcombine.high %v689_v25, %v693_v26  ;;  %v697_v33 = vld [vmem:[#allocation5 + $0x11d0] sm:$0xff] }
 0x2aa   :  { %4638 = vmatprep.subr.bf16.mxu0 %v8221_v45  ;;  %4853 = vmatprep.subr.bf16.mxu1 %v8223_v46  ;;  %v8277_v45 = vcombine.high %v649_v39, %v653_v40  ;;  %v8279_v46 = vcombine.high %v650_v41, %v654_v42  ;;  %v701_v34 = vld [vmem:[#allocation5 + $0x11f0] sm:$0xff] }
 0x2ad   :  { %4639 = vmatpush1.bf16.msra.mxu0 %v8220_v51  ;;  %4854 = vmatpush1.bf16.msra.mxu1 %v8222_v52  ;;  %v662_v51 = vld [vmem:[#allocation5 + $0x10b8] sm:$0xff]  ;;  %v8276_v52 = vcombine.low %v649_v39, %v653_v40  ;;  %v8325_v39 = vcombine.high %v697_v33, %v701_v34 }
 0x2ae   :  { %4640 = vmatprep.subr.bf16.mxu0 %v8229_v53  ;;  %4855 = vmatprep.subr.bf16.mxu1 %v8231_v54  ;;  %v8278_v53 = vcombine.low %v650_v41, %v654_v42  ;;  %v8285_v54 = vcombine.high %v657_v47, %v661_v48  ;;  %v8287_v55 = vcombine.high %v658_v50, %v662_v51  ;;  %v705_v41 = vld [vmem:[#allocation5 + $0x1210] sm:$0xff] }
 0x2af   :  { %v709_v42 = vld [vmem:[#allocation5 + $0x1230] sm:$0xff] }
 0x2b1   :  { %4641 = vmatpush1.bf16.msra.mxu0 %v8228_v59  ;;  %4856 = vmatpush1.bf16.msra.mxu1 %v8230_v60  ;;  %v666_v59 = vld [vmem:[#allocation5 + $0x10d8] sm:$0xff] }
 0x2b2   :  { %4642 = vmatprep.subr.bf16.mxu0 %v8237_v61  ;;  %4857 = vmatprep.subr.bf16.mxu1 %v8239_v62  ;;  %v670_v60 = vld [vmem:[#allocation5 + $0x10f8] sm:$0xff]  ;;  %v8284_v61 = vcombine.low %v657_v47, %v661_v48  ;;  %v8286_v62 = vcombine.low %v658_v50, %v662_v51  ;;  %v8333_v47 = vcombine.high %v705_v41, %v709_v42  ;;  %v717_v50 = vld [vmem:[#allocation5 + $0x1270] sm:$0xff] }
 0x2b3   :  { %v8295_v0 = vcombine.high %v666_v59, %v670_v60  ;;  %v714_v51 = vld [vmem:[#allocation5 + $0x1258] sm:$0xff] }
 0x2b5   :  { %4643 = vmatpush1.bf16.msra.mxu0 %v8236_v3  ;;  %4858 = vmatpush1.bf16.msra.mxu1 %v8238_v4  ;;  %v674_v3 = vld [vmem:[#allocation5 + $0x1118] sm:$0xff] }
 0x2b6   :  { %4644 = vmatprep.subr.bf16.mxu0 %v8245_v5  ;;  %4859 = vmatprep.subr.bf16.mxu1 %v8247_v7  ;;  %v678_v4 = vld [vmem:[#allocation5 + $0x1138] sm:$0xff]  ;;  %v8292_v5 = vcombine.low %v665_v56, %v669_v57  ;;  %v8294_v7 = vcombine.low %v666_v59, %v670_v60  ;;  %v721_v57 = vld [vmem:[#allocation5 + $0x1290] sm:$0xff] }
 0x2b7   :  { %v8303_v9 = vcombine.high %v674_v3, %v678_v4  ;;  %v722_v59 = vld [vmem:[#allocation5 + $0x1298] sm:$0xff] }
 0x2b8   :  { %v726_v60 = vld [vmem:[#allocation5 + $0x12b8] sm:$0xff] }
 0x2b9   :  { %4645 = vmatpush1.bf16.msra.mxu0 %v8244_v16  ;;  %4860 = vmatpush1.bf16.msra.mxu1 %v8246_v19  ;;  %v682_v16 = vld [vmem:[#allocation5 + $0x1158] sm:$0xff] }
 0x2ba   :  { %4646 = vmatprep.subr.bf16.mxu0 %v8253_v20  ;;  %4861 = vmatprep.subr.bf16.mxu1 %v8255_v22  ;;  %v686_v19 = vld [vmem:[#allocation5 + $0x1178] sm:$0xff]  ;;  %v8300_v20 = vcombine.low %v673_v1, %v677_v2  ;;  %v8302_v22 = vcombine.low %v674_v3, %v678_v4  ;;  %v729_v1 = vld [vmem:[#allocation5 + $0x12d0] sm:$0xff] }
 0x2bb   :  { %v8311_v24 = vcombine.high %v682_v16, %v686_v19  ;;  %v733_v2 = vld [vmem:[#allocation5 + $0x12f0] sm:$0xff]  ;;  %v730_v3 = vld [vmem:[#allocation5 + $0x12d8] sm:$0xff] }
 0x2bc   :  { %v734_v4 = vld [vmem:[#allocation5 + $0x12f8] sm:$0xff] }
 0x2bd   :  { %4647 = vmatpush1.bf16.msra.mxu0 %v8252_v27  ;;  %4862 = vmatpush1.bf16.msra.mxu1 %v8254_v28  ;;  %v690_v27 = vld [vmem:[#allocation5 + $0x1198] sm:$0xff] }
 0x2be   :  { %4648 = vmatprep.subr.bf16.mxu0 %v8261_v29  ;;  %4863 = vmatprep.subr.bf16.mxu1 %v8263_v30  ;;  %v694_v28 = vld [vmem:[#allocation5 + $0x11b8] sm:$0xff]  ;;  %v8308_v29 = vcombine.low %v681_v12, %v685_v13  ;;  %v8310_v30 = vcombine.low %v682_v16, %v686_v19  ;;  %v737_v12 = vld [vmem:[#allocation5 + $0x1310] sm:$0xff] }
 0x2bf   :  { %v8319_v32 = vcombine.high %v690_v27, %v694_v28  ;;  %v741_v13 = vld [vmem:[#allocation5 + $0x1330] sm:$0xff]  ;;  %v738_v16 = vld [vmem:[#allocation5 + $0x1318] sm:$0xff] }
 0x2c0   :  { %v742_v19 = vld [vmem:[#allocation5 + $0x1338] sm:$0xff] }
 0x2c1   :  { %4649 = vmatpush1.bf16.msra.mxu0 %v8260_v35  ;;  %4864 = vmatpush1.bf16.msra.mxu1 %v8262_v36  ;;  %v698_v35 = vld [vmem:[#allocation5 + $0x11d8] sm:$0xff] }
 0x2c2   :  { %4661 = vmatprep.subr.bf16.mxu0 %v8269_v37  ;;  %4876 = vmatprep.subr.bf16.mxu1 %v8271_v38  ;;  %v702_v36 = vld [vmem:[#allocation5 + $0x11f8] sm:$0xff]  ;;  %v8316_v37 = vcombine.low %v689_v25, %v693_v26  ;;  %v8318_v38 = vcombine.low %v690_v27, %v694_v28  ;;  %v745_v25 = vld [vmem:[#allocation5 + $0x1350] sm:$0xff] }
 0x2c3   :  { %v8327_v40 = vcombine.high %v698_v35, %v702_v36  ;;  %v749_v26 = vld [vmem:[#allocation5 + $0x1370] sm:$0xff]  ;;  %v746_v27 = vld [vmem:[#allocation5 + $0x1358] sm:$0xff] }
 0x2c4   :  { %4651 = vmatmul.mubr.bf16.vlgmr.msra.gmra.mrb[4].mxu0 %v9349_v49  ;;  %4866 = vmatmul.mubr.bf16.vlgmr.msra.gmra.mrb[4].mxu1 %v9349_v49  ;;  %v713_v49 = vld [vmem:[#allocation5 + $0x1250] sm:$0xff]  ;;  %v750_v28 = vld [vmem:[#allocation5 + $0x1378] sm:$0xff] }
 0x2c5   :  { %4662 = vmatpush1.bf16.msra.mxu0 %v8268_v43  ;;  %4877 = vmatpush1.bf16.msra.mxu1 %v8270_v44  ;;  %v706_v43 = vld [vmem:[#allocation5 + $0x1218] sm:$0xff] }
 0x2c6   :  { %4663 = vmatprep.subr.bf16.mxu0 %v8277_v45  ;;  %4878 = vmatprep.subr.bf16.mxu1 %v8279_v46  ;;  %v710_v44 = vld [vmem:[#allocation5 + $0x1238] sm:$0xff]  ;;  %v8324_v45 = vcombine.low %v697_v33, %v701_v34  ;;  %v8326_v46 = vcombine.low %v698_v35, %v702_v36  ;;  %v753_v33 = vld [vmem:[#allocation5 + $0x1390] sm:$0xff] }
 0x2c7   :  { %4693 = vmatprep.mubr.bf16.mxu0 %v9350_v58  ;;  %4908 = vmatprep.mubr.bf16.mxu1 %v9350_v58  ;;  %v8335_v48 = vcombine.high %v706_v43, %v710_v44  ;;  %v725_v58 = vld [vmem:[#allocation5 + $0x12b0] sm:$0xff]  ;;  %v754_v35 = vld [vmem:[#allocation5 + $0x1398] sm:$0xff] }
 0x2c8   :  { %v757_v34 = vld [vmem:[#allocation5 + $0x13b0] sm:$0xff]  ;;  %v758_v36 = vld [vmem:[#allocation5 + $0x13b8] sm:$0xff] }
 0x2c9   :  { %4664 = vmatpush1.bf16.msra.mxu0 %v8276_v52  ;;  %4879 = vmatpush1.bf16.msra.mxu1 %v8278_v53  ;;  %v718_v52 = vld [vmem:[#allocation5 + $0x1278] sm:$0xff]  ;;  %v8332_v53 = vcombine.low %v705_v41, %v709_v42  ;;  %v761_v41 = vld [vmem:[#allocation5 + $0x13d0] sm:$0xff] }
 0x2ca   :  { %4665 = vmatprep.subr.bf16.mxu0 %v8285_v54  ;;  %4880 = vmatprep.subr.bf16.mxu1 %v8287_v55  ;;  %v8334_v54 = vcombine.low %v706_v43, %v710_v44  ;;  %v8341_v55 = vcombine.high %v713_v49, %v717_v50  ;;  %v8343_v56 = vcombine.high %v714_v51, %v718_v52  ;;  %v765_v42 = vld [vmem:[#allocation5 + $0x13f0] sm:$0xff]  ;;  %v762_v43 = vld [vmem:[#allocation5 + $0x13d8] sm:$0xff] }
 0x2cb   :  { %v766_v44 = vld [vmem:[#allocation5 + $0x13f8] sm:$0xff] }
 0x2cd   :  { %4666 = vmatpush1.bf16.msra.mxu0 %v8284_v61  ;;  %4881 = vmatpush1.bf16.msra.mxu1 %v8286_v62  ;;  %v8340_v61 = vcombine.low %v713_v49, %v717_v50  ;;  %v8342_v62 = vcombine.low %v714_v51, %v718_v52  ;;  %v8388_v49 = vcombine.low %v761_v41, %v765_v42  ;;  %v9351_v51 = vld [vmem:[#allocation2 + $0x20] ss:$40 sps:$4 sm:$0xff]   ;;  %v769_v52 = vlaneseq }
 0x2ce   :  { %4667 = vmatprep.subr.bf16.mxu0 %v8293_v63  ;;  %4882 = vmatprep.subr.bf16.mxu1 %v8295_v0  ;;  %v8349_v63 = vcombine.high %v721_v57, %v725_v58  ;;  %v8351_v0 = vcombine.high %v722_v59, %v726_v60  ;;  %v8390_v50 = vcombine.low %v762_v43, %v766_v44 }
 0x2d1   :  { %4668 = vmatpush1.bf16.msra.mxu0 %v8292_v5  ;;  %4883 = vmatpush1.bf16.msra.mxu1 %v8294_v7  ;;  %v8348_v5 = vcombine.low %v721_v57, %v725_v58  ;;  %v8350_v7 = vcombine.low %v722_v59, %v726_v60 }
 0x2d2   :  { %4669 = vmatprep.subr.bf16.mxu0 %v8301_v8  ;;  %4884 = vmatprep.subr.bf16.mxu1 %v8303_v9  ;;  %v8357_v8 = vcombine.high %v729_v1, %v733_v2  ;;  %v8359_v9 = vcombine.high %v730_v3, %v734_v4 }
 0x2d5   :  { %4670 = vmatpush1.bf16.msra.mxu0 %v8300_v20  ;;  %4885 = vmatpush1.bf16.msra.mxu1 %v8302_v22  ;;  %v8356_v20 = vcombine.low %v729_v1, %v733_v2  ;;  %v8358_v22 = vcombine.low %v730_v3, %v734_v4 }
 0x2d6   :  { %4671 = vmatprep.subr.bf16.mxu0 %v8309_v23  ;;  %4886 = vmatprep.subr.bf16.mxu1 %v8311_v24  ;;  %v8365_v23 = vcombine.high %v737_v12, %v741_v13  ;;  %v8367_v24 = vcombine.high %v738_v16, %v742_v19 }
 0x2d9   :  { %4672 = vmatpush1.bf16.msra.mxu0 %v8308_v29  ;;  %4887 = vmatpush1.bf16.msra.mxu1 %v8310_v30  ;;  %v8364_v29 = vcombine.low %v737_v12, %v741_v13  ;;  %v8366_v30 = vcombine.low %v738_v16, %v742_v19 }
 0x2da   :  { %4673 = vmatprep.subr.bf16.mxu0 %v8317_v31  ;;  %4888 = vmatprep.subr.bf16.mxu1 %v8319_v32  ;;  %v8373_v31 = vcombine.high %v745_v25, %v749_v26  ;;  %v8375_v32 = vcombine.high %v746_v27, %v750_v28 }
 0x2dd   :  { %4674 = vmatpush1.bf16.msra.mxu0 %v8316_v37  ;;  %4889 = vmatpush1.bf16.msra.mxu1 %v8318_v38  ;;  %v8372_v37 = vcombine.low %v745_v25, %v749_v26  ;;  %v8374_v38 = vcombine.low %v746_v27, %v750_v28 }
 0x2de   :  { %4675 = vmatprep.subr.bf16.mxu0 %v8325_v39  ;;  %4890 = vmatprep.subr.bf16.mxu1 %v8327_v40  ;;  %v8381_v39 = vcombine.high %v753_v33, %v757_v34  ;;  %v8383_v40 = vcombine.high %v754_v35, %v758_v36 }
 0x2e1   :  { %4676 = vmatpush1.bf16.msra.mxu0 %v8324_v45  ;;  %4891 = vmatpush1.bf16.msra.mxu1 %v8326_v46  ;;  %v8380_v45 = vcombine.low %v753_v33, %v757_v34  ;;  %v8382_v46 = vcombine.low %v754_v35, %v758_v36 }
 0x2e2   :  { %4677 = vmatprep.subr.bf16.mxu0 %v8333_v47  ;;  %4892 = vmatprep.subr.bf16.mxu1 %v8335_v48  ;;  %v8389_v47 = vcombine.high %v761_v41, %v765_v42  ;;  %v8391_v48 = vcombine.high %v762_v43, %v766_v44 }
 0x2e5   :  { %4678 = vmatpush1.bf16.msra.mxu0 %v8332_v53  ;;  %4893 = vmatpush1.bf16.msra.mxu1 %v8334_v54  ;;  %v770_v53 = vshrl.u32 %v769_v52, 7  ;;  %v8879_v52 = vld [vmem:[#allocation8 + $0x28] ss:$16 sps:$4 sm:$0xff]  }
 0x2e6   :  { %4679 = vmatprep.subr.bf16.mxu0 %v8341_v55  ;;  %4894 = vmatprep.subr.bf16.mxu1 %v8343_v56  ;;  %v767_v56 = vld [vmem:[#allocation7] ss:$4 sm:$0xff] }
 0x2e7   :  { %v9696_v54 = vsub.s32 0, %v770_v53  ;;  %v9698_v55 = vsub.s32 1, %v770_v53  ;;  %v9702_v59 = vsub.s32 2, %v770_v53  ;;  %v9721_v3 = vsub.s32 4, %v770_v53 }
 0x2e8   :  { %v9743_v13 = vsub.s32 7, %v770_v53 }
 0x2e9   :  { %4680 = vmatpush1.bf16.msra.mxu0 %v8340_v61  ;;  %4895 = vmatpush1.bf16.msra.mxu1 %v8342_v62  ;;  %v772_v57 = vrot.slane %v767_v56, %v9696_v54  ;;  %v776_v58 = vrot.slane %v767_v56, %v9698_v55  ;;  %v780_v62 = vrot.slane %v767_v56, %v9702_v59 }
 0x2ea   :  { %4681 = vmatprep.subr.bf16.mxu0 %v8349_v63  ;;  %4896 = vmatprep.subr.bf16.mxu1 %v8351_v0  ;;  %v9711_v63 = vsub.s32 3, %v770_v53 }
 0x2eb   :  { %v9705_v60 = vadd.f32 %v9680_v6, %v772_v57  ;;  %v9708_v61 = vadd.f32 %v9684_v11, %v776_v58  ;;  %v9714_v0 = vadd.f32 %v9688_v15, %v772_v57  ;;  %v9717_v1 = vadd.f32 %v9692_v18, %v776_v58  ;;  %v8882_v57 = vld [vmem:[#allocation8 + $0x40] ss:$16 sps:$4 sm:$0xff]   ;;  %v8885_v58 = vld [vmem:[#allocation8 + $0x48] ss:$16 sps:$4 sm:$0xff]  }
 0x2ec   :  { %v9723_v6 = vsub.s32 5, %v770_v53  ;;  %v9726_v11 = vadd.f32 %v9682_v10, %v780_v62  ;;  %v784_v4 = vrot.slane %v767_v56, %v9711_v63  ;;  %v9733_v18 = vadd.f32 %v9690_v17, %v780_v62 }
 0x2ed   :  { %4682 = vmatpush1.bf16.msra.mxu0 %v8348_v5  ;;  %4897 = vmatpush1.bf16.msra.mxu1 %v8350_v7  ;;  %v4923_v2 = vadd.f32 %v9708_v61, %v9705_v60  ;;  %v4932_v5 = vadd.f32 %v9717_v1, %v9714_v0  ;;  %v788_v7 = vrot.slane %v767_v56, %v9721_v3 }
 0x2ee   :  { %4683 = vmatprep.subr.bf16.mxu0 %v8357_v8  ;;  %4898 = vmatprep.subr.bf16.mxu1 %v8359_v9  ;;  %v9736_v8 = vsub.s32 6, %v770_v53  ;;  %v792_v9 = vrot.slane %v767_v56, %v9723_v6  ;;  %v9740_v12 = vadd.f32 %v9686_v14, %v784_v4  ;;  %v8884_v53 = vld [vmem:[#allocation8 + $0x44] ss:$16 sps:$4 sm:$0xff]  }
 0x2ef   :  { %v4924_v15 = vadd.f32 %v9726_v11, %v4923_v2  ;;  %v4933_v10 = vadd.f32 %v9733_v18, %v4932_v5 }
 0x2f1   :  { %4684 = vmatpush1.bf16.msra.mxu0 %v8356_v20  ;;  %4899 = vmatpush1.bf16.msra.mxu1 %v8358_v22  ;;  %v4925_v19 = vadd.f32 %v9740_v12, %v4924_v15  ;;  %v9747_v20 = vadd.f32 %v9694_v21, %v784_v4  ;;  %v796_v22 = vrot.slane %v767_v56, %v9736_v8 }
 0x2f2   :  { %4685 = vmatprep.subr.bf16.mxu0 %v8365_v23  ;;  %4900 = vmatprep.subr.bf16.mxu1 %v8367_v24 }
 0x2f3   :  { %v4934_v27 = vadd.f32 %v9747_v20, %v4933_v10 }
 0x2f5   :  { %4686 = vmatpush1.bf16.msra.mxu0 %v8364_v29  ;;  %4901 = vmatpush1.bf16.msra.mxu1 %v8366_v30  ;;  %v800_v29 = vrot.slane %v767_v56, %v9743_v13  ;;  %v8887_v56 = vld [vmem:[#allocation8 + $0x4c] ss:$16 sps:$4 sm:$0xff]  }
 0x2f6   :  { %4687 = vmatprep.subr.bf16.mxu0 %v8373_v31  ;;  %4902 = vmatprep.subr.bf16.mxu1 %v8375_v32 }
 0x2f9   :  { %4688 = vmatpush1.bf16.msra.mxu0 %v8372_v37  ;;  %4903 = vmatpush1.bf16.msra.mxu1 %v8374_v38 }
 0x2fa   :  { %4689 = vmatprep.subr.bf16.mxu0 %v8381_v39  ;;  %4904 = vmatprep.subr.bf16.mxu1 %v8383_v40 }
 0x2fd   :  { %4690 = vmatpush1.bf16.msra.mxu0 %v8380_v45  ;;  %4905 = vmatpush1.bf16.msra.mxu1 %v8382_v46  ;;  %v8870_v45 = vld [vmem:[#allocation8] ss:$16 sps:$4 sm:$0xff]   ;;  %v8872_v46 = vld [vmem:[#allocation8 + $0x4] ss:$16 sps:$4 sm:$0xff]  }
 0x2fe   :  { %4691 = vmatprep.subr.bf16.mxu0 %v8389_v47  ;;  %4906 = vmatprep.subr.bf16.mxu1 %v8391_v48  ;;  %v8873_v47 = vld [vmem:[#allocation8 + $0x8] ss:$16 sps:$4 sm:$0xff]   ;;  %v8875_v48 = vld [vmem:[#allocation8 + $0xc] ss:$16 sps:$4 sm:$0xff]  }
 0x301   :  { %4692 = vmatpush1.bf16.msra.mxu0 %v8388_v49  ;;  %4907 = vmatpush1.bf16.msra.mxu1 %v8390_v50  ;;  %v8878_v49 = vld [vmem:[#allocation8 + $0x24] ss:$16 sps:$4 sm:$0xff]   ;;  %v8881_v50 = vld [vmem:[#allocation8 + $0x2c] ss:$16 sps:$4 sm:$0xff]  }
 0x302   :  { %6840 = vmatprep.subr.bf16.mxu0 %v8872_v46  ;;  %7012 = vmatprep.subr.bf16.mxu1 %v8875_v48 }
 0x304   :  { %4694 = vmatmul.mubr.bf16.vlgmr.msra.gmra.mrb[4].mxu0 %v9351_v51  ;;  %4909 = vmatmul.mubr.bf16.vlgmr.msra.gmra.mrb[4].mxu1 %v9351_v51  ;;  %v8876_v51 = vld [vmem:[#allocation8 + $0x20] ss:$16 sps:$4 sm:$0xff]  }
 0x305   :  { %6841 = vmatpush1.bf16.msra.mxu0 %v8870_v45  ;;  %7013 = vmatpush1.bf16.msra.mxu1 %v8873_v47 }
 0x306   :  { %6842 = vmatprep.subr.bf16.mxu0 %v8878_v49  ;;  %7014 = vmatprep.subr.bf16.mxu1 %v8881_v50 }
 0x309   :  { %6843 = vmatpush1.bf16.msra.mxu0 %v8876_v51  ;;  %7015 = vmatpush1.bf16.msra.mxu1 %v8879_v52  ;;  %v8890_v52 = vld [vmem:[#allocation8 + $0x64] ss:$16 sps:$4 sm:$0xff]  }
 0x30a   :  { %6844 = vmatprep.subr.bf16.mxu0 %v8884_v53  ;;  %7016 = vmatprep.subr.bf16.mxu1 %v8887_v56  ;;  %v8893_v53 = vld [vmem:[#allocation8 + $0x6c] ss:$16 sps:$4 sm:$0xff]   ;;  %v8891_v56 = vld [vmem:[#allocation8 + $0x68] ss:$16 sps:$4 sm:$0xff]  }
 0x30d   :  { %6845 = vmatpush1.bf16.msra.mxu0 %v8882_v57  ;;  %7017 = vmatpush1.bf16.msra.mxu1 %v8885_v58  ;;  %v8896_v57 = vld [vmem:[#allocation8 + $0x84] ss:$16 sps:$4 sm:$0xff]   ;;  %v8899_v58 = vld [vmem:[#allocation8 + $0x8c] ss:$16 sps:$4 sm:$0xff]  }
 0x30e   :  { %6846 = vmatprep.subr.bf16.mxu0 %v8890_v52  ;;  %7018 = vmatprep.subr.bf16.mxu1 %v8893_v53  ;;  %v8950_v52 = vld [vmem:[#allocation8 + $0x1a4] ss:$16 sps:$4 sm:$0xff]   ;;  %v8953_v53 = vld [vmem:[#allocation8 + $0x1ac] ss:$16 sps:$4 sm:$0xff]  }
 0x311   :  { %7019 = vmatpush1.bf16.msra.mxu1 %v8891_v56  ;;  %v8951_v56 = vld [vmem:[#allocation8 + $0x1a8] ss:$16 sps:$4 sm:$0xff]  }
 0x312   :  { %7020 = vmatprep.subr.bf16.mxu1 %v8899_v58  ;;  %v8959_v58 = vld [vmem:[#allocation8 + $0x1cc] ss:$16 sps:$4 sm:$0xff]  }
 0x3d7   :  { %v4695_v16 = vpop.f32.mrb[4].mxu0  ;;  %v4910_v23 = vpop.f32.mrb[4].mxu1 }
 0x3d8   :  { %v8733_v17 = vadd.f32 %v4695_v16, %v788_v7  ;;  %v4697_v24 = vpop.f32.mrb[5].mxu0  ;;  %v4912_v26 = vpop.f32.mrb[5].mxu1  ;;  %v8737_v34 = vadd.f32 %v4910_v23, %v796_v22 }
 0x3d9   :  { %v9750_v25 = vadd.f32 %v4697_v24, %v792_v9  ;;  %v4699_v14 = vpop.f32.mrb[6].mxu0  ;;  %v4914_v31 = vpop.f32.mrb[6].mxu1  ;;  %v8738_v37 = vadd.f32 %v4912_v26, %v800_v29 }
 0x3da   :  { %v4926_v28 = vadd.f32 %v8733_v17, %v4925_v19  ;;  %v9754_v30 = vadd.f32 %v4699_v14, %v788_v7  ;;  %v4701_v32 = vpop.f32.mrb[7].mxu0  ;;  %v4916_v33 = vpop.f32.mrb[7].mxu1  ;;  %v9760_v38 = vadd.f32 %v4914_v31, %v796_v22 }
 0x3db   :  { %v9756_v21 = vadd.f32 %v4701_v32, %v792_v9  ;;  %v9764_v43 = vadd.f32 %v4916_v33, %v800_v29 }
 0x3dc   :  { %v4927_v35 = vadd.f32 %v9750_v25, %v4926_v28  ;;  %v4935_v36 = vadd.f32 %v9754_v30, %v4934_v27 }
 0x3de   :  { %v4936_v39 = vadd.f32 %v9756_v21, %v4935_v36  ;;  %v4928_v40 = vadd.f32 %v8737_v34, %v4927_v35 }
 0x3e0   :  { %v4929_v41 = vadd.f32 %v8738_v37, %v4928_v40  ;;  %v4937_v42 = vadd.f32 %v9760_v38, %v4936_v39 }
 0x3e2   :  { %4930 = vadd.xlane.f32.xlu0 %v4929_v41  ;;  %v4938_v44 = vadd.f32 %v9764_v43, %v4937_v42 }
 0x3e6   :  { %4939 = vadd.xlane.f32.xlu0 %v4938_v44 }
 0x46f   :  { %v4931_v62 = vpop.xlane.xlu0 %4930 }
 0x470   :  { %v4942_v2 = vmul.f32 0.0009765625, %v4931_v62  ;;  %v8894_v62 = vld [vmem:[#allocation8 + $0x80] ss:$16 sps:$4 sm:$0xff]  }
 0x472   :  { %v9768_v4 = vsub.f32 %v9705_v60, %v4942_v2  ;;  %v9771_v5 = vsub.f32 %v9708_v61, %v4942_v2  ;;  %v9774_v15 = vsub.f32 %v9726_v11, %v4942_v2  ;;  %v9777_v10 = vsub.f32 %v9740_v12, %v4942_v2 }
 0x473   :  { %v4940_v7 = vpop.xlane.xlu0 %4939  ;;  %v9783_v22 = vsub.f32 %v8733_v17, %v4942_v2  ;;  %v9797_v24 = vsub.f32 %v9750_v25, %v4942_v2  ;;  %v9817_v32 = vsub.f32 %v8738_v37, %v4942_v2 }
 0x474   :  { %v4943_v9 = vmul.f32 0.0009765625, %v4940_v7  ;;  %v4960_v16 = vmul.f32 %v9768_v4, %v9768_v4  ;;  %v4961_v19 = vmul.f32 %v9771_v5, %v9771_v5  ;;  %v4962_v60 = vmul.f32 %v9774_v15, %v9774_v15  ;;  %v8902_v7 = vld [vmem:[#allocation8 + $0xa4] ss:$16 sps:$4 sm:$0xff]  }
 0x475   :  { %v4963_v17 = vmul.f32 %v9777_v10, %v9777_v10  ;;  %v4967_v42 = vmul.f32 %v9817_v32, %v9817_v32 }
 0x476   :  { %v4976_v61 = vadd.f32 %v4961_v19, %v4960_v16  ;;  %v9788_v11 = vsub.f32 %v9714_v0, %v4943_v9  ;;  %v9791_v23 = vsub.f32 %v9717_v1, %v4943_v9  ;;  %v9794_v12 = vsub.f32 %v9733_v18, %v4943_v9  ;;  %v8900_v16 = vld [vmem:[#allocation8 + $0xa0] ss:$16 sps:$4 sm:$0xff]   ;;  %v8903_v19 = vld [vmem:[#allocation8 + $0xa8] ss:$16 sps:$4 sm:$0xff]  }
 0x477   :  { %v9804_v27 = vsub.f32 %v9747_v20, %v4943_v9  ;;  %v9808_v1 = vsub.f32 %v8737_v34, %v4942_v2  ;;  %v4964_v18 = vmul.f32 %v9783_v22, %v9783_v22  ;;  %v9813_v28 = vsub.f32 %v9754_v30, %v4943_v9  ;;  %v8897_v2 = vld [vmem:[#allocation8 + $0x88] ss:$16 sps:$4 sm:$0xff]  }
 0x478   :  { %v4977_v26 = vadd.f32 %v4976_v61, %v4962_v60  ;;  %v4968_v14 = vmul.f32 %v9788_v11, %v9788_v11  ;;  %v4969_v0 = vmul.f32 %v9791_v23, %v9791_v23  ;;  %v4970_v29 = vmul.f32 %v9794_v12, %v9794_v12  ;;  %7021 = vmatpush1.bf16.msra.mxu1 %v8897_v2  ;;  %v8908_v60 = vld [vmem:[#allocation8 + $0xc4] ss:$16 sps:$4 sm:$0xff]   ;;  %v8911_v61 = vld [vmem:[#allocation8 + $0xcc] ss:$16 sps:$4 sm:$0xff]   ;;  %v8957_v2 = vld [vmem:[#allocation8 + $0x1c8] ss:$16 sps:$4 sm:$0xff]  }
 0x479   :  { %v4965_v20 = vmul.f32 %v9797_v24, %v9797_v24  ;;  %v9822_v34 = vsub.f32 %v9756_v21, %v4943_v9  ;;  %v4971_v35 = vmul.f32 %v9804_v27, %v9804_v27  ;;  %v4966_v30 = vmul.f32 %v9808_v1, %v9808_v1 }
 0x47a   :  { %v4978_v25 = vadd.f32 %v4977_v26, %v4963_v17  ;;  %v4985_v31 = vadd.f32 %v4969_v0, %v4968_v14  ;;  %v9829_v40 = vsub.f32 %v9760_v38, %v4943_v9  ;;  %v4972_v37 = vmul.f32 %v9813_v28, %v9813_v28  ;;  %v8906_v17 = vld [vmem:[#allocation8 + $0xc0] ss:$16 sps:$4 sm:$0xff]   ;;  %v8909_v26 = vld [vmem:[#allocation8 + $0xc8] ss:$16 sps:$4 sm:$0xff]   ;;  %v8914_v14 = vld [vmem:[#allocation8 + $0xe4] ss:$16 sps:$4 sm:$0xff]  }
 0x47b   :  { %v9836_v44 = vsub.f32 %v9764_v43, %v4943_v9  ;;  %v4973_v45 = vmul.f32 %v9822_v34, %v9822_v34  ;;  %v8888_v43 = vld [vmem:[#allocation8 + $0x60] ss:$16 sps:$4 sm:$0xff]   ;;  %v8905_v9 = vld [vmem:[#allocation8 + $0xac] ss:$16 sps:$4 sm:$0xff]  }
 0x47c   :  { %v4979_v33 = vadd.f32 %v4978_v25, %v4964_v18  ;;  %v4986_v36 = vadd.f32 %v4985_v31, %v4970_v29  ;;  %v4974_v38 = vmul.f32 %v9829_v40, %v9829_v40  ;;  %6847 = vmatpush1.bf16.msra.mxu0 %v8888_v43  ;;  %7022 = vmatprep.subr.bf16.mxu1 %v8905_v9  ;;  %v8917_v0 = vld [vmem:[#allocation8 + $0xec] ss:$16 sps:$4 sm:$0xff]   ;;  %v8912_v18 = vld [vmem:[#allocation8 + $0xe0] ss:$16 sps:$4 sm:$0xff]   ;;  %v8915_v25 = vld [vmem:[#allocation8 + $0xe8] ss:$16 sps:$4 sm:$0xff]  }
 0x47d   :  { %v4975_v49 = vmul.f32 %v9836_v44, %v9836_v44  ;;  %6848 = vmatprep.subr.bf16.mxu0 %v8896_v57  ;;  %7023 = vmatpush1.bf16.msra.mxu1 %v8903_v19  ;;  %v8920_v29 = vld [vmem:[#allocation8 + $0x104] ss:$16 sps:$4 sm:$0xff]   ;;  %v8923_v31 = vld [vmem:[#allocation8 + $0x10c] ss:$16 sps:$4 sm:$0xff]   ;;  %v8948_v43 = vld [vmem:[#allocation8 + $0x1a0] ss:$16 sps:$4 sm:$0xff]  }
 0x47e   :  { %v4980_v39 = vadd.f32 %v4979_v33, %v4965_v20  ;;  %v4987_v41 = vadd.f32 %v4986_v36, %v4971_v35  ;;  %7024 = vmatprep.subr.bf16.mxu1 %v8911_v61  ;;  %v8918_v20 = vld [vmem:[#allocation8 + $0x100] ss:$16 sps:$4 sm:$0xff]   ;;  %v8921_v33 = vld [vmem:[#allocation8 + $0x108] ss:$16 sps:$4 sm:$0xff]   ;;  %v8926_v35 = vld [vmem:[#allocation8 + $0x124] ss:$16 sps:$4 sm:$0xff]  }
 0x47f   :  { %v8929_v36 = vld [vmem:[#allocation8 + $0x12c] ss:$16 sps:$4 sm:$0xff]   ;;  %v8956_v57 = vld [vmem:[#allocation8 + $0x1c4] ss:$16 sps:$4 sm:$0xff]   ;;  %v8963_v19 = vld [vmem:[#allocation8 + $0x1e8] ss:$16 sps:$4 sm:$0xff]  }
 0x480   :  { %v4981_v21 = vadd.f32 %v4980_v39, %v4966_v30  ;;  %v4988_v46 = vadd.f32 %v4987_v41, %v4972_v37  ;;  %6849 = vmatpush1.bf16.msra.mxu0 %v8894_v62  ;;  %v8924_v30 = vld [vmem:[#allocation8 + $0x120] ss:$16 sps:$4 sm:$0xff]   ;;  %v8927_v39 = vld [vmem:[#allocation8 + $0x128] ss:$16 sps:$4 sm:$0xff]   ;;  %v8932_v37 = vld [vmem:[#allocation8 + $0x144] ss:$16 sps:$4 sm:$0xff]  }
 0x481   :  { %6850 = vmatprep.subr.bf16.mxu0 %v8902_v7  ;;  %7025 = vmatpush1.bf16.msra.mxu1 %v8909_v26  ;;  %v8935_v41 = vld [vmem:[#allocation8 + $0x14c] ss:$16 sps:$4 sm:$0xff]   ;;  %v8954_v62 = vld [vmem:[#allocation8 + $0x1c0] ss:$16 sps:$4 sm:$0xff]   ;;  %v8962_v7 = vld [vmem:[#allocation8 + $0x1e4] ss:$16 sps:$4 sm:$0xff]  }
 0x482   :  { %v4982_v47 = vadd.f32 %v4981_v21, %v4967_v42  ;;  %v4989_v48 = vadd.f32 %v4988_v46, %v4973_v45  ;;  %7026 = vmatprep.subr.bf16.mxu1 %v8917_v0  ;;  %v8930_v42 = vld [vmem:[#allocation8 + $0x140] ss:$16 sps:$4 sm:$0xff]   ;;  %v8933_v21 = vld [vmem:[#allocation8 + $0x148] ss:$16 sps:$4 sm:$0xff]   ;;  %v8938_v45 = vld [vmem:[#allocation8 + $0x164] ss:$16 sps:$4 sm:$0xff]  }
 0x483   :  { %v8941_v46 = vld [vmem:[#allocation8 + $0x16c] ss:$16 sps:$4 sm:$0xff]  }
 0x484   :  { %4983 = vadd.xlane.f32.xlu1 %v4982_v47  ;;  %v4990_v50 = vadd.f32 %v4989_v48, %v4974_v38  ;;  %6851 = vmatpush1.bf16.msra.mxu0 %v8900_v16  ;;  %v8936_v47 = vld [vmem:[#allocation8 + $0x160] ss:$16 sps:$4 sm:$0xff]   ;;  %v8939_v38 = vld [vmem:[#allocation8 + $0x168] ss:$16 sps:$4 sm:$0xff]   ;;  %v8944_v48 = vld [vmem:[#allocation8 + $0x184] ss:$16 sps:$4 sm:$0xff]  }
 0x485   :  { %6852 = vmatprep.subr.bf16.mxu0 %v8908_v60  ;;  %7027 = vmatpush1.bf16.msra.mxu1 %v8915_v25  ;;  %v8965_v9 = vld [vmem:[#allocation8 + $0x1ec] ss:$16 sps:$4 sm:$0xff]   ;;  %v8960_v16 = vld [vmem:[#allocation8 + $0x1e0] ss:$16 sps:$4 sm:$0xff]   ;;  %v8968_v60 = vld [vmem:[#allocation8 + $0x204] ss:$16 sps:$4 sm:$0xff]  }
 0x486   :  { %v4991_v51 = vadd.f32 %v4990_v50, %v4975_v49  ;;  %7028 = vmatprep.subr.bf16.mxu1 %v8923_v31  ;;  %v8947_v49 = vld [vmem:[#allocation8 + $0x18c] ss:$16 sps:$4 sm:$0xff]   ;;  %v8942_v50 = vld [vmem:[#allocation8 + $0x180] ss:$16 sps:$4 sm:$0xff]  }
 0x487   :  { %v8971_v61 = vld [vmem:[#allocation8 + $0x20c] ss:$16 sps:$4 sm:$0xff]  }
 0x488   :  { %4992 = vadd.xlane.f32.xlu1 %v4991_v51  ;;  %6853 = vmatpush1.bf16.msra.mxu0 %v8906_v17  ;;  %v8945_v51 = vld [vmem:[#allocation8 + $0x188] ss:$16 sps:$4 sm:$0xff]  }
 0x489   :  { %6854 = vmatprep.subr.bf16.mxu0 %v8914_v14  ;;  %7029 = vmatpush1.bf16.msra.mxu1 %v8921_v33  ;;  %v4922_v31 = vld [vmem:[#allocation7 + $0x2] ss:$4 sm:$0xff] }
 0x48a   :  { %7030 = vmatprep.subr.bf16.mxu1 %v8929_v36  ;;  %v9848_v33 = vrot.slane %v4922_v31, %v9721_v3 }
 0x48c   :  { %6855 = vmatpush1.bf16.msra.mxu0 %v8912_v18 }
 0x48d   :  { %6856 = vmatprep.subr.bf16.mxu0 %v8920_v29  ;;  %7031 = vmatpush1.bf16.msra.mxu1 %v8927_v39  ;;  %v4920_v29 = vld [vmem:[#allocation7 + $0x1] ss:$4 sm:$0xff] }
 0x48e   :  { %7032 = vmatprep.subr.bf16.mxu1 %v8935_v41  ;;  %v5024_v36 = vrot.slane %v4920_v29, %v9698_v55  ;;  %v5032_v39 = vrot.slane %v4920_v29, %v9711_v63  ;;  %v9857_v41 = vrot.slane %v4920_v29, %v9723_v6 }
 0x490   :  { %6857 = vmatpush1.bf16.msra.mxu0 %v8918_v20  ;;  %v9845_v20 = vrot.slane %v4920_v29, %v9721_v3  ;;  %v5077_v3 = vrot.slane %v4922_v31, %v9696_v54 }
 0x491   :  { %6858 = vmatprep.subr.bf16.mxu0 %v8926_v35  ;;  %7033 = vmatpush1.bf16.msra.mxu1 %v8933_v21  ;;  %v9851_v35 = vrot.slane %v4920_v29, %v9736_v8  ;;  %v5081_v21 = vrot.slane %v4922_v31, %v9698_v55 }
 0x492   :  { %7034 = vmatprep.subr.bf16.mxu1 %v8941_v46 }
 0x494   :  { %6859 = vmatpush1.bf16.msra.mxu0 %v8924_v30  ;;  %v5020_v30 = vrot.slane %v4920_v29, %v9696_v54 }
 0x495   :  { %6860 = vmatprep.subr.bf16.mxu0 %v8932_v37  ;;  %7035 = vmatpush1.bf16.msra.mxu1 %v8939_v38  ;;  %v5089_v38 = vrot.slane %v4922_v31, %v9711_v63 }
 0x496   :  { %7036 = vmatprep.subr.bf16.mxu1 %v8947_v49 }
 0x498   :  { %6861 = vmatpush1.bf16.msra.mxu0 %v8930_v42  ;;  %v9860_v42 = vrot.slane %v4920_v29, %v9743_v13 }
 0x499   :  { %6862 = vmatprep.subr.bf16.mxu0 %v8938_v45  ;;  %7037 = vmatpush1.bf16.msra.mxu1 %v8945_v51 }
 0x49a   :  { %7038 = vmatprep.subr.bf16.mxu1 %v8953_v53 }
 0x49c   :  { %6863 = vmatpush1.bf16.msra.mxu0 %v8936_v47 }
 0x49d   :  { %6864 = vmatprep.subr.bf16.mxu0 %v8944_v48  ;;  %7039 = vmatpush1.bf16.msra.mxu1 %v8951_v56  ;;  %v5028_v48 = vrot.slane %v4920_v29, %v9702_v59 }
 0x49e   :  { %7040 = vmatprep.subr.bf16.mxu1 %v8959_v58 }
 0x4a0   :  { %6865 = vmatpush1.bf16.msra.mxu0 %v8942_v50 }
 0x4a1   :  { %6866 = vmatprep.subr.bf16.mxu0 %v8950_v52  ;;  %7041 = vmatpush1.bf16.msra.mxu1 %v8957_v2 }
 0x4a2   :  { %7042 = vmatprep.subr.bf16.mxu1 %v8965_v9 }
 0x4a4   :  { %6867 = vmatpush1.bf16.msra.mxu0 %v8948_v43 }
 0x4a5   :  { %6868 = vmatprep.subr.bf16.mxu0 %v8956_v57  ;;  %7043 = vmatpush1.bf16.msra.mxu1 %v8963_v19  ;;  %v5085_v19 = vrot.slane %v4922_v31, %v9702_v59 }
 0x4a6   :  { %7055 = vmatprep.subr.bf16.mxu1 %v8971_v61 }
 0x4a8   :  { %6869 = vmatpush1.bf16.msra.mxu0 %v8954_v62 }
 0x4a9   :  { %6870 = vmatprep.subr.bf16.mxu0 %v8962_v7 }
 0x4ac   :  { %6871 = vmatpush1.bf16.msra.mxu0 %v8960_v16 }
 0x4ad   :  { %6883 = vmatprep.subr.bf16.mxu0 %v8968_v60 }
 0x511   :  { %v4984_v17 = vpop.xlane.xlu1 %4983 }
 0x512   :  { %v4994_v26 = vmul.f32 0.0009765625, %v4984_v17 }
 0x514   :  { %v4996_v14 = vadd.f32 1e-05, %v4994_v26 }
 0x515   :  { %v4993_v0 = vpop.xlane.xlu1 %4992 }
 0x516   :  { %9286 = vrsqrt.f32 %v4996_v14  ;;  %v4995_v18 = vmul.f32 0.0009765625, %v4993_v0 }
 0x518   :  { %v4997_v25 = vadd.f32 1e-05, %v4995_v18 }
 0x51a   :  { %9288 = vrsqrt.f32 %v4997_v25 }
 0x520   :  { %v9287_v37 = vpop.eup %9286 }
 0x521   :  { %v5001_v45 = vmul.f32 %v9287_v37, %v9771_v5  ;;  %v5000_v46 = vmul.f32 %v9287_v37, %v9768_v4  ;;  %v5003_v47 = vmul.f32 %v9287_v37, %v9777_v10  ;;  %v5005_v49 = vmul.f32 %v9287_v37, %v9797_v24 }
 0x522   :  { %v5007_v50 = vmul.f32 %v9287_v37, %v9817_v32  ;;  %v5006_v51 = vmul.f32 %v9287_v37, %v9808_v1  ;;  %v5002_v56 = vmul.f32 %v9287_v37, %v9774_v15  ;;  %v9874_v5 = vrot.slane %v4922_v31, %v9736_v8 }
 0x523   :  { %v5058_v52 = vmul.f32 %v5024_v36, %v5001_v45  ;;  %v5057_v53 = vmul.f32 %v5020_v30, %v5000_v46  ;;  %v5060_v43 = vmul.f32 %v5032_v39, %v5003_v47  ;;  %v9877_v4 = vmul.f32 %v9857_v41, %v5005_v49 }
 0x524   :  { %v9880_v10 = vmul.f32 %v9860_v42, %v5007_v50  ;;  %v9883_v24 = vmul.f32 %v9851_v35, %v5006_v51  ;;  %v9885_v32 = vpop.eup %9288  ;;  %v9888_v1 = vrot.slane %v4922_v31, %v9723_v6  ;;  %v5059_v6 = vmul.f32 %v5028_v48, %v5002_v56 }
 0x525   :  { %v5115_v57 = vadd.f32 %v5081_v21, %v5058_v52  ;;  %v5114_v58 = vadd.f32 %v5077_v3, %v5057_v53  ;;  %v9890_v15 = vadd.f32 %v5089_v38, %v5060_v43  ;;  %v5009_v8 = vmul.f32 %v9885_v32, %v9791_v23 }
 0x526   :  { %v5008_v62 = vmul.f32 %v9885_v32, %v9788_v11  ;;  %v5011_v2 = vmul.f32 %v9885_v32, %v9804_v27  ;;  %v5010_v7 = vmul.f32 %v9885_v32, %v9794_v12  ;;  %v5004_v26 = vmul.f32 %v9287_v37, %v9783_v22 }
 0x527   :  { %v5147_v9 = vmul.f32 %v5115_v57, %v5115_v57  ;;  %v5146_v16 = vmul.f32 %v5114_v58, %v5114_v58  ;;  %v5066_v60 = vmul.f32 %v5024_v36, %v5009_v8  ;;  %v5149_v11 = vmul.f32 %v9890_v15, %v9890_v15 }
 0x528   :  { %v5065_v61 = vmul.f32 %v5020_v30, %v5008_v62  ;;  %v5068_v17 = vmul.f32 %v5032_v39, %v5011_v2  ;;  %v5067_v0 = vmul.f32 %v5028_v48, %v5010_v7  ;;  %v9905_v27 = vrot.slane %v4922_v31, %v9743_v13 }
 0x529   :  { %v5163_v23 = vmul.f32 %v5147_v9, %v5115_v57  ;;  %v5162_v14 = vmul.f32 %v5146_v16, %v5114_v58  ;;  %v9907_v12 = vadd.f32 %v5081_v21, %v5066_v60  ;;  %v5165_v30 = vmul.f32 %v5149_v11, %v9890_v15 }
 0x52a   :  { %v9909_v18 = vadd.f32 %v5077_v3, %v5065_v61  ;;  %v9911_v25 = vadd.f32 %v5089_v38, %v5068_v17  ;;  %v5116_v22 = vadd.f32 %v5085_v19, %v5059_v6  ;;  %v9918_v45 = vadd.f32 %v5085_v19, %v5067_v0 }
 0x52b   :  { %v5179_v29 = vmul.f32 0.044715, %v5163_v23  ;;  %v5178_v36 = vmul.f32 0.044715, %v5162_v14  ;;  %v5155_v39 = vmul.f32 %v9907_v12, %v9907_v12  ;;  %v5061_v13 = vmul.f32 %v9845_v20, %v5004_v26 }
 0x52c   :  { %v5154_v37 = vmul.f32 %v9909_v18, %v9909_v18  ;;  %v9921_v31 = vmul.f32 0.5, %v5115_v57  ;;  %v5157_v46 = vmul.f32 %v9911_v25, %v9911_v25  ;;  %v9926_v38 = vmul.f32 0.5, %v5114_v58 }
 0x52d   :  { %v5195_v21 = vadd.f32 %v5179_v29, %v5115_v57  ;;  %v5194_v3 = vadd.f32 %v5178_v36, %v5114_v58  ;;  %v5171_v47 = vmul.f32 %v5155_v39, %v9907_v12  ;;  %v5181_v49 = vmul.f32 0.044715, %v5165_v30 }
 0x52e   :  { %v5170_v48 = vmul.f32 %v5154_v37, %v9909_v18  ;;  %v5173_v52 = vmul.f32 %v5157_v46, %v9911_v25  ;;  %v5148_v53 = vmul.f32 %v5116_v22, %v5116_v22  ;;  %v5156_v8 = vmul.f32 %v9918_v45, %v9918_v45 }
 0x52f   :  { %v5211_v50 = vmul.f32 0.7978846, %v5195_v21  ;;  %v5210_v51 = vmul.f32 0.7978846, %v5194_v3  ;;  %v5187_v43 = vmul.f32 0.044715, %v5171_v47  ;;  %v5197_v57 = vadd.f32 %v5181_v49, %v9890_v15 }
 0x530   :  { %v5186_v56 = vmul.f32 0.044715, %v5170_v48  ;;  %v5189_v62 = vmul.f32 0.044715, %v5173_v52  ;;  %v5164_v2 = vmul.f32 %v5148_v53, %v5116_v22  ;;  %v5013_v58 = vmul.f32 %v9885_v32, %v9822_v34 }
 0x531   :  { %9290 = vtanh.f32 %v5211_v50  ;;  %v5203_v7 = vadd.f32 %v5187_v43, %v9907_v12  ;;  %v5213_v16 = vmul.f32 0.7978846, %v5197_v57  ;;  %v5172_v19 = vmul.f32 %v5156_v8, %v9918_v45 }
 0x532   :  { %v5202_v9 = vadd.f32 %v5186_v56, %v9909_v18  ;;  %9292 = vtanh.f32 %v5210_v51  ;;  %v5205_v6 = vadd.f32 %v5189_v62, %v9911_v25  ;;  %v5180_v60 = vmul.f32 0.044715, %v5164_v2 }
 0x533   :  { %v5070_v61 = vmul.f32 %v9857_v41, %v5013_v58  ;;  %v5219_v17 = vmul.f32 0.7978846, %v5203_v7  ;;  %9294 = vtanh.f32 %v5213_v16  ;;  %v9942_v23 = vadd.f32 %v9888_v1, %v9877_v4 }
 0x534   :  { %v5218_v26 = vmul.f32 0.7978846, %v5202_v9  ;;  %v5221_v34 = vmul.f32 0.7978846, %v5205_v6  ;;  %v5188_v14 = vmul.f32 0.044715, %v5172_v19  ;;  %v5196_v11 = vadd.f32 %v5180_v60, %v5116_v22 }
 0x535   :  { %v9945_v0 = vadd.f32 %v9888_v1, %v5070_v61  ;;  %9296 = vtanh.f32 %v5219_v17  ;;  %v5133_v29 = vmul.f32 0.5, %v9890_v15  ;;  %v5151_v36 = vmul.f32 %v9942_v23, %v9942_v23 }
 0x536   :  { %v5012_v41 = vmul.f32 %v9885_v32, %v9813_v28  ;;  %9298 = vtanh.f32 %v5218_v26  ;;  %v9952_v30 = vmul.f32 0.5, %v5116_v22  ;;  %v5204_v4 = vadd.f32 %v5188_v14, %v9918_v45 }
 0x537   :  { %v5212_v39 = vmul.f32 0.7978846, %v5196_v11  ;;  %9300 = vtanh.f32 %v5221_v34  ;;  %v5159_v1 = vmul.f32 %v9945_v0, %v9945_v0  ;;  %v5167_v37 = vmul.f32 %v5151_v36, %v9942_v23 }
 0x538   :  { %v5069_v15 = vmul.f32 %v9845_v20, %v5012_v41  ;;  %v5220_v21 = vmul.f32 0.7978846, %v5204_v4  ;;  %v9960_v3 = vadd.f32 %v9848_v33, %v5061_v13  ;;  %v5015_v28 = vmul.f32 %v9885_v32, %v9836_v44 }
 0x539   :  { %9302 = vtanh.f32 %v5212_v39  ;;  %v5175_v22 = vmul.f32 %v5159_v1, %v9945_v0  ;;  %v5183_v46 = vmul.f32 0.044715, %v5167_v37  ;;  %v9970_v48 = vadd.f32 %v9905_v27, %v9880_v10 }
 0x53a   :  { %v9966_v47 = vadd.f32 %v9848_v33, %v5069_v15  ;;  %v5139_v20 = vmul.f32 0.5, %v9907_v12  ;;  %9304 = vtanh.f32 %v5220_v21  ;;  %v5150_v13 = vmul.f32 %v9960_v3, %v9960_v3 }
 0x53b   :  { %v9291_v49 = vpop.eup %9290  ;;  %v5072_v50 = vmul.f32 %v9860_v42, %v5015_v28  ;;  %v5138_v52 = vmul.f32 0.5, %v9909_v18  ;;  %v5191_v53 = vmul.f32 0.044715, %v5175_v22  ;;  %v5199_v33 = vadd.f32 %v5183_v46, %v9942_v23  ;;  %v8969_v22 = vld [vmem:[#allocation8 + $0x208] ss:$16 sps:$4 sm:$0xff]  }
 0x53c   :  { %v9293_v44 = vpop.eup %9292  ;;  %v5243_v51 = vadd.f32 1.0, %v9291_v49  ;;  %v5158_v10 = vmul.f32 %v9966_v47, %v9966_v47  ;;  %v5166_v56 = vmul.f32 %v5150_v13, %v9960_v3  ;;  %v5141_v8 = vmul.f32 0.5, %v9911_v25 }
 0x53d   :  { %v5242_v43 = vadd.f32 1.0, %v9293_v44  ;;  %v9982_v12 = vadd.f32 %v9905_v27, %v5072_v50  ;;  %v9295_v57 = vpop.eup %9294  ;;  %v5207_v42 = vadd.f32 %v5191_v53, %v9945_v0  ;;  %v5215_v62 = vmul.f32 0.7978846, %v5199_v33  ;;  %v8974_v53 = vld [vmem:[#allocation8 + $0x224] ss:$16 sps:$4 sm:$0xff]  }
 0x53e   :  { %v5153_v18 = vmul.f32 %v9970_v48, %v9970_v48  ;;  %v5259_v2 = vmul.f32 %v5243_v51, %v9921_v31  ;;  %v5245_v58 = vadd.f32 1.0, %v9295_v57  ;;  %v5140_v7 = vmul.f32 0.5, %v9918_v45  ;;  %v8977_v33 = vld [vmem:[#allocation8 + $0x22c] ss:$16 sps:$4 sm:$0xff]   ;;  %v8972_v57 = vld [vmem:[#allocation8 + $0x220] ss:$16 sps:$4 sm:$0xff]  }
 0x53f   :  { %v5174_v9 = vmul.f32 %v5158_v10, %v9966_v47  ;;  %v9297_v16 = vpop.eup %9296  ;;  %v5258_v27 = vmul.f32 %v5242_v43, %v9926_v38  ;;  %v5223_v6 = vmul.f32 0.7978846, %v5207_v42  ;;  %9306 = vtanh.f32 %v5215_v62  ;;  %v8966_v38 = vld [vmem:[#allocation8 + $0x200] ss:$16 sps:$4 sm:$0xff]  }
 0x540   :  { %v5182_v19 = vmul.f32 0.044715, %v5166_v56  ;;  %v9299_v25 = vpop.eup %9298  ;;  %v5251_v60 = vadd.f32 1.0, %v9297_v16  ;;  %v5261_v61 = vmul.f32 %v5245_v58, %v5133_v29  ;;  %v5161_v26 = vmul.f32 %v9982_v12, %v9982_v12  ;;  %v8978_v16 = vld [vmem:[#allocation8 + $0x240] ss:$16 sps:$4 sm:$0xff]  }
 0x541   :  { %v5190_v17 = vmul.f32 0.044715, %v5174_v9  ;;  %v9301_v34 = vpop.eup %9300  ;;  %v5250_v31 = vadd.f32 1.0, %v9299_v25  ;;  %9308 = vtanh.f32 %v5223_v6  ;;  %v5169_v14 = vmul.f32 %v5153_v18, %v9970_v48  ;;  %v8980_v18 = vld [vmem:[#allocation8 + $0x244] ss:$16 sps:$4 sm:$0xff]  }
 0x542   :  { %v5198_v45 = vadd.f32 %v5182_v19, %v9960_v3  ;;  %v5267_v36 = vmul.f32 %v5251_v60, %v5139_v20  ;;  %v5253_v41 = vadd.f32 1.0, %v9301_v34  ;;  %v5177_v39 = vmul.f32 %v5161_v26, %v9982_v12  ;;  %v8981_v6 = vld [vmem:[#allocation8 + $0x248] ss:$16 sps:$4 sm:$0xff]  }
 0x543   :  { %v9303_v11 = vpop.eup %9302  ;;  %v5206_v4 = vadd.f32 %v5190_v17, %v9966_v47  ;;  %v5266_v29 = vmul.f32 %v5250_v31, %v5138_v52  ;;  %v5185_v15 = vmul.f32 0.044715, %v5169_v14  ;;  %v5014_v56 = vmul.f32 %v9885_v32, %v9829_v40  ;;  %v8989_v17 = vld [vmem:[#allocation8 + $0x26c] ss:$16 sps:$4 sm:$0xff]   ;;  %v8984_v14 = vld [vmem:[#allocation8 + $0x260] ss:$16 sps:$4 sm:$0xff]  }
 0x544   :  { %v5244_v1 = vadd.f32 1.0, %v9303_v11  ;;  %v5214_v37 = vmul.f32 0.7978846, %v5198_v45  ;;  %v9305_v21 = vpop.eup %9304  ;;  %v5275_v28 = vpack.c.bf16 %v5267_v36, %v5259_v2  ;;  %v5269_v46 = vmul.f32 %v5253_v41, %v5141_v8  ;;  %v8975_v8 = vld [vmem:[#allocation8 + $0x228] ss:$16 sps:$4 sm:$0xff]  }
 0x545   :  { %v5222_v49 = vmul.f32 0.7978846, %v5206_v4  ;;  %v5193_v13 = vmul.f32 0.044715, %v5177_v39  ;;  %v5274_v50 = vpack.c.bf16 %v5266_v29, %v5258_v27  ;;  %v5252_v44 = vadd.f32 1.0, %v9305_v21 }
 0x546   :  { %v5260_v20 = vmul.f32 %v5244_v1, %v9952_v30  ;;  %9310 = vtanh.f32 %v5214_v37  ;;  %6872 = vmatprep.mubr.bf16.mxu0 %v5275_v28  ;;  %7044 = vmatprep.mubr.bf16.mxu1 %v5275_v28  ;;  %v5277_v51 = vpack.c.bf16 %v5269_v46, %v5261_v61  ;;  %v5201_v52 = vadd.f32 %v5185_v15, %v9970_v48  ;;  %v8983_v2 = vld [vmem:[#allocation8 + $0x24c] ss:$16 sps:$4 sm:$0xff]   ;;  %v8986_v61 = vld [vmem:[#allocation8 + $0x264] ss:$16 sps:$4 sm:$0xff]  }
 0x547   :  { %9312 = vtanh.f32 %v5222_v49  ;;  %v5209_v43 = vadd.f32 %v5193_v13, %v9982_v12  ;;  %6873 = vmatmul.mubr.bf16.vlgmr.msra.gmra.mrb[8].mxu0 %v5274_v50  ;;  %7045 = vmatmul.mubr.bf16.vlgmr.msra.gmra.mrb[8].mxu1 %v5274_v50  ;;  %v5268_v10 = vmul.f32 %v5252_v44, %v5140_v7  ;;  %v10005_v30 = vadd.f32 %v9874_v5, %v9883_v24  ;;  %v8992_v36 = vld [vmem:[#allocation8 + $0x284] ss:$16 sps:$4 sm:$0xff]   ;;  %v8995_v39 = vld [vmem:[#allocation8 + $0x28c] ss:$16 sps:$4 sm:$0xff]   ;;  %v8990_v49 = vld [vmem:[#allocation8 + $0x280] ss:$16 sps:$4 sm:$0xff]  }
 0x548   :  { %6884 = vmatpush1.bf16.msra.mxu0 %v8966_v38  ;;  %7056 = vmatpush1.bf16.msra.mxu1 %v8969_v22  ;;  %v5217_v42 = vmul.f32 0.7978846, %v5201_v52  ;;  %v5071_v9 = vmul.f32 %v9851_v35, %v5014_v56  ;;  %v5135_v19 = vmul.f32 0.5, %v9942_v23  ;;  %v5143_v35 = vmul.f32 0.5, %v9945_v0  ;;  %v8987_v0 = vld [vmem:[#allocation8 + $0x268] ss:$16 sps:$4 sm:$0xff]  }
 0x549   :  { %v9307_v62 = vpop.eup %9306  ;;  %6915 = vmatprep.mubr.bf16.mxu0 %v5277_v51  ;;  %7087 = vmatprep.mubr.bf16.mxu1 %v5277_v51  ;;  %v10007_v58 = vpack.c.bf16 %v5268_v10, %v5260_v20  ;;  %v5225_v7 = vmul.f32 0.7978846, %v5209_v43  ;;  %v5152_v24 = vmul.f32 %v10005_v30, %v10005_v30  ;;  %v5134_v29 = vmul.f32 0.5, %v9960_v3  ;;  %v8993_v13 = vld [vmem:[#allocation8 + $0x288] ss:$16 sps:$4 sm:$0xff]  }
 0x54a   :  { %6885 = vmatprep.subr.bf16.mxu0 %v8974_v53  ;;  %7057 = vmatprep.subr.bf16.mxu1 %v8977_v33  ;;  %v5247_v40 = vadd.f32 1.0, %v9307_v62  ;;  %9314 = vtanh.f32 %v5217_v42  ;;  %v10013_v27 = vadd.f32 %v9874_v5, %v5071_v9  ;;  %v5142_v1 = vmul.f32 0.5, %v9966_v47  ;;  %v8998_v20 = vld [vmem:[#allocation8 + $0x2a4] ss:$16 sps:$4 sm:$0xff]   ;;  %v9001_v51 = vld [vmem:[#allocation8 + $0x2ac] ss:$16 sps:$4 sm:$0xff]  }
 0x54b   :  { %v9309_v32 = vpop.eup %9308  ;;  %9316 = vtanh.f32 %v5225_v7  ;;  %v5168_v60 = vmul.f32 %v5152_v24, %v10005_v30  ;;  %v5137_v53 = vmul.f32 0.5, %v9970_v48  ;;  %v5145_v33 = vmul.f32 0.5, %v9982_v12  ;;  %v8996_v10 = vld [vmem:[#allocation8 + $0x2a0] ss:$16 sps:$4 sm:$0xff]   ;;  %v8999_v56 = vld [vmem:[#allocation8 + $0x2a8] ss:$16 sps:$4 sm:$0xff]  }
 0x54c   :  { %6886 = vmatpush1.bf16.msra.mxu0 %v8972_v57  ;;  %7058 = vmatpush1.bf16.msra.mxu1 %v8975_v8  ;;  %v5255_v25 = vadd.f32 1.0, %v9309_v32  ;;  %v5160_v26 = vmul.f32 %v10013_v27, %v10013_v27  ;;  %v5263_v34 = vmul.f32 %v5247_v40, %v5135_v19  ;;  %v9004_v42 = vld [vmem:[#allocation8 + $0x2c4] ss:$16 sps:$4 sm:$0xff]   ;;  %v9007_v62 = vld [vmem:[#allocation8 + $0x2cc] ss:$16 sps:$4 sm:$0xff]  }
 0x54d   :  { %6887 = vmatprep.subr.bf16.mxu0 %v8980_v18  ;;  %7059 = vmatprep.subr.bf16.mxu1 %v8983_v2  ;;  %v5184_v31 = vmul.f32 0.044715, %v5168_v60  ;;  %v9002_v48 = vld [vmem:[#allocation8 + $0x2c0] ss:$16 sps:$4 sm:$0xff]   ;;  %v9005_v2 = vld [vmem:[#allocation8 + $0x2c8] ss:$16 sps:$4 sm:$0xff]  }
 0x54e   :  { %v5271_v5 = vmul.f32 %v5255_v25, %v5143_v35  ;;  %v5176_v11 = vmul.f32 %v5160_v26, %v10013_v27  ;;  %v9010_v12 = vld [vmem:[#allocation8 + $0x2e4] ss:$16 sps:$4 sm:$0xff]   ;;  %v9013_v7 = vld [vmem:[#allocation8 + $0x2ec] ss:$16 sps:$4 sm:$0xff]   ;;  %v9008_v40 = vld [vmem:[#allocation8 + $0x2e0] ss:$16 sps:$4 sm:$0xff]  }
 0x54f   :  { %v5200_v4 = vadd.f32 %v5184_v31, %v10005_v30  ;;  %v9011_v24 = vld [vmem:[#allocation8 + $0x2e8] ss:$16 sps:$4 sm:$0xff]   ;;  %v9016_v32 = vld [vmem:[#allocation8 + $0x304] ss:$16 sps:$4 sm:$0xff]   ;;  %v9014_v35 = vld [vmem:[#allocation8 + $0x300] ss:$16 sps:$4 sm:$0xff]  }
 0x550   :  { %v9311_v45 = vpop.eup %9310  ;;  %6888 = vmatpush1.bf16.msra.mxu0 %v8978_v16  ;;  %7060 = vmatpush1.bf16.msra.mxu1 %v8981_v6  ;;  %v10021_v38 = vpack.c.bf16 %v5271_v5, %v5263_v34  ;;  %v5192_v15 = vmul.f32 0.044715, %v5176_v11  ;;  %v9019_v16 = vld [vmem:[#allocation8 + $0x30c] ss:$16 sps:$4 sm:$0xff]   ;;  %v9017_v25 = vld [vmem:[#allocation8 + $0x308] ss:$16 sps:$4 sm:$0xff]  }
 0x551   :  { %v9313_v23 = vpop.eup %9312  ;;  %v5246_v41 = vadd.f32 1.0, %v9311_v45  ;;  %6889 = vmatprep.subr.bf16.mxu0 %v8986_v61  ;;  %7061 = vmatprep.subr.bf16.mxu1 %v8989_v17  ;;  %v5216_v22 = vmul.f32 0.7978846, %v5200_v4  ;;  %v5136_v60 = vmul.f32 0.5, %v10005_v30  ;;  %v5144_v61 = vmul.f32 0.5, %v10013_v27 }
 0x552   :  { %v5254_v37 = vadd.f32 1.0, %v9313_v23  ;;  %v5208_v50 = vadd.f32 %v5192_v15, %v10013_v27  ;;  %v9022_v26 = vld [vmem:[#allocation8 + $0x324] ss:$16 sps:$4 sm:$0xff]   ;;  %v9025_v34 = vld [vmem:[#allocation8 + $0x32c] ss:$16 sps:$4 sm:$0xff]  }
 0x553   :  { %v5262_v21 = vmul.f32 %v5246_v41, %v5134_v29  ;;  %9318 = vtanh.f32 %v5216_v22  ;;  %v9020_v45 = vld [vmem:[#allocation8 + $0x320] ss:$16 sps:$4 sm:$0xff]   ;;  %v9028_v23 = vld [vmem:[#allocation8 + $0x344] ss:$16 sps:$4 sm:$0xff]   ;;  %v9029_v27 = vld [vmem:[#allocation8 + $0x348] ss:$16 sps:$4 sm:$0xff]  }
 0x554   :  { %v5270_v28 = vmul.f32 %v5254_v37, %v5142_v1  ;;  %v9315_v46 = vpop.eup %9314  ;;  %6890 = vmatpush1.bf16.msra.mxu0 %v8984_v14  ;;  %7062 = vmatpush1.bf16.msra.mxu1 %v8987_v0  ;;  %v5224_v43 = vmul.f32 0.7978846, %v5208_v50  ;;  %v9023_v14 = vld [vmem:[#allocation8 + $0x328] ss:$16 sps:$4 sm:$0xff]   ;;  %v9031_v0 = vld [vmem:[#allocation8 + $0x34c] ss:$16 sps:$4 sm:$0xff]  }
 0x555   :  { %v9317_v44 = vpop.eup %9316  ;;  %6891 = vmatprep.subr.bf16.mxu0 %v8992_v36  ;;  %7063 = vmatprep.subr.bf16.mxu1 %v8995_v39  ;;  %v5249_v47 = vadd.f32 1.0, %v9315_v46  ;;  %v9026_v30 = vld [vmem:[#allocation8 + $0x340] ss:$16 sps:$4 sm:$0xff]   ;;  %v9034_v36 = vld [vmem:[#allocation8 + $0x364] ss:$16 sps:$4 sm:$0xff]  }
 0x556   :  { %v10027_v3 = vpack.c.bf16 %v5270_v28, %v5262_v21  ;;  %v5257_v52 = vadd.f32 1.0, %v9317_v44  ;;  %9320 = vtanh.f32 %v5224_v43  ;;  %v9037_v41 = vld [vmem:[#allocation8 + $0x36c] ss:$16 sps:$4 sm:$0xff]   ;;  %v9032_v4 = vld [vmem:[#allocation8 + $0x360] ss:$16 sps:$4 sm:$0xff]  }
 0x557   :  { %v5265_v57 = vmul.f32 %v5249_v47, %v5137_v53  ;;  %v9035_v39 = vld [vmem:[#allocation8 + $0x368] ss:$16 sps:$4 sm:$0xff]   ;;  %v9040_v29 = vld [vmem:[#allocation8 + $0x384] ss:$16 sps:$4 sm:$0xff]   ;;  %v9043_v1 = vld [vmem:[#allocation8 + $0x38c] ss:$16 sps:$4 sm:$0xff]  }
 0x558   :  { %6892 = vmatpush1.bf16.msra.mxu0 %v8990_v49  ;;  %7064 = vmatpush1.bf16.msra.mxu1 %v8993_v13  ;;  %v5273_v8 = vmul.f32 %v5257_v52, %v5145_v33  ;;  %v9038_v37 = vld [vmem:[#allocation8 + $0x380] ss:$16 sps:$4 sm:$0xff]   ;;  %v9041_v15 = vld [vmem:[#allocation8 + $0x388] ss:$16 sps:$4 sm:$0xff]   ;;  %v9046_v21 = vld [vmem:[#allocation8 + $0x3a4] ss:$16 sps:$4 sm:$0xff]  }
 0x559   :  { %6893 = vmatprep.subr.bf16.mxu0 %v8998_v20  ;;  %7065 = vmatprep.subr.bf16.mxu1 %v9001_v51  ;;  %v9049_v28 = vld [vmem:[#allocation8 + $0x3ac] ss:$16 sps:$4 sm:$0xff]   ;;  %v9044_v22 = vld [vmem:[#allocation8 + $0x3a0] ss:$16 sps:$4 sm:$0xff]   ;;  %v9047_v46 = vld [vmem:[#allocation8 + $0x3a8] ss:$16 sps:$4 sm:$0xff]  }
 0x55a   :  { %v10031_v18 = vpack.c.bf16 %v5273_v8, %v5265_v57  ;;  %v9052_v49 = vld [vmem:[#allocation8 + $0x3c4] ss:$16 sps:$4 sm:$0xff]   ;;  %v9055_v13 = vld [vmem:[#allocation8 + $0x3cc] ss:$16 sps:$4 sm:$0xff]   ;;  %v9050_v50 = vld [vmem:[#allocation8 + $0x3c0] ss:$16 sps:$4 sm:$0xff]  }
 0x55b   :  { %v9053_v44 = vld [vmem:[#allocation8 + $0x3c8] ss:$16 sps:$4 sm:$0xff]   ;;  %v9058_v20 = vld [vmem:[#allocation8 + $0x3e4] ss:$16 sps:$4 sm:$0xff]   ;;  %v9061_v51 = vld [vmem:[#allocation8 + $0x3ec] ss:$16 sps:$4 sm:$0xff]  }
 0x55c   :  { %6894 = vmatpush1.bf16.msra.mxu0 %v8996_v10  ;;  %7066 = vmatpush1.bf16.msra.mxu1 %v8999_v56  ;;  %v9056_v47 = vld [vmem:[#allocation8 + $0x3e0] ss:$16 sps:$4 sm:$0xff]   ;;  %v9059_v53 = vld [vmem:[#allocation8 + $0x3e8] ss:$16 sps:$4 sm:$0xff]   ;;  %v9064_v33 = vld [vmem:[#allocation8 + $0x404] ss:$16 sps:$4 sm:$0xff]  }
 0x55d   :  { %6895 = vmatprep.subr.bf16.mxu0 %v9004_v42  ;;  %7067 = vmatprep.subr.bf16.mxu1 %v9007_v62  ;;  %v9319_v9 = vpop.eup %9318  ;;  %v9067_v52 = vld [vmem:[#allocation8 + $0x40c] ss:$16 sps:$4 sm:$0xff]   ;;  %v9062_v43 = vld [vmem:[#allocation8 + $0x400] ss:$16 sps:$4 sm:$0xff]   ;;  %v9065_v10 = vld [vmem:[#allocation8 + $0x408] ss:$16 sps:$4 sm:$0xff]  }
 0x55e   :  { %v5248_v6 = vadd.f32 1.0, %v9319_v9  ;;  %v9070_v56 = vld [vmem:[#allocation8 + $0x424] ss:$16 sps:$4 sm:$0xff]   ;;  %v9073_v57 = vld [vmem:[#allocation8 + $0x42c] ss:$16 sps:$4 sm:$0xff]  }
 0x55f   :  { %v9068_v8 = vld [vmem:[#allocation8 + $0x420] ss:$16 sps:$4 sm:$0xff]   ;;  %v9071_v42 = vld [vmem:[#allocation8 + $0x428] ss:$16 sps:$4 sm:$0xff]   ;;  %v9076_v62 = vld [vmem:[#allocation8 + $0x444] ss:$16 sps:$4 sm:$0xff]  }
 0x560   :  { %6896 = vmatpush1.bf16.msra.mxu0 %v9002_v48  ;;  %7068 = vmatpush1.bf16.msra.mxu1 %v9005_v2  ;;  %v9321_v19 = vpop.eup %9320  ;;  %v5264_v5 = vmul.f32 %v5248_v6, %v5136_v60  ;;  %v9079_v48 = vld [vmem:[#allocation8 + $0x44c] ss:$16 sps:$4 sm:$0xff]   ;;  %v9074_v2 = vld [vmem:[#allocation8 + $0x440] ss:$16 sps:$4 sm:$0xff]   ;;  %v9094_v6 = vld [vmem:[#allocation8 + $0x4a4] ss:$16 sps:$4 sm:$0xff]  }
 0x561   :  { %6897 = vmatprep.subr.bf16.mxu0 %v9010_v12  ;;  %7069 = vmatprep.subr.bf16.mxu1 %v9013_v7  ;;  %v5256_v17 = vadd.f32 1.0, %v9321_v19  ;;  %v9077_v12 = vld [vmem:[#allocation8 + $0x448] ss:$16 sps:$4 sm:$0xff]   ;;  %v9082_v7 = vld [vmem:[#allocation8 + $0x464] ss:$16 sps:$4 sm:$0xff]  }
 0x562   :  { %v9080_v9 = vld [vmem:[#allocation8 + $0x460] ss:$16 sps:$4 sm:$0xff]   ;;  %v9097_v19 = vld [vmem:[#allocation8 + $0x4ac] ss:$16 sps:$4 sm:$0xff]   ;;  %v9100_v60 = vld [vmem:[#allocation8 + $0x4c4] ss:$16 sps:$4 sm:$0xff]  }
 0x563   :  { %v5272_v31 = vmul.f32 %v5256_v17, %v5144_v61  ;;  %v9103_v61 = vld [vmem:[#allocation8 + $0x4cc] ss:$16 sps:$4 sm:$0xff]   ;;  %v9098_v17 = vld [vmem:[#allocation8 + $0x4c0] ss:$16 sps:$4 sm:$0xff]  }
 0x564   :  { %6898 = vmatpush1.bf16.msra.mxu0 %v9008_v40  ;;  %7070 = vmatpush1.bf16.msra.mxu1 %v9011_v24  ;;  %v9083_v40 = vld [vmem:[#allocation8 + $0x468] ss:$16 sps:$4 sm:$0xff]   ;;  %v9088_v24 = vld [vmem:[#allocation8 + $0x484] ss:$16 sps:$4 sm:$0xff]  }
 0x565   :  { %6899 = vmatprep.subr.bf16.mxu0 %v9016_v32  ;;  %7071 = vmatprep.subr.bf16.mxu1 %v9019_v16  ;;  %v10035_v11 = vpack.c.bf16 %v5272_v31, %v5264_v5  ;;  %v9086_v32 = vld [vmem:[#allocation8 + $0x480] ss:$16 sps:$4 sm:$0xff]   ;;  %v9089_v16 = vld [vmem:[#allocation8 + $0x488] ss:$16 sps:$4 sm:$0xff]   ;;  %v9109_v5 = vld [vmem:[#allocation8 + $0x4ec] ss:$16 sps:$4 sm:$0xff]  }
 0x566   :  { %v9104_v31 = vld [vmem:[#allocation8 + $0x4e0] ss:$16 sps:$4 sm:$0xff]  }
 0x568   :  { %6900 = vmatpush1.bf16.msra.mxu0 %v9014_v35  ;;  %7072 = vmatpush1.bf16.msra.mxu1 %v9017_v25  ;;  %v9092_v35 = vld [vmem:[#allocation8 + $0x4a0] ss:$16 sps:$4 sm:$0xff]   ;;  %v9095_v25 = vld [vmem:[#allocation8 + $0x4a8] ss:$16 sps:$4 sm:$0xff]  }
 0x569   :  { %6901 = vmatprep.subr.bf16.mxu0 %v9022_v26  ;;  %7073 = vmatprep.subr.bf16.mxu1 %v9025_v34  ;;  %v9101_v26 = vld [vmem:[#allocation8 + $0x4c8] ss:$16 sps:$4 sm:$0xff]   ;;  %v9106_v34 = vld [vmem:[#allocation8 + $0x4e4] ss:$16 sps:$4 sm:$0xff]  }
 0x56c   :  { %6902 = vmatpush1.bf16.msra.mxu0 %v9020_v45  ;;  %7074 = vmatpush1.bf16.msra.mxu1 %v9023_v14  ;;  %v9107_v45 = vld [vmem:[#allocation8 + $0x4e8] ss:$16 sps:$4 sm:$0xff]   ;;  %v9112_v14 = vld [vmem:[#allocation8 + $0x504] ss:$16 sps:$4 sm:$0xff]  }
 0x56d   :  { %6903 = vmatprep.subr.bf16.mxu0 %v9028_v23  ;;  %7075 = vmatprep.subr.bf16.mxu1 %v9031_v0  ;;  %v9115_v23 = vld [vmem:[#allocation8 + $0x50c] ss:$16 sps:$4 sm:$0xff]   ;;  %v9110_v0 = vld [vmem:[#allocation8 + $0x500] ss:$16 sps:$4 sm:$0xff]  }
 0x570   :  { %6904 = vmatpush1.bf16.msra.mxu0 %v9026_v30  ;;  %7076 = vmatpush1.bf16.msra.mxu1 %v9029_v27  ;;  %v9113_v30 = vld [vmem:[#allocation8 + $0x508] ss:$16 sps:$4 sm:$0xff]   ;;  %v9118_v27 = vld [vmem:[#allocation8 + $0x524] ss:$16 sps:$4 sm:$0xff]  }
 0x571   :  { %6905 = vmatprep.subr.bf16.mxu0 %v9034_v36  ;;  %7077 = vmatprep.subr.bf16.mxu1 %v9037_v41  ;;  %v9121_v36 = vld [vmem:[#allocation8 + $0x52c] ss:$16 sps:$4 sm:$0xff]   ;;  %v9116_v41 = vld [vmem:[#allocation8 + $0x520] ss:$16 sps:$4 sm:$0xff]  }
 0x574   :  { %6906 = vmatpush1.bf16.msra.mxu0 %v9032_v4  ;;  %7078 = vmatpush1.bf16.msra.mxu1 %v9035_v39  ;;  %v9119_v4 = vld [vmem:[#allocation8 + $0x528] ss:$16 sps:$4 sm:$0xff]   ;;  %v9124_v39 = vld [vmem:[#allocation8 + $0x544] ss:$16 sps:$4 sm:$0xff]  }
 0x575   :  { %6907 = vmatprep.subr.bf16.mxu0 %v9040_v29  ;;  %7079 = vmatprep.subr.bf16.mxu1 %v9043_v1  ;;  %v9127_v29 = vld [vmem:[#allocation8 + $0x54c] ss:$16 sps:$4 sm:$0xff]   ;;  %v9122_v1 = vld [vmem:[#allocation8 + $0x540] ss:$16 sps:$4 sm:$0xff]  }
 0x578   :  { %6908 = vmatpush1.bf16.msra.mxu0 %v9038_v37  ;;  %7080 = vmatpush1.bf16.msra.mxu1 %v9041_v15  ;;  %v9125_v37 = vld [vmem:[#allocation8 + $0x548] ss:$16 sps:$4 sm:$0xff]   ;;  %v9130_v15 = vld [vmem:[#allocation8 + $0x564] ss:$16 sps:$4 sm:$0xff]  }
 0x579   :  { %6909 = vmatprep.subr.bf16.mxu0 %v9046_v21  ;;  %7081 = vmatprep.subr.bf16.mxu1 %v9049_v28  ;;  %v9133_v21 = vld [vmem:[#allocation8 + $0x56c] ss:$16 sps:$4 sm:$0xff]   ;;  %v9128_v28 = vld [vmem:[#allocation8 + $0x560] ss:$16 sps:$4 sm:$0xff]  }
 0x57c   :  { %6910 = vmatpush1.bf16.msra.mxu0 %v9044_v22  ;;  %7082 = vmatpush1.bf16.msra.mxu1 %v9047_v46  ;;  %v9131_v22 = vld [vmem:[#allocation8 + $0x568] ss:$16 sps:$4 sm:$0xff]   ;;  %v9136_v46 = vld [vmem:[#allocation8 + $0x584] ss:$16 sps:$4 sm:$0xff]  }
 0x57d   :  { %6911 = vmatprep.subr.bf16.mxu0 %v9052_v49  ;;  %7083 = vmatprep.subr.bf16.mxu1 %v9055_v13  ;;  %v9139_v49 = vld [vmem:[#allocation8 + $0x58c] ss:$16 sps:$4 sm:$0xff]   ;;  %v9134_v13 = vld [vmem:[#allocation8 + $0x580] ss:$16 sps:$4 sm:$0xff]  }
 0x580   :  { %6912 = vmatpush1.bf16.msra.mxu0 %v9050_v50  ;;  %7084 = vmatpush1.bf16.msra.mxu1 %v9053_v44  ;;  %v9137_v50 = vld [vmem:[#allocation8 + $0x588] ss:$16 sps:$4 sm:$0xff]   ;;  %v9142_v44 = vld [vmem:[#allocation8 + $0x5a4] ss:$16 sps:$4 sm:$0xff]  }
 0x581   :  { %6913 = vmatprep.subr.bf16.mxu0 %v9058_v20  ;;  %7085 = vmatprep.subr.bf16.mxu1 %v9061_v51  ;;  %v9145_v20 = vld [vmem:[#allocation8 + $0x5ac] ss:$16 sps:$4 sm:$0xff]   ;;  %v9140_v51 = vld [vmem:[#allocation8 + $0x5a0] ss:$16 sps:$4 sm:$0xff]  }
 0x584   :  { %6914 = vmatpush1.bf16.msra.mxu0 %v9056_v47  ;;  %7086 = vmatpush1.bf16.msra.mxu1 %v9059_v53  ;;  %v9143_v47 = vld [vmem:[#allocation8 + $0x5a8] ss:$16 sps:$4 sm:$0xff]   ;;  %v9148_v53 = vld [vmem:[#allocation8 + $0x5c4] ss:$16 sps:$4 sm:$0xff]  }
 0x585   :  { %6926 = vmatprep.subr.bf16.mxu0 %v9064_v33  ;;  %7098 = vmatprep.subr.bf16.mxu1 %v9067_v52  ;;  %v9151_v33 = vld [vmem:[#allocation8 + $0x5cc] ss:$16 sps:$4 sm:$0xff]   ;;  %v9146_v52 = vld [vmem:[#allocation8 + $0x5c0] ss:$16 sps:$4 sm:$0xff]  }
 0x587   :  { %6916 = vmatmul.mubr.bf16.vlgmr.msra.gmra.mrb[8].mxu0 %v10007_v58  ;;  %7088 = vmatmul.mubr.bf16.vlgmr.msra.gmra.mrb[8].mxu1 %v10007_v58  ;;  %v9085_v58 = vld [vmem:[#allocation8 + $0x46c] ss:$16 sps:$4 sm:$0xff]  }
 0x588   :  { %6927 = vmatpush1.bf16.msra.mxu0 %v9062_v43  ;;  %6958 = vmatprep.mubr.bf16.mxu0 %v10021_v38  ;;  %v9149_v43 = vld [vmem:[#allocation8 + $0x5c8] ss:$16 sps:$4 sm:$0xff]  }
 0x589   :  { %7099 = vmatpush1.bf16.msra.mxu1 %v9065_v10  ;;  %7130 = vmatprep.mubr.bf16.mxu1 %v10021_v38  ;;  %v9091_v38 = vld [vmem:[#allocation8 + $0x48c] ss:$16 sps:$4 sm:$0xff]   ;;  %v9154_v10 = vld [vmem:[#allocation8 + $0x5e4] ss:$16 sps:$4 sm:$0xff]  }
 0x58a   :  { %6928 = vmatprep.subr.bf16.mxu0 %v9070_v56  ;;  %7100 = vmatprep.subr.bf16.mxu1 %v9073_v57  ;;  %v9157_v56 = vld [vmem:[#allocation8 + $0x5ec] ss:$16 sps:$4 sm:$0xff]   ;;  %v9152_v57 = vld [vmem:[#allocation8 + $0x5e0] ss:$16 sps:$4 sm:$0xff]  }
 0x58c   :  { %6929 = vmatpush1.bf16.msra.mxu0 %v9068_v8  ;;  %v9155_v8 = vld [vmem:[#allocation8 + $0x5e8] ss:$16 sps:$4 sm:$0xff]  }
 0x58d   :  { %7101 = vmatpush1.bf16.msra.mxu1 %v9071_v42  ;;  %6930 = vmatprep.subr.bf16.mxu0 %v9076_v62  ;;  %v9160_v42 = vld [vmem:[#allocation8 + $0x604] ss:$16 sps:$4 sm:$0xff]   ;;  %v9163_v62 = vld [vmem:[#allocation8 + $0x60c] ss:$16 sps:$4 sm:$0xff]  }
 0x58e   :  { %7102 = vmatprep.subr.bf16.mxu1 %v9079_v48  ;;  %v9158_v48 = vld [vmem:[#allocation8 + $0x600] ss:$16 sps:$4 sm:$0xff]  }
 0x590   :  { %6931 = vmatpush1.bf16.msra.mxu0 %v9074_v2  ;;  %v9161_v2 = vld [vmem:[#allocation8 + $0x608] ss:$16 sps:$4 sm:$0xff]  }
 0x591   :  { %7103 = vmatpush1.bf16.msra.mxu1 %v9077_v12  ;;  %6932 = vmatprep.subr.bf16.mxu0 %v9082_v7  ;;  %v9166_v12 = vld [vmem:[#allocation8 + $0x624] ss:$16 sps:$4 sm:$0xff]   ;;  %v9169_v7 = vld [vmem:[#allocation8 + $0x62c] ss:$16 sps:$4 sm:$0xff]  }
 0x592   :  { %7104 = vmatprep.subr.bf16.mxu1 %v9085_v58  ;;  %v9164_v58 = vld [vmem:[#allocation8 + $0x620] ss:$16 sps:$4 sm:$0xff]  }
 0x594   :  { %6933 = vmatpush1.bf16.msra.mxu0 %v9080_v9  ;;  %v9167_v9 = vld [vmem:[#allocation8 + $0x628] ss:$16 sps:$4 sm:$0xff]  }
 0x595   :  { %7105 = vmatpush1.bf16.msra.mxu1 %v9083_v40  ;;  %6934 = vmatprep.subr.bf16.mxu0 %v9088_v24  ;;  %v9172_v40 = vld [vmem:[#allocation8 + $0x644] ss:$16 sps:$4 sm:$0xff]   ;;  %v9175_v24 = vld [vmem:[#allocation8 + $0x64c] ss:$16 sps:$4 sm:$0xff]  }
 0x596   :  { %7106 = vmatprep.subr.bf16.mxu1 %v9091_v38  ;;  %v9170_v38 = vld [vmem:[#allocation8 + $0x640] ss:$16 sps:$4 sm:$0xff]  }
 0x598   :  { %6935 = vmatpush1.bf16.msra.mxu0 %v9086_v32  ;;  %v9173_v32 = vld [vmem:[#allocation8 + $0x648] ss:$16 sps:$4 sm:$0xff]  }
 0x599   :  { %7107 = vmatpush1.bf16.msra.mxu1 %v9089_v16  ;;  %6936 = vmatprep.subr.bf16.mxu0 %v9094_v6  ;;  %v9178_v16 = vld [vmem:[#allocation8 + $0x664] ss:$16 sps:$4 sm:$0xff]   ;;  %v9176_v6 = vld [vmem:[#allocation8 + $0x660] ss:$16 sps:$4 sm:$0xff]  }
 0x59a   :  { %7108 = vmatprep.subr.bf16.mxu1 %v9097_v19  ;;  %v9179_v19 = vld [vmem:[#allocation8 + $0x668] ss:$16 sps:$4 sm:$0xff]  }
 0x59c   :  { %6937 = vmatpush1.bf16.msra.mxu0 %v9092_v35  ;;  %v9184_v35 = vld [vmem:[#allocation8 + $0x684] ss:$16 sps:$4 sm:$0xff]  }
 0x59d   :  { %7109 = vmatpush1.bf16.msra.mxu1 %v9095_v25  ;;  %6938 = vmatprep.subr.bf16.mxu0 %v9100_v60  ;;  %v9187_v25 = vld [vmem:[#allocation8 + $0x68c] ss:$16 sps:$4 sm:$0xff]   ;;  %v9185_v60 = vld [vmem:[#allocation8 + $0x688] ss:$16 sps:$4 sm:$0xff]  }
 0x59e   :  { %7110 = vmatprep.subr.bf16.mxu1 %v9103_v61  ;;  %v9190_v61 = vld [vmem:[#allocation8 + $0x6a4] ss:$16 sps:$4 sm:$0xff]  }
 0x5a0   :  { %6939 = vmatpush1.bf16.msra.mxu0 %v9098_v17  ;;  %v9193_v17 = vld [vmem:[#allocation8 + $0x6ac] ss:$16 sps:$4 sm:$0xff]  }
 0x5a1   :  { %7111 = vmatpush1.bf16.msra.mxu1 %v9101_v26  ;;  %6940 = vmatprep.subr.bf16.mxu0 %v9106_v34  ;;  %v9188_v26 = vld [vmem:[#allocation8 + $0x6a0] ss:$16 sps:$4 sm:$0xff]   ;;  %v9191_v34 = vld [vmem:[#allocation8 + $0x6a8] ss:$16 sps:$4 sm:$0xff]  }
 0x5a2   :  { %7112 = vmatprep.subr.bf16.mxu1 %v9109_v5  ;;  %v9196_v5 = vld [vmem:[#allocation8 + $0x6c4] ss:$16 sps:$4 sm:$0xff]  }
 0x5a4   :  { %6941 = vmatpush1.bf16.msra.mxu0 %v9104_v31  ;;  %v9199_v31 = vld [vmem:[#allocation8 + $0x6cc] ss:$16 sps:$4 sm:$0xff]  }
 0x5a5   :  { %7113 = vmatpush1.bf16.msra.mxu1 %v9107_v45  ;;  %6942 = vmatprep.subr.bf16.mxu0 %v9112_v14  ;;  %v9194_v45 = vld [vmem:[#allocation8 + $0x6c0] ss:$16 sps:$4 sm:$0xff]   ;;  %v9197_v14 = vld [vmem:[#allocation8 + $0x6c8] ss:$16 sps:$4 sm:$0xff]  }
 0x5a6   :  { %7114 = vmatprep.subr.bf16.mxu1 %v9115_v23  ;;  %v9202_v23 = vld [vmem:[#allocation8 + $0x6e4] ss:$16 sps:$4 sm:$0xff]  }
 0x5a8   :  { %6943 = vmatpush1.bf16.msra.mxu0 %v9110_v0  ;;  %v9205_v0 = vld [vmem:[#allocation8 + $0x6ec] ss:$16 sps:$4 sm:$0xff]  }
 0x5a9   :  { %7115 = vmatpush1.bf16.msra.mxu1 %v9113_v30  ;;  %6944 = vmatprep.subr.bf16.mxu0 %v9118_v27  ;;  %v9200_v30 = vld [vmem:[#allocation8 + $0x6e0] ss:$16 sps:$4 sm:$0xff]   ;;  %v9203_v27 = vld [vmem:[#allocation8 + $0x6e8] ss:$16 sps:$4 sm:$0xff]  }
 0x5aa   :  { %7116 = vmatprep.subr.bf16.mxu1 %v9121_v36  ;;  %v9208_v36 = vld [vmem:[#allocation8 + $0x704] ss:$16 sps:$4 sm:$0xff]  }
 0x5ac   :  { %6945 = vmatpush1.bf16.msra.mxu0 %v9116_v41  ;;  %v9211_v41 = vld [vmem:[#allocation8 + $0x70c] ss:$16 sps:$4 sm:$0xff]  }
 0x5ad   :  { %7117 = vmatpush1.bf16.msra.mxu1 %v9119_v4  ;;  %6946 = vmatprep.subr.bf16.mxu0 %v9124_v39  ;;  %v9206_v4 = vld [vmem:[#allocation8 + $0x700] ss:$16 sps:$4 sm:$0xff]   ;;  %v9209_v39 = vld [vmem:[#allocation8 + $0x708] ss:$16 sps:$4 sm:$0xff]  }
 0x5ae   :  { %7118 = vmatprep.subr.bf16.mxu1 %v9127_v29  ;;  %v9214_v29 = vld [vmem:[#allocation8 + $0x724] ss:$16 sps:$4 sm:$0xff]  }
 0x5b0   :  { %6947 = vmatpush1.bf16.msra.mxu0 %v9122_v1  ;;  %v9217_v1 = vld [vmem:[#allocation8 + $0x72c] ss:$16 sps:$4 sm:$0xff]  }
 0x5b1   :  { %7119 = vmatpush1.bf16.msra.mxu1 %v9125_v37  ;;  %6948 = vmatprep.subr.bf16.mxu0 %v9130_v15  ;;  %v9212_v37 = vld [vmem:[#allocation8 + $0x720] ss:$16 sps:$4 sm:$0xff]   ;;  %v9215_v15 = vld [vmem:[#allocation8 + $0x728] ss:$16 sps:$4 sm:$0xff]  }
 0x5b2   :  { %7120 = vmatprep.subr.bf16.mxu1 %v9133_v21  ;;  %v9220_v21 = vld [vmem:[#allocation8 + $0x744] ss:$16 sps:$4 sm:$0xff]  }
 0x5b4   :  { %6949 = vmatpush1.bf16.msra.mxu0 %v9128_v28  ;;  %v9223_v28 = vld [vmem:[#allocation8 + $0x74c] ss:$16 sps:$4 sm:$0xff]  }
 0x5b5   :  { %7121 = vmatpush1.bf16.msra.mxu1 %v9131_v22  ;;  %6950 = vmatprep.subr.bf16.mxu0 %v9136_v46  ;;  %v9218_v22 = vld [vmem:[#allocation8 + $0x740] ss:$16 sps:$4 sm:$0xff]   ;;  %v9221_v46 = vld [vmem:[#allocation8 + $0x748] ss:$16 sps:$4 sm:$0xff]  }
 0x5b6   :  { %7122 = vmatprep.subr.bf16.mxu1 %v9139_v49  ;;  %v9226_v49 = vld [vmem:[#allocation8 + $0x764] ss:$16 sps:$4 sm:$0xff]  }
 0x5b8   :  { %6951 = vmatpush1.bf16.msra.mxu0 %v9134_v13  ;;  %v9229_v13 = vld [vmem:[#allocation8 + $0x76c] ss:$16 sps:$4 sm:$0xff]  }
 0x5b9   :  { %7123 = vmatpush1.bf16.msra.mxu1 %v9137_v50  ;;  %6952 = vmatprep.subr.bf16.mxu0 %v9142_v44  ;;  %v9224_v50 = vld [vmem:[#allocation8 + $0x760] ss:$16 sps:$4 sm:$0xff]   ;;  %v9227_v44 = vld [vmem:[#allocation8 + $0x768] ss:$16 sps:$4 sm:$0xff]  }
 0x5ba   :  { %7124 = vmatprep.subr.bf16.mxu1 %v9145_v20  ;;  %v9232_v20 = vld [vmem:[#allocation8 + $0x784] ss:$16 sps:$4 sm:$0xff]  }
 0x5bc   :  { %6953 = vmatpush1.bf16.msra.mxu0 %v9140_v51  ;;  %v9235_v51 = vld [vmem:[#allocation8 + $0x78c] ss:$16 sps:$4 sm:$0xff]  }
 0x5bd   :  { %7125 = vmatpush1.bf16.msra.mxu1 %v9143_v47  ;;  %6954 = vmatprep.subr.bf16.mxu0 %v9148_v53  ;;  %v9230_v47 = vld [vmem:[#allocation8 + $0x780] ss:$16 sps:$4 sm:$0xff]   ;;  %v9233_v53 = vld [vmem:[#allocation8 + $0x788] ss:$16 sps:$4 sm:$0xff]  }
 0x5be   :  { %7126 = vmatprep.subr.bf16.mxu1 %v9151_v33  ;;  %v9238_v33 = vld [vmem:[#allocation8 + $0x7a4] ss:$16 sps:$4 sm:$0xff]  }
 0x5c0   :  { %6955 = vmatpush1.bf16.msra.mxu0 %v9146_v52  ;;  %v9241_v52 = vld [vmem:[#allocation8 + $0x7ac] ss:$16 sps:$4 sm:$0xff]  }
 0x5c1   :  { %7127 = vmatpush1.bf16.msra.mxu1 %v9149_v43  ;;  %6956 = vmatprep.subr.bf16.mxu0 %v9154_v10  ;;  %v9236_v43 = vld [vmem:[#allocation8 + $0x7a0] ss:$16 sps:$4 sm:$0xff]   ;;  %v9239_v10 = vld [vmem:[#allocation8 + $0x7a8] ss:$16 sps:$4 sm:$0xff]  }
 0x5c2   :  { %7128 = vmatprep.subr.bf16.mxu1 %v9157_v56  ;;  %v9244_v56 = vld [vmem:[#allocation8 + $0x7c4] ss:$16 sps:$4 sm:$0xff]  }
 0x5c4   :  { %6957 = vmatpush1.bf16.msra.mxu0 %v9152_v57  ;;  %v9247_v57 = vld [vmem:[#allocation8 + $0x7cc] ss:$16 sps:$4 sm:$0xff]  }
 0x5c5   :  { %7129 = vmatpush1.bf16.msra.mxu1 %v9155_v8  ;;  %6969 = vmatprep.subr.bf16.mxu0 %v9160_v42  ;;  %v9242_v8 = vld [vmem:[#allocation8 + $0x7c0] ss:$16 sps:$4 sm:$0xff]   ;;  %v9245_v42 = vld [vmem:[#allocation8 + $0x7c8] ss:$16 sps:$4 sm:$0xff]  }
 0x5c6   :  { %7141 = vmatprep.subr.bf16.mxu1 %v9163_v62  ;;  %v9250_v62 = vld [vmem:[#allocation8 + $0x7e4] ss:$16 sps:$4 sm:$0xff]  }
 0x5c7   :  { %6959 = vmatmul.mubr.bf16.vlgmr.msra.gmra.mrb[8].mxu0 %v10027_v3 }
 0x5c8   :  { %7131 = vmatmul.mubr.bf16.vlgmr.msra.gmra.mrb[8].mxu1 %v10027_v3  ;;  %6970 = vmatpush1.bf16.msra.mxu0 %v9158_v48  ;;  %v9181_v3 = vld [vmem:[#allocation8 + $0x66c] ss:$16 sps:$4 sm:$0xff]  }
 0x5c9   :  { %7001 = vmatprep.mubr.bf16.mxu0 %v10031_v18  ;;  %7142 = vmatpush1.bf16.msra.mxu1 %v9161_v2  ;;  %v9253_v48 = vld [vmem:[#allocation8 + $0x7ec] ss:$16 sps:$4 sm:$0xff]   ;;  %v9248_v2 = vld [vmem:[#allocation8 + $0x7e0] ss:$16 sps:$4 sm:$0xff]  }
 0x5ca   :  { %7173 = vmatprep.mubr.bf16.mxu1 %v10031_v18  ;;  %6971 = vmatprep.subr.bf16.mxu0 %v9166_v12  ;;  %v9182_v18 = vld [vmem:[#allocation8 + $0x680] ss:$16 sps:$4 sm:$0xff]   ;;  %v9251_v12 = vld [vmem:[#allocation8 + $0x7e8] ss:$16 sps:$4 sm:$0xff]  }
 0x5cb   :  { %7143 = vmatprep.subr.bf16.mxu1 %v9169_v7  ;;  %v5538_v7 = vld [vmem:[#allocation10] ss:$4 sm:$0xf] }
 0x5cc   :  { %6972 = vmatpush1.bf16.msra.mxu0 %v9164_v58  ;;  %v5543_v58 = vrot.slane %v5538_v7, %v9696_v54 }
 0x5cd   :  { %7144 = vmatpush1.bf16.msra.mxu1 %v9167_v9  ;;  %6973 = vmatprep.subr.bf16.mxu0 %v9172_v40  ;;  %v5547_v9 = vrot.slane %v5538_v7, %v9698_v55 }
 0x5ce   :  { %7145 = vmatprep.subr.bf16.mxu1 %v9175_v24  ;;  %v5551_v24 = vrot.slane %v5538_v7, %v9702_v59 }
 0x5d0   :  { %6974 = vmatpush1.bf16.msra.mxu0 %v9170_v38 }
 0x5d1   :  { %7146 = vmatpush1.bf16.msra.mxu1 %v9173_v32  ;;  %6975 = vmatprep.subr.bf16.mxu0 %v9178_v16 }
 0x5d2   :  { %7147 = vmatprep.subr.bf16.mxu1 %v9181_v3 }
 0x5d4   :  { %6976 = vmatpush1.bf16.msra.mxu0 %v9176_v6  ;;  %v5555_v6 = vrot.slane %v5538_v7, %v9711_v63  ;;  %v9261_v7 = vld [vmem:[#allocation11 + $0x88] sm:$0xff]  }
 0x5d5   :  { %7148 = vmatpush1.bf16.msra.mxu1 %v9179_v19  ;;  %6977 = vmatprep.subr.bf16.mxu0 %v9184_v35 }
 0x5d6   :  { %7149 = vmatprep.subr.bf16.mxu1 %v9187_v25 }
 0x5d8   :  { %6978 = vmatpush1.bf16.msra.mxu0 %v9182_v18 }
 0x5d9   :  { %7150 = vmatpush1.bf16.msra.mxu1 %v9185_v60  ;;  %6979 = vmatprep.subr.bf16.mxu0 %v9190_v61 }
 0x5da   :  { %7151 = vmatprep.subr.bf16.mxu1 %v9193_v17 }
 0x5dc   :  { %6980 = vmatpush1.bf16.msra.mxu0 %v9188_v26 }
 0x5dd   :  { %7152 = vmatpush1.bf16.msra.mxu1 %v9191_v34  ;;  %6981 = vmatprep.subr.bf16.mxu0 %v9196_v5 }
 0x5de   :  { %7153 = vmatprep.subr.bf16.mxu1 %v9199_v31 }
 0x5e0   :  { %6982 = vmatpush1.bf16.msra.mxu0 %v9194_v45 }
 0x5e1   :  { %7154 = vmatpush1.bf16.msra.mxu1 %v9197_v14  ;;  %6983 = vmatprep.subr.bf16.mxu0 %v9202_v23 }
 0x5e2   :  { %7155 = vmatprep.subr.bf16.mxu1 %v9205_v0 }
 0x5e4   :  { %6984 = vmatpush1.bf16.msra.mxu0 %v9200_v30 }
 0x5e5   :  { %7156 = vmatpush1.bf16.msra.mxu1 %v9203_v27  ;;  %6985 = vmatprep.subr.bf16.mxu0 %v9208_v36 }
 0x5e6   :  { %7157 = vmatprep.subr.bf16.mxu1 %v9211_v41 }
 0x5e8   :  { %6986 = vmatpush1.bf16.msra.mxu0 %v9206_v4 }
 0x5e9   :  { %7158 = vmatpush1.bf16.msra.mxu1 %v9209_v39  ;;  %6987 = vmatprep.subr.bf16.mxu0 %v9214_v29 }
 0x5ea   :  { %7159 = vmatprep.subr.bf16.mxu1 %v9217_v1 }
 0x5ec   :  { %6988 = vmatpush1.bf16.msra.mxu0 %v9212_v37 }
 0x5ed   :  { %7160 = vmatpush1.bf16.msra.mxu1 %v9215_v15  ;;  %6989 = vmatprep.subr.bf16.mxu0 %v9220_v21 }
 0x5ee   :  { %7161 = vmatprep.subr.bf16.mxu1 %v9223_v28 }
 0x5f0   :  { %6990 = vmatpush1.bf16.msra.mxu0 %v9218_v22 }
 0x5f1   :  { %7162 = vmatpush1.bf16.msra.mxu1 %v9221_v46  ;;  %6991 = vmatprep.subr.bf16.mxu0 %v9226_v49 }
 0x5f2   :  { %7163 = vmatprep.subr.bf16.mxu1 %v9229_v13 }
 0x5f4   :  { %6992 = vmatpush1.bf16.msra.mxu0 %v9224_v50 }
 0x5f5   :  { %7164 = vmatpush1.bf16.msra.mxu1 %v9227_v44  ;;  %6993 = vmatprep.subr.bf16.mxu0 %v9232_v20 }
 0x5f6   :  { %7165 = vmatprep.subr.bf16.mxu1 %v9235_v51 }
 0x5f8   :  { %6994 = vmatpush1.bf16.msra.mxu0 %v9230_v47 }
 0x5f9   :  { %7166 = vmatpush1.bf16.msra.mxu1 %v9233_v53  ;;  %6995 = vmatprep.subr.bf16.mxu0 %v9238_v33 }
 0x5fa   :  { %7167 = vmatprep.subr.bf16.mxu1 %v9241_v52 }
 0x5fc   :  { %6996 = vmatpush1.bf16.msra.mxu0 %v9236_v43 }
 0x5fd   :  { %7168 = vmatpush1.bf16.msra.mxu1 %v9239_v10  ;;  %6997 = vmatprep.subr.bf16.mxu0 %v9244_v56 }
 0x5fe   :  { %7169 = vmatprep.subr.bf16.mxu1 %v9247_v57  ;;  %v9254_v57 = vld [vmem:[#allocation11 + $0x40] sm:$0xff]  }
 0x600   :  { %6998 = vmatpush1.bf16.msra.mxu0 %v9242_v8  ;;  %v9255_v8 = vld [vmem:[#allocation11 + $0xc0] sm:$0xff]  }
 0x601   :  { %7170 = vmatpush1.bf16.msra.mxu1 %v9245_v42  ;;  %6999 = vmatprep.subr.bf16.mxu0 %v9250_v62  ;;  %v9256_v42 = vld [vmem:[#allocation11] sm:$0xff]  }
 0x602   :  { %7171 = vmatprep.subr.bf16.mxu1 %v9253_v48  ;;  %v9257_v62 = vld [vmem:[#allocation11 + $0x80] sm:$0xff]   ;;  %v9258_v48 = vld [vmem:[#allocation11 + $0x48] sm:$0xff]  }
 0x604   :  { %7000 = vmatpush1.bf16.msra.mxu0 %v9248_v2  ;;  %v9259_v2 = vld [vmem:[#allocation11 + $0xc8] sm:$0xff]  }
 0x605   :  { %7172 = vmatpush1.bf16.msra.mxu1 %v9251_v12  ;;  %8681 = vmatprep.subr.bf16.mxu0 %v9254_v57  ;;  %v9260_v12 = vld [vmem:[#allocation11 + $0x8] sm:$0xff]  }
 0x606   :  { %8703 = vmatprep.subr.bf16.mxu1 %v9255_v8 }
 0x607   :  { %7002 = vmatmul.mubr.bf16.vlgmr.msra.gmra.mrb[8].mxu0 %v10035_v11 }
 0x608   :  { %7174 = vmatmul.mubr.bf16.vlgmr.msra.gmra.mrb[8].mxu1 %v10035_v11  ;;  %8682 = vmatpush3.bf16.msra.mxu0 %v9256_v42 }
 0x609   :  { %8704 = vmatpush3.bf16.msra.mxu1 %v9257_v62  ;;  %8683 = vmatprep.subr.bf16.mxu0 %v9258_v48 }
 0x60a   :  { %8705 = vmatprep.subr.bf16.mxu1 %v9259_v2 }
 0x60c   :  { %8684 = vmatpush3.bf16.msra.mxu0 %v9260_v12 }
 0x60d   :  { %8706 = vmatpush3.bf16.msra.mxu1 %v9261_v7 }
 0x6da   :  { %v7003_v40 = vpop.f32.mrb[8].mxu0 }
 0x6db   :  { %v8741_v38 = vadd.f32 %v7003_v40, %v5543_v58  ;;  %v7175_v32 = vpop.f32.mrb[8].mxu1  ;;  %v7005_v16 = vpop.f32.mrb[9].mxu0  ;;  %v9264_v40 = vld [vmem:[#allocation11 + $0x10] sm:$0xff]  }
 0x6dc   :  { %v8742_v3 = vadd.f32 %v7005_v16, %v5547_v9  ;;  %v7177_v19 = vpop.f32.mrb[9].mxu1  ;;  %v7007_v35 = vpop.f32.mrb[10].mxu0  ;;  %v8745_v11 = vadd.f32 %v7175_v32, %v5551_v24  ;;  %v9267_v32 = vld [vmem:[#allocation11 + $0xd8] sm:$0xff]  }
 0x6dd   :  { %v8743_v25 = vadd.f32 %v7007_v35, %v5543_v58  ;;  %v7179_v18 = vpop.f32.mrb[10].mxu1  ;;  %v7009_v60 = vpop.f32.mrb[11].mxu0  ;;  %v8746_v34 = vadd.f32 %v7177_v19, %v5555_v6  ;;  %v9262_v58 = vld [vmem:[#allocation11 + $0x50] sm:$0xff]   ;;  %v9268_v16 = vld [vmem:[#allocation11 + $0x18] sm:$0xff]   ;;  %v9271_v19 = vld [vmem:[#allocation11 + $0xe0] sm:$0xff]  }
 0x6de   :  { %v7188_v61 = vadd.f32 %v8742_v3, %v8741_v38  ;;  %v8744_v17 = vadd.f32 %v7009_v60, %v5547_v9  ;;  %v7181_v26 = vpop.f32.mrb[11].mxu1  ;;  %v8747_v5 = vadd.f32 %v7179_v18, %v5551_v24  ;;  %v9263_v9 = vld [vmem:[#allocation11 + $0xd0] sm:$0xff]   ;;  %8685 = vmatprep.subr.bf16.mxu0 %v9262_v58  ;;  %v9272_v35 = vld [vmem:[#allocation11 + $0x20] sm:$0xff]   ;;  %v9274_v18 = vld [vmem:[#allocation11 + $0x68] sm:$0xff]  }
 0x6df   :  { %v8748_v14 = vadd.f32 %v7181_v26, %v5555_v6  ;;  %v9265_v24 = vld [vmem:[#allocation11 + $0x90] sm:$0xff]   ;;  %8707 = vmatprep.subr.bf16.mxu1 %v9263_v9  ;;  %8686 = vmatpush3.bf16.msra.mxu0 %v9264_v40  ;;  %v9270_v6 = vld [vmem:[#allocation11 + $0x60] sm:$0xff]   ;;  %v9275_v60 = vld [vmem:[#allocation11 + $0xe8] sm:$0xff]  }
 0x6e0   :  { %v7193_v31 = vadd.f32 %v8744_v17, %v8743_v25  ;;  %v7189_v45 = vadd.f32 %v8745_v11, %v7188_v61  ;;  %8708 = vmatpush3.bf16.msra.mxu1 %v9265_v24  ;;  %v9277_v61 = vld [vmem:[#allocation11 + $0xa8] sm:$0xff]   ;;  %v9279_v26 = vld [vmem:[#allocation11 + $0xf0] sm:$0xff]  }
 0x6e1   :  { %8709 = vmatprep.subr.bf16.mxu1 %v9267_v32 }
 0x6e2   :  { %v7190_v23 = vadd.f32 %v8746_v34, %v7189_v45  ;;  %v7194_v0 = vadd.f32 %v8747_v5, %v7193_v31  ;;  %v9282_v31 = vld [vmem:[#allocation11 + $0x78] sm:$0xff]  }
 0x6e3   :  { %v9283_v45 = vld [vmem:[#allocation11 + $0xf8] sm:$0xff]  }
 0x6e4   :  { %7191 = vadd.xlane.f32.xlu0 %v7190_v23  ;;  %v7195_v30 = vadd.f32 %v8748_v14, %v7194_v0  ;;  %v9285_v23 = vld [vmem:[#allocation11 + $0xb8] sm:$0xff]  }
 0x6e6   :  { %7196 = vadd.xlane.f32.xlu1 %v7195_v30 }
 0x771   :  { %v7192_v27 = vpop.xlane.xlu0 %7191 }
 0x772   :  { %v7199_v36 = vmul.f32 0.001953125, %v7192_v27 }
 0x773   :  { %v7197_v41 = vpop.xlane.xlu1 %7196 }
 0x774   :  { %v10051_v4 = vsub.f32 %v8741_v38, %v7199_v36  ;;  %v10053_v39 = vsub.f32 %v8742_v3, %v7199_v36  ;;  %v7200_v29 = vmul.f32 0.001953125, %v7197_v41  ;;  %v10055_v1 = vsub.f32 %v8745_v11, %v7199_v36  ;;  %v9266_v38 = vld [vmem:[#allocation11 + $0x58] sm:$0xff]   ;;  %v9276_v11 = vld [vmem:[#allocation11 + $0x28] sm:$0xff]  }
 0x775   :  { %v10057_v37 = vsub.f32 %v8746_v34, %v7199_v36  ;;  %v9269_v3 = vld [vmem:[#allocation11 + $0x98] sm:$0xff]   ;;  %8687 = vmatprep.subr.bf16.mxu0 %v9266_v38  ;;  %v9280_v34 = vld [vmem:[#allocation11 + $0x30] sm:$0xff]  }
 0x776   :  { %v10059_v15 = vsub.f32 %v8743_v25, %v7200_v29  ;;  %v10061_v21 = vsub.f32 %v8744_v17, %v7200_v29  ;;  %v7209_v28 = vmul.f32 %v10051_v4, %v10051_v4  ;;  %v7210_v22 = vmul.f32 %v10053_v39, %v10053_v39  ;;  %8688 = vmatpush3.bf16.msra.mxu0 %v9268_v16  ;;  %v9273_v25 = vld [vmem:[#allocation11 + $0xa0] sm:$0xff]   ;;  %v9278_v17 = vld [vmem:[#allocation11 + $0x70] sm:$0xff]  }
 0x777   :  { %v7211_v46 = vmul.f32 %v10055_v1, %v10055_v1  ;;  %v10069_v49 = vsub.f32 %v8747_v5, %v7200_v29  ;;  %v10071_v50 = vsub.f32 %v8748_v14, %v7200_v29  ;;  %v7212_v51 = vmul.f32 %v10057_v37, %v10057_v37  ;;  %8710 = vmatpush3.bf16.msra.mxu1 %v9269_v3  ;;  %v9281_v5 = vld [vmem:[#allocation11 + $0xb0] sm:$0xff]   ;;  %v9284_v14 = vld [vmem:[#allocation11 + $0x38] sm:$0xff]  }
 0x778   :  { %v7217_v13 = vadd.f32 %v7210_v22, %v7209_v28  ;;  %v7213_v44 = vmul.f32 %v10059_v15, %v10059_v15  ;;  %v7214_v20 = vmul.f32 %v10061_v21, %v10061_v21  ;;  %8689 = vmatprep.subr.bf16.mxu0 %v9270_v6  ;;  %8711 = vmatprep.subr.bf16.mxu1 %v9271_v19  ;;  %v7185_v28 = vld [vmem:[#allocation10 + $0x1] ss:$4 sm:$0xf]  ;;  %v7187_v22 = vld [vmem:[#allocation10 + $0x2] ss:$4 sm:$0xf] }
 0x779   :  { %v7215_v53 = vmul.f32 %v10069_v49, %v10069_v49  ;;  %v7216_v43 = vmul.f32 %v10071_v50, %v10071_v50  ;;  %v7253_v57 = vrot.slane %v7185_v28, %v9702_v59 }
 0x77a   :  { %v7218_v47 = vadd.f32 %v7217_v13, %v7211_v46  ;;  %v7222_v33 = vadd.f32 %v7214_v20, %v7213_v44  ;;  %8690 = vmatpush3.bf16.msra.mxu0 %v9272_v35  ;;  %v7249_v46 = vrot.slane %v7185_v28, %v9698_v55  ;;  %v7257_v13 = vrot.slane %v7185_v28, %v9711_v63 }
 0x77b   :  { %8712 = vmatpush3.bf16.msra.mxu1 %v9273_v25  ;;  %8691 = vmatprep.subr.bf16.mxu0 %v9274_v18  ;;  %v7278_v20 = vrot.slane %v7187_v22, %v9698_v55 }
 0x77c   :  { %v7219_v52 = vadd.f32 %v7218_v47, %v7212_v51  ;;  %v7223_v10 = vadd.f32 %v7222_v33, %v7215_v53  ;;  %8713 = vmatprep.subr.bf16.mxu1 %v9275_v60  ;;  %v7245_v51 = vrot.slane %v7185_v28, %v9696_v54  ;;  %v7286_v33 = vrot.slane %v7187_v22, %v9711_v63 }
 0x77e   :  { %7220 = vadd.xlane.f32.xlu0 %v7219_v52  ;;  %v7224_v56 = vadd.f32 %v7223_v10, %v7216_v43  ;;  %8692 = vmatpush3.bf16.msra.mxu0 %v9276_v11  ;;  %v7274_v10 = vrot.slane %v7187_v22, %v9696_v54 }
 0x77f   :  { %8714 = vmatpush3.bf16.msra.mxu1 %v9277_v61  ;;  %8693 = vmatprep.subr.bf16.mxu0 %v9278_v17 }
 0x780   :  { %7225 = vadd.xlane.f32.xlu1 %v7224_v56  ;;  %8715 = vmatprep.subr.bf16.mxu1 %v9279_v26 }
 0x782   :  { %8694 = vmatpush3.bf16.msra.mxu0 %v9280_v34 }
 0x783   :  { %8716 = vmatpush3.bf16.msra.mxu1 %v9281_v5  ;;  %8695 = vmatprep.subr.bf16.mxu0 %v9282_v31 }
 0x784   :  { %8717 = vmatprep.subr.bf16.mxu1 %v9283_v45 }
 0x786   :  { %8696 = vmatpush3.bf16.msra.mxu0 %v9284_v14 }
 0x787   :  { %8718 = vmatpush3.bf16.msra.mxu1 %v9285_v23 }
 0x80b   :  { %v7221_v0 = vpop.xlane.xlu0 %7220 }
 0x80c   :  { %v7227_v30 = vmul.f32 0.001953125, %v7221_v0 }
 0x80d   :  { %v7226_v27 = vpop.xlane.xlu1 %7225 }
 0x80e   :  { %v7229_v36 = vadd.f32 1e-05, %v7227_v30  ;;  %v7228_v41 = vmul.f32 0.001953125, %v7226_v27 }
 0x810   :  { %9322 = vrsqrt.f32 %v7229_v36  ;;  %v7230_v29 = vadd.f32 1e-05, %v7228_v41 }
 0x812   :  { %9324 = vrsqrt.f32 %v7230_v29 }
 0x81a   :  { %v9323_v44 = vpop.eup %9322 }
 0x81b   :  { %v7234_v47 = vmul.f32 %v9323_v44, %v10053_v39  ;;  %v7236_v53 = vmul.f32 %v9323_v44, %v10057_v37  ;;  %v7233_v52 = vmul.f32 %v9323_v44, %v10051_v4  ;;  %v7235_v56 = vmul.f32 %v9323_v44, %v10055_v1 }
 0x81c   :  { %v9325_v43 = vpop.eup %9324 }
 0x81d   :  { %v7238_v8 = vmul.f32 %v9325_v43, %v10061_v21  ;;  %v7263_v55 = vmul.f32 %v7249_v46, %v7234_v47  ;;  %v7240_v42 = vmul.f32 %v9325_v43, %v10071_v50  ;;  %v7265_v62 = vmul.f32 %v7257_v13, %v7236_v53 }
 0x81e   :  { %v7237_v39 = vmul.f32 %v9325_v43, %v10059_v15  ;;  %v7262_v37 = vmul.f32 %v7245_v51, %v7233_v52  ;;  %v7239_v63 = vmul.f32 %v9325_v43, %v10069_v49  ;;  %v7264_v7 = vmul.f32 %v7253_v57, %v7235_v56 }
 0x81f   :  { %v7267_v48 = vmul.f32 %v7249_v46, %v7238_v8  ;;  %v10098_v4 = vadd.f32 %v7278_v20, %v7263_v55  ;;  %v7269_v2 = vmul.f32 %v7257_v13, %v7240_v42  ;;  %v10100_v54 = vadd.f32 %v7286_v33, %v7265_v62 }
 0x820   :  { %v7266_v1 = vmul.f32 %v7245_v51, %v7237_v39  ;;  %v10102_v12 = vadd.f32 %v7274_v10, %v7262_v37  ;;  %v7282_v21 = vrot.slane %v7187_v22, %v9702_v59  ;;  %v7268_v9 = vmul.f32 %v7253_v57, %v7239_v63 }
 0x821   :  { %v7296_v58 = vadd.f32 %v7278_v20, %v7267_v48  ;;  %v7308_v50 = vmul.f32 %v10098_v4, %v10098_v4  ;;  %v7298_v15 = vadd.f32 %v7286_v33, %v7269_v2  ;;  %v7310_v49 = vmul.f32 %v10100_v54, %v10100_v54 }
 0x822   :  { %v10109_v40 = vadd.f32 %v7274_v10, %v7266_v1  ;;  %v7307_v59 = vmul.f32 %v10102_v12, %v10102_v12  ;;  %v10115_v3 = vadd.f32 %v7282_v21, %v7264_v7  ;;  %v10119_v25 = vadd.f32 %v7282_v21, %v7268_v9 }
 0x823   :  { %v7312_v24 = vmul.f32 %v7296_v58, %v7296_v58  ;;  %v7316_v38 = vmul.f32 %v7308_v50, %v10098_v4  ;;  %v7314_v32 = vmul.f32 %v7298_v15, %v7298_v15  ;;  %v7318_v16 = vmul.f32 %v7310_v49, %v10100_v54 }
 0x824   :  { %v7311_v35 = vmul.f32 %v10109_v40, %v10109_v40  ;;  %v7315_v11 = vmul.f32 %v7307_v59, %v10102_v12  ;;  %v7309_v45 = vmul.f32 %v10115_v3, %v10115_v3  ;;  %v7313_v30 = vmul.f32 %v10119_v25, %v10119_v25 }
 0x825   :  { %v7320_v6 = vmul.f32 %v7312_v24, %v7296_v58  ;;  %v7324_v19 = vmul.f32 0.044715, %v7316_v38  ;;  %v7322_v18 = vmul.f32 %v7314_v32, %v7298_v15  ;;  %v7326_v60 = vmul.f32 0.044715, %v7318_v16 }
 0x826   :  { %v7319_v26 = vmul.f32 %v7311_v35, %v10109_v40  ;;  %v7323_v31 = vmul.f32 0.044715, %v7315_v11  ;;  %v7317_v29 = vmul.f32 %v7309_v45, %v10115_v3  ;;  %v7321_v46 = vmul.f32 %v7313_v30, %v10119_v25 }
 0x827   :  { %v7328_v61 = vmul.f32 0.044715, %v7320_v6  ;;  %v7332_v17 = vadd.f32 %v7324_v19, %v10098_v4  ;;  %v7330_v34 = vmul.f32 0.044715, %v7322_v18  ;;  %v7334_v5 = vadd.f32 %v7326_v60, %v10100_v54 }
 0x828   :  { %v7327_v0 = vmul.f32 0.044715, %v7319_v26  ;;  %v7331_v41 = vadd.f32 %v7323_v31, %v10102_v12  ;;  %v7325_v20 = vmul.f32 0.044715, %v7317_v29  ;;  %v7329_v47 = vmul.f32 0.044715, %v7321_v46 }
 0x829   :  { %v7336_v14 = vadd.f32 %v7328_v61, %v7296_v58  ;;  %v7340_v23 = vmul.f32 0.7978846, %v7332_v17  ;;  %v7338_v27 = vadd.f32 %v7330_v34, %v7298_v15  ;;  %v7342_v36 = vmul.f32 0.7978846, %v7334_v5  ;;  %v8648_v26 = vld [vmem:[#allocation13] ss:$0 sm:$0xff] }
 0x82a   :  { %v7335_v22 = vadd.f32 %v7327_v0, %v10109_v40  ;;  %v7339_v44 = vmul.f32 0.7978846, %v7331_v41  ;;  %v7333_v53 = vadd.f32 %v7325_v20, %v10115_v3  ;;  %v7337_v33 = vadd.f32 %v7329_v47, %v10119_v25 }
 0x82b   :  { %v7344_v28 = vmul.f32 0.7978846, %v7336_v14  ;;  %9326 = vtanh.f32 %v7340_v23  ;;  %v7346_v13 = vmul.f32 0.7978846, %v7338_v27  ;;  %v7300_v62 = vmul.f32 0.5, %v10098_v4 }
 0x82c   :  { %9328 = vtanh.f32 %v7342_v36  ;;  %v7343_v51 = vmul.f32 0.7978846, %v7335_v22  ;;  %v7341_v52 = vmul.f32 0.7978846, %v7333_v53  ;;  %v7345_v43 = vmul.f32 0.7978846, %v7337_v33 }
 0x82d   :  { %9330 = vtanh.f32 %v7344_v28  ;;  %v7304_v39 = vmul.f32 0.5, %v7296_v58  ;;  %v7302_v48 = vmul.f32 0.5, %v10100_v54  ;;  %v7306_v2 = vmul.f32 0.5, %v7298_v15 }
 0x82e   :  { %9332 = vtanh.f32 %v7346_v13  ;;  %v7299_v9 = vmul.f32 0.5, %v10102_v12  ;;  %v7303_v32 = vmul.f32 0.5, %v10109_v40  ;;  %v7301_v15 = vmul.f32 0.5, %v10115_v3 }
 0x82f   :  { %9334 = vtanh.f32 %v7339_v44  ;;  %v7305_v18 = vmul.f32 0.5, %v10119_v25 }
 0x830   :  { %9336 = vtanh.f32 %v7343_v51 }
 0x831   :  { %9338 = vtanh.f32 %v7341_v52 }
 0x832   :  { %9340 = vtanh.f32 %v7345_v43 }
 0x835   :  { %v9327_v10 = vpop.eup %9326 }
 0x836   :  { %v9329_v56 = vpop.eup %9328  ;;  %v7356_v57 = vadd.f32 1.0, %v9327_v10 }
 0x837   :  { %v9331_v8 = vpop.eup %9330  ;;  %v7358_v55 = vadd.f32 1.0, %v9329_v56 }
 0x838   :  { %v9333_v42 = vpop.eup %9332  ;;  %v7360_v37 = vadd.f32 1.0, %v9331_v8  ;;  %v7364_v21 = vmul.f32 %v7356_v57, %v7300_v62 }
 0x839   :  { %v9335_v63 = vpop.eup %9334  ;;  %v7362_v1 = vadd.f32 1.0, %v9333_v42  ;;  %v7366_v24 = vmul.f32 %v7358_v55, %v7302_v48 }
 0x83a   :  { %v9337_v7 = vpop.eup %9336  ;;  %v7368_v50 = vmul.f32 %v7360_v37, %v7304_v39  ;;  %v7355_v49 = vadd.f32 1.0, %v9335_v63 }
 0x83b   :  { %v7370_v38 = vmul.f32 %v7362_v1, %v7306_v2  ;;  %v7359_v16 = vadd.f32 1.0, %v9337_v7  ;;  %v9339_v59 = vpop.eup %9338 }
 0x83c   :  { %v7372_v4 = vpack.c.bf16 %v7368_v50, %v7364_v21  ;;  %v9341_v58 = vpop.eup %9340  ;;  %v7363_v19 = vmul.f32 %v7355_v49, %v7299_v9  ;;  %v7357_v54 = vadd.f32 1.0, %v9339_v59 }
 0x83d   :  { %v7374_v6 = vpack.c.bf16 %v7370_v38, %v7366_v24  ;;  %v7367_v35 = vmul.f32 %v7359_v16, %v7303_v32  ;;  %v7361_v60 = vadd.f32 1.0, %v9341_v58 }
 0x83e   :  { %7670 = vmatprep.mubr.bf16.mxu0 %v7372_v4  ;;  %v7365_v11 = vmul.f32 %v7357_v54, %v7301_v15 }
 0x83f   :  { %7711 = vmatprep.mubr.bf16.mxu1 %v7374_v6  ;;  %v7371_v12 = vpack.c.bf16 %v7367_v35, %v7363_v19  ;;  %v7369_v61 = vmul.f32 %v7361_v60, %v7305_v18 }
 0x841   :  { %7671 = vmatmul.mubr.bf16.vlgmr.msra.gmra.mrb[12].mxu0 %v7371_v12  ;;  %v7373_v40 = vpack.c.bf16 %v7369_v61, %v7365_v11 }
 0x843   :  { %7712 = vmatmul.mubr.bf16.vlgmr.msra.gmra.mrb[12].mxu1 %v7373_v40 }
 0x914   :  { %v8697_v17 = vpop.f32.mrb[12].mxu0 }
 0x915   :  { %v8698_v34 = vpop.f32.mrb[13].mxu0 }
 0x916   :  { %v8699_v5 = vadd.f32 %v8698_v34, %v8697_v17  ;;  %v8700_v31 = vpop.f32.mrb[14].mxu0  ;;  %v8719_v45 = vpop.f32.mrb[12].mxu1 }
 0x917   :  { %v8701_v14 = vpop.f32.mrb[15].mxu0  ;;  %v8720_v0 = vpop.f32.mrb[13].mxu1 }
 0x918   :  { %v7673_v23 = vadd.f32 %v8699_v5, %v8648_v26  ;;  %v8702_v3 = vadd.f32 %v8701_v14, %v8700_v31  ;;  %v8721_v30 = vadd.f32 %v8720_v0, %v8719_v45  ;;  %v8722_v25 = vpop.f32.mrb[14].mxu1 }
 0x919   :  { %v8723_v36 = vpop.f32.mrb[15].mxu1 }
 0x91a   :  { %v7676_v27 = vadd.f32 %v8702_v3, %v8648_v26  ;;  %v7714_v41 = vadd.f32 %v8721_v30, %v7673_v23  ;;  %v8724_v29 = vadd.f32 %v8723_v36, %v8722_v25 }
 0x91c   :  { %7720 = vst [vmem:[#allocation14] sm:$0xff] %v7714_v41  ;;  %v7717_v28 = vadd.f32 %v8724_v29, %v7676_v27 }
 0x91e   :  { %7721 = vst [vmem:[#allocation14 + $0x8] sm:$0xff] %v7717_v28 }
 0x91f   :  { %9517 = shalt.err (!%p9514_p4)
}
 0x920   :  { %s9518_s17 = scalar_lea.hbm %s10160_s7, 256 }
 0x921   :  { %p9519_p5 = scmp.ne.s32.totalorder %s10160_s7, %s9518_s17  ;;  %p9522_p6 = scmp.lt.u32.totalorder %s9518_s17, %s10160_s7 }
 0x923   :  { %p9524_p7 = pnand %p9522_p6, %p9519_p5 }
 0x925   :  { %9527 = shalt.err (!%p9524_p7)
}
 0x926   :  { %s9554_s22 = smov 128   ;;  %s9555_s23 = smov 8  }
 0x927   :  { %7733 = dma.vmem_to_hbm [thread:$0]  %s7728_s3, 256, %s10160_s7, [#allocation4], %s9554_s22, %s9554_s22, %s9555_s23  }
 0x928   :  { %9536 = dma.done.wait [#allocation4], 256  }
 0x929   :  { %9537 = vsyncadd [#allocation4], 4294967040 }
 0x92a   :  { %7737 = vsyncpa [#allocation3], 1 }
 0x92b   :  { %7738 = vsyncpa [#allocation6], 1 }
 0x92c   :  { %7739 = vsyncpa [#allocation9], 1 }
 0x92d   :  { %7740 = vsyncpa [#allocation12], 1 }
 0x92e   :  { %7741 = vsyncpa [#allocation4], 1 }

</bundles_post_ra>
